<compile_context>
chip_gen: v6e
topology: v6e:2x2x1
jax: 0.10.0
libtpu: 0.0.40
codegen_flags: <defaults>
</compile_context>

<pallas_src>
import jax
import jax.numpy as jnp
from jax.experimental import pallas as pl
from jax.experimental.pallas import tpu as pltpu

BN_EPS = 1e-5
NEG_SLOPE = 0.2

# (Cin, Cout, stride) for the 5 Conv2d(k=4, padding=1) layers of Critc.Clayers
_CONV_CFG = [(2, 64, 2), (64, 128, 2), (128, 256, 2), (256, 512, 1), (512, 2, 1)]
_HAS_BN = [False, True, True, True, False]
_HAS_LRELU = [True, True, True, True, False]


def _round_up(x, m):
    return ((x + m - 1) // m) * m


def _pick_tile(dim, pref, align):
    """Return (tile, padded_dim): tile = pref if dim is large, else dim rounded
    up to `align`; padded_dim is a multiple of tile."""
    if dim >= pref:
        return pref, _round_up(dim, pref)
    t = _round_up(dim, align)
    return t, t


def _fused_conv_matmul(a, w, shift, *, apply_lrelu):
    """y = leaky_relu(a @ w + shift)  (bias/BN pre-folded into w and shift).

    a:     [M, K]  im2col patches (f32, cast to bf16 inside)
    w:     [K, C]  folded conv weight
    shift: [1, C]  folded bias + BN shift
    Returns [M, C] float32.
    """
    M, K = a.shape
    C = w.shape[1]

    tm, Mp = _pick_tile(M, 256, 16)     # sublane-friendly rows
    tk, Kp = _pick_tile(K, 512, 128)    # deep K tiles feed the MXU
    tn, Cp = _pick_tile(C, 256, 128)    # lane-dense output columns

    a_p = jnp.pad(a, ((0, Mp - M), (0, Kp - K))).astype(jnp.bfloat16)
    w_p = jnp.pad(w, ((0, Kp - K), (0, Cp - C))).astype(jnp.bfloat16)
    t_p = jnp.pad(shift, ((0, 0), (0, Cp - C))).astype(jnp.float32)

    def kernel(a_ref, w_ref, t_ref, o_ref, acc_ref):
        @pl.when(pl.program_id(2) == 0)
        def _():
            acc_ref[...] = jnp.zeros_like(acc_ref)

        acc_ref[...] += jnp.dot(a_ref[...], w_ref[...],
                                preferred_element_type=jnp.float32)

        @pl.when(pl.program_id(2) == pl.num_programs(2) - 1)
        def _():
            y = acc_ref[...] + t_ref[...]           # f32 epilogue
            if apply_lrelu:
                y = jnp.where(y >= 0.0, y, NEG_SLOPE * y)
            o_ref[...] = y.astype(o_ref.dtype)

    out = pl.pallas_call(
        kernel,
        out_shape=jax.ShapeDtypeStruct((Mp, Cp), jnp.float32),
        grid_spec=pltpu.PrefetchScalarGridSpec(
            num_scalar_prefetch=0,
            grid=(Mp // tm, Cp // tn, Kp // tk),
            in_specs=[
                pl.BlockSpec((tm, tk), lambda i, j, k: (i, k)),
                pl.BlockSpec((tk, tn), lambda i, j, k: (k, j)),
                pl.BlockSpec((1, tn), lambda i, j, k: (0, j)),
            ],
            out_specs=pl.BlockSpec((tm, tn), lambda i, j, k: (i, j)),
            scratch_shapes=[pltpu.VMEM((tm, tn), jnp.float32)],
        ),
        compiler_params=pltpu.CompilerParams(
            dimension_semantics=("parallel", "parallel", "arbitrary")),
    )(a_p, w_p, t_p)

    return out[:M, :C]


def _im2col_nhwc(x, k, stride, pad):
    """x: [N, H, W, C] -> patches [N*Ho*Wo, k*k*C] (flat K order = (kh, kw, C))."""
    N, H, W, C = x.shape
    xp = jnp.pad(x, ((0, 0), (pad, pad), (pad, pad), (0, 0)))
    Ho = (H + 2 * pad - k) // stride + 1
    Wo = (W + 2 * pad - k) // stride + 1
    cols = []
    for i in range(k):
        for j in range(k):
            cols.append(
                xp[:,
                   i:i + stride * (Ho - 1) + 1:stride,
                   j:j + stride * (Wo - 1) + 1:stride,
                   :])
    patches = jnp.concatenate(cols, axis=-1)     # [N, Ho, Wo, k*k*C]
    return patches.reshape(N * Ho * Wo, k * k * C), Ho, Wo


def init_params(key):
    """normal_init(m, std=0.001, bias=0) for every Conv2d; BN params at defaults."""
    params = []
    for cin, cout, _stride in _CONV_CFG:
        key, wk = jax.random.split(key)
        w = 0.001 * jax.random.normal(wk, (cout, cin, 4, 4), dtype=jnp.float32)
        b = jnp.zeros((cout,), jnp.float32)
        params.append({"w": w, "b": b})
    return params


def critic_forward(x, params):
    """Forward pass of Critc. x: [N, 2, H, W] (NCHW) -> [N, 2, Ho, Wo] (NCHW)."""
    N = x.shape[0]
    h = x.transpose(0, 2, 3, 1)                     # NCHW -> NHWC (once)
    for p, (cin, cout, stride), has_bn, has_lrelu in zip(
            params, _CONV_CFG, _HAS_BN, _HAS_LRELU):
        a, Ho, Wo = _im2col_nhwc(h, 4, stride, 1)
        # Flatten PyTorch weight (Cout, Cin, kh, kw) in (kh, kw, Cin) order to
        # match the channels-last patch layout.
        w2d = p["w"].transpose(2, 3, 1, 0).reshape(-1, cout)   # [K, Cout]
        if has_bn:
            gamma = jnp.ones((cout,), jnp.float32)
            beta = jnp.zeros((cout,), jnp.float32)
            rmean = jnp.zeros((cout,), jnp.float32)
            rvar = jnp.ones((cout,), jnp.float32)
            inv_std = gamma / jnp.sqrt(rvar + BN_EPS)
            # (a@w + b)*s + t  ==  a@(w*s) + (b*s + t)
            w2d = w2d * inv_std[None, :]
            shift = (p["b"] * inv_std + (beta - rmean * inv_std)).reshape(1, cout)
        else:
            shift = p["b"].reshape(1, cout)
        y = _fused_conv_matmul(a, w2d, shift, apply_lrelu=has_lrelu)
        h = y.reshape(N, Ho, Wo, cout)              # stay NHWC between layers
    return h.transpose(0, 3, 1, 2)                  # NHWC -> NCHW at the boundary


if __name__ == "__main__":
    key = jax.random.PRNGKey(0)
    pkey, xkey = jax.random.split(key)
    params = init_params(pkey)

    # Input: batch=2, channels=2 (required by Conv2d(2, 64, ...)), spatial 32x32
    # (smallest nice size that survives all 5 convs: 32 -> 16 -> 8 -> 4 -> 3 -> 2).
    x = jax.random.normal(xkey, (2, 2, 32, 32), dtype=jnp.float32)

    fwd = jax.jit(critic_forward)
    out = fwd(x, params)
    out = jax.block_until_ready(out)
    assert out.shape == (2, 2, 2, 2), out.shape
    assert out.dtype == jnp.float32
    print("KERNEL_OK")
</pallas_src>

<mosaic_0001>
module attributes {stable_mosaic.version = 11 : i64} {
  func.func @kernel(%arg0: i32, %arg1: i32, %arg2: i32, %arg3: memref<256x128xbf16, #tpu.memory_space<vmem>>, %arg4: memref<128x128xbf16, #tpu.memory_space<vmem>>, %arg5: memref<1x128xf32, #tpu.memory_space<vmem>>, %arg6: memref<256x128xf32, #tpu.memory_space<vmem>>, %arg7: memref<256x128xf32, #tpu.memory_space<vmem>>) attributes {dimension_semantics = [#tpu.dimension_semantics<parallel>, #tpu.dimension_semantics<parallel>, #tpu.dimension_semantics<arbitrary>], iteration_bounds = array<i64: 2, 1, 1>, scalar_prefetch = 0 : i64, scratch_operands = 1 : i64, tpu.core_type = #tpu.core_type<tc>, window_params = [{transform_indices = @transform_0, window_bounds = array<i64: 256, 128>}, {transform_indices = @transform_1, window_bounds = array<i64: 128, 128>}, {transform_indices = @transform_2, window_bounds = array<i64: 1, 128>}, {transform_indices = @transform_3, window_bounds = array<i64: 256, 128>}]} {
    %c0_i32 = arith.constant 0 : i32
    %0 = arith.cmpi eq, %arg2, %c0_i32 : i32
    %1 = arith.extui %0 : i1 to i32
    %c0_i32_0 = arith.constant 0 : i32
    %2 = arith.cmpi ne, %1, %c0_i32_0 : i32
    scf.if %2 {
      %cst_10 = arith.constant 0.000000e+00 : f32
      %12 = vector.broadcast %cst_10 : f32 to vector<256x128xf32>
      %c0_11 = arith.constant 0 : index
      %c0_12 = arith.constant 0 : index
      %13 = vector.load %arg7[%c0_11, %c0_12] : memref<256x128xf32, #tpu.memory_space<vmem>>, vector<256x128xf32>
      tpu.vector_store %arg7[%c0_11, %c0_12], %12 {strides = array<i32>} : memref<256x128xf32, #tpu.memory_space<vmem>>, vector<256x128xf32>,
    } else {
    }
    %c0 = arith.constant 0 : index
    %c0_1 = arith.constant 0 : index
    %3 = vector.load %arg7[%c0, %c0_1] : memref<256x128xf32, #tpu.memory_space<vmem>>, vector<256x128xf32>
    %c0_2 = arith.constant 0 : index
    %c0_3 = arith.constant 0 : index
    %4 = vector.load %arg3[%c0_2, %c0_3] : memref<256x128xbf16, #tpu.memory_space<vmem>>, vector<256x128xbf16>
    %c0_4 = arith.constant 0 : index
    %c0_5 = arith.constant 0 : index
    %5 = vector.load %arg4[%c0_4, %c0_5] : memref<128x128xbf16, #tpu.memory_space<vmem>>, vector<128x128xbf16>
    %cst = arith.constant dense<0.000000e+00> : vector<256x128xf32>
    %6 = tpu.matmul %4, %5, %cst {dimension_numbers = #tpu.dot_dimension_numbers<[1], [0], [0], [1], [0, 0, 1, 1], [], []>} : vector<256x128xbf16>, vector<128x128xbf16>, vector<256x128xf32> -> vector<256x128xf32>
    %7 = arith.addf %3, %6 : vector<256x128xf32>
    %c0_6 = arith.constant 0 : index
    %c0_7 = arith.constant 0 : index
    %8 = vector.load %arg7[%c0_6, %c0_7] : memref<256x128xf32, #tpu.memory_space<vmem>>, vector<256x128xf32>
    tpu.vector_store %arg7[%c0_6, %c0_7], %7 {strides = array<i32>} : memref<256x128xf32, #tpu.memory_space<vmem>>, vector<256x128xf32>,
    %c0_i32_8 = arith.constant 0 : i32
    %9 = arith.cmpi eq, %arg2, %c0_i32_8 : i32
    %10 = arith.extui %9 : i1 to i32
    %c0_i32_9 = arith.constant 0 : i32
    %11 = arith.cmpi ne, %10, %c0_i32_9 : i32
    scf.if %11 {
      %c0_10 = arith.constant 0 : index
      %c0_11 = arith.constant 0 : index
      %12 = vector.load %arg7[%c0_10, %c0_11] : memref<256x128xf32, #tpu.memory_space<vmem>>, vector<256x128xf32>
      %c0_12 = arith.constant 0 : index
      %c0_13 = arith.constant 0 : index
      %13 = vector.load %arg5[%c0_12, %c0_13] : memref<1x128xf32, #tpu.memory_space<vmem>>, vector<1x128xf32>
      %14 = vector.broadcast %13 : vector<1x128xf32> to vector<256x128xf32>
      %15 = arith.addf %12, %14 : vector<256x128xf32>
      %cst_14 = arith.constant 0.000000e+00 : f32
      %16 = vector.broadcast %cst_14 : f32 to vector<256x128xf32>
      %17 = arith.cmpf oge, %15, %16 : vector<256x128xf32>
      %cst_15 = arith.constant 2.000000e-01 : f32
      %18 = vector.broadcast %cst_15 : f32 to vector<256x128xf32>
      %19 = arith.mulf %18, %15 : vector<256x128xf32>
      %20 = arith.select %17, %15, %19 : vector<256x128xi1>, vector<256x128xf32>
      %c0_16 = arith.constant 0 : index
      %c0_17 = arith.constant 0 : index
      %21 = vector.load %arg6[%c0_16, %c0_17] : memref<256x128xf32, #tpu.memory_space<vmem>>, vector<256x128xf32>
      tpu.vector_store %arg6[%c0_16, %c0_17], %20 {strides = array<i32>} : memref<256x128xf32, #tpu.memory_space<vmem>>, vector<256x128xf32>,
    } else {
    }
    return
  }
  func.func @transform_0(%arg0: i32, %arg1: i32, %arg2: i32) -> (i32, i32) {
    %c0_i32 = arith.constant 0 : i32
    return %arg0, %arg2 : i32, i32
  }
  func.func @transform_1(%arg0: i32, %arg1: i32, %arg2: i32) -> (i32, i32) {
    %c0_i32 = arith.constant 0 : i32
    return %arg2, %arg1 : i32, i32
  }
  func.func @transform_2(%arg0: i32, %arg1: i32, %arg2: i32) -> (i32, i32) {
    %c0_i32 = arith.constant 0 : i32
    %c0_i32_0 = arith.constant 0 : i32
    return %c0_i32, %arg1 : i32, i32
  }
  func.func @transform_3(%arg0: i32, %arg1: i32, %arg2: i32) -> (i32, i32) {
    %c0_i32 = arith.constant 0 : i32
    return %arg0, %arg1 : i32, i32
  }
}

module attributes {stable_mosaic.version = 11 : i64} {
  func.func @kernel(%arg0: i32, %arg1: i32, %arg2: i32, %arg3: memref<128x512xbf16, #tpu.memory_space<vmem>>, %arg4: memref<512x128xbf16, #tpu.memory_space<vmem>>, %arg5: memref<1x128xf32, #tpu.memory_space<vmem>>, %arg6: memref<128x128xf32, #tpu.memory_space<vmem>>, %arg7: memref<128x128xf32, #tpu.memory_space<vmem>>) attributes {dimension_semantics = [#tpu.dimension_semantics<parallel>, #tpu.dimension_semantics<parallel>, #tpu.dimension_semantics<arbitrary>], iteration_bounds = array<i64: 1, 1, 2>, scalar_prefetch = 0 : i64, scratch_operands = 1 : i64, tpu.core_type = #tpu.core_type<tc>, window_params = [{transform_indices = @transform_0, window_bounds = array<i64: 128, 512>}, {transform_indices = @transform_1, window_bounds = array<i64: 512, 128>}, {transform_indices = @transform_2, window_bounds = array<i64: 1, 128>}, {transform_indices = @transform_3, window_bounds = array<i64: 128, 128>}]} {
    %c0_i32 = arith.constant 0 : i32
    %0 = arith.cmpi eq, %arg2, %c0_i32 : i32
    %1 = arith.extui %0 : i1 to i32
    %c0_i32_0 = arith.constant 0 : i32
    %2 = arith.cmpi ne, %1, %c0_i32_0 : i32
    scf.if %2 {
      %cst_9 = arith.constant 0.000000e+00 : f32
      %12 = vector.broadcast %cst_9 : f32 to vector<128x128xf32>
      %c0_10 = arith.constant 0 : index
      %c0_11 = arith.constant 0 : index
      %13 = vector.load %arg7[%c0_10, %c0_11] : memref<128x128xf32, #tpu.memory_space<vmem>>, vector<128x128xf32>
      tpu.vector_store %arg7[%c0_10, %c0_11], %12 {strides = array<i32>} : memref<128x128xf32, #tpu.memory_space<vmem>>, vector<128x128xf32>,
    } else {
    }
    %c0 = arith.constant 0 : index
    %c0_1 = arith.constant 0 : index
    %3 = vector.load %arg7[%c0, %c0_1] : memref<128x128xf32, #tpu.memory_space<vmem>>, vector<128x128xf32>
    %c0_2 = arith.constant 0 : index
    %c0_3 = arith.constant 0 : index
    %4 = vector.load %arg3[%c0_2, %c0_3] : memref<128x512xbf16, #tpu.memory_space<vmem>>, vector<128x512xbf16>
    %c0_4 = arith.constant 0 : index
    %c0_5 = arith.constant 0 : index
    %5 = vector.load %arg4[%c0_4, %c0_5] : memref<512x128xbf16, #tpu.memory_space<vmem>>, vector<512x128xbf16>
    %cst = arith.constant dense<0.000000e+00> : vector<128x128xf32>
    %6 = tpu.matmul %4, %5, %cst {dimension_numbers = #tpu.dot_dimension_numbers<[1], [0], [0], [1], [0, 0, 1, 1], [], []>} : vector<128x512xbf16>, vector<512x128xbf16>, vector<128x128xf32> -> vector<128x128xf32>
    %7 = arith.addf %3, %6 : vector<128x128xf32>
    %c0_6 = arith.constant 0 : index
    %c0_7 = arith.constant 0 : index
    %8 = vector.load %arg7[%c0_6, %c0_7] : memref<128x128xf32, #tpu.memory_space<vmem>>, vector<128x128xf32>
    tpu.vector_store %arg7[%c0_6, %c0_7], %7 {strides = array<i32>} : memref<128x128xf32, #tpu.memory_space<vmem>>, vector<128x128xf32>,
    %c1_i32 = arith.constant 1 : i32
    %9 = arith.cmpi eq, %arg2, %c1_i32 : i32
    %10 = arith.extui %9 : i1 to i32
    %c0_i32_8 = arith.constant 0 : i32
    %11 = arith.cmpi ne, %10, %c0_i32_8 : i32
    scf.if %11 {
      %c0_9 = arith.constant 0 : index
      %c0_10 = arith.constant 0 : index
      %12 = vector.load %arg7[%c0_9, %c0_10] : memref<128x128xf32, #tpu.memory_space<vmem>>, vector<128x128xf32>
      %c0_11 = arith.constant 0 : index
      %c0_12 = arith.constant 0 : index
      %13 = vector.load %arg5[%c0_11, %c0_12] : memref<1x128xf32, #tpu.memory_space<vmem>>, vector<1x128xf32>
      %14 = vector.broadcast %13 : vector<1x128xf32> to vector<128x128xf32>
      %15 = arith.addf %12, %14 : vector<128x128xf32>
      %cst_13 = arith.constant 0.000000e+00 : f32
      %16 = vector.broadcast %cst_13 : f32 to vector<128x128xf32>
      %17 = arith.cmpf oge, %15, %16 : vector<128x128xf32>
      %cst_14 = arith.constant 2.000000e-01 : f32
      %18 = vector.broadcast %cst_14 : f32 to vector<128x128xf32>
      %19 = arith.mulf %18, %15 : vector<128x128xf32>
      %20 = arith.select %17, %15, %19 : vector<128x128xi1>, vector<128x128xf32>
      %c0_15 = arith.constant 0 : index
      %c0_16 = arith.constant 0 : index
      %21 = vector.load %arg6[%c0_15, %c0_16] : memref<128x128xf32, #tpu.memory_space<vmem>>, vector<128x128xf32>
      tpu.vector_store %arg6[%c0_15, %c0_16], %20 {strides = array<i32>} : memref<128x128xf32, #tpu.memory_space<vmem>>, vector<128x128xf32>,
    } else {
    }
    return
  }
  func.func @transform_0(%arg0: i32, %arg1: i32, %arg2: i32) -> (i32, i32) {
    %c0_i32 = arith.constant 0 : i32
    return %arg0, %arg2 : i32, i32
  }
  func.func @transform_1(%arg0: i32, %arg1: i32, %arg2: i32) -> (i32, i32) {
    %c0_i32 = arith.constant 0 : i32
    return %arg2, %arg1 : i32, i32
  }
  func.func @transform_2(%arg0: i32, %arg1: i32, %arg2: i32) -> (i32, i32) {
    %c0_i32 = arith.constant 0 : i32
    %c0_i32_0 = arith.constant 0 : i32
    return %c0_i32, %arg1 : i32, i32
  }
  func.func @transform_3(%arg0: i32, %arg1: i32, %arg2: i32) -> (i32, i32) {
    %c0_i32 = arith.constant 0 : i32
    return %arg0, %arg1 : i32, i32
  }
}

module attributes {stable_mosaic.version = 11 : i64} {
  func.func @kernel(%arg0: i32, %arg1: i32, %arg2: i32, %arg3: memref<32x512xbf16, #tpu.memory_space<vmem>>, %arg4: memref<512x256xbf16, #tpu.memory_space<vmem>>, %arg5: memref<1x256xf32, #tpu.memory_space<vmem>>, %arg6: memref<32x256xf32, #tpu.memory_space<vmem>>, %arg7: memref<32x256xf32, #tpu.memory_space<vmem>>) attributes {dimension_semantics = [#tpu.dimension_semantics<parallel>, #tpu.dimension_semantics<parallel>, #tpu.dimension_semantics<arbitrary>], iteration_bounds = array<i64: 1, 1, 4>, scalar_prefetch = 0 : i64, scratch_operands = 1 : i64, tpu.core_type = #tpu.core_type<tc>, window_params = [{transform_indices = @transform_0, window_bounds = array<i64: 32, 512>}, {transform_indices = @transform_1, window_bounds = array<i64: 512, 256>}, {transform_indices = @transform_2, window_bounds = array<i64: 1, 256>}, {transform_indices = @transform_3, window_bounds = array<i64: 32, 256>}]} {
    %c0_i32 = arith.constant 0 : i32
    %0 = arith.cmpi eq, %arg2, %c0_i32 : i32
    %1 = arith.extui %0 : i1 to i32
    %c0_i32_0 = arith.constant 0 : i32
    %2 = arith.cmpi ne, %1, %c0_i32_0 : i32
    scf.if %2 {
      %cst_9 = arith.constant 0.000000e+00 : f32
      %12 = vector.broadcast %cst_9 : f32 to vector<32x256xf32>
      %c0_10 = arith.constant 0 : index
      %c0_11 = arith.constant 0 : index
      %13 = vector.load %arg7[%c0_10, %c0_11] : memref<32x256xf32, #tpu.memory_space<vmem>>, vector<32x256xf32>
      tpu.vector_store %arg7[%c0_10, %c0_11], %12 {strides = array<i32>} : memref<32x256xf32, #tpu.memory_space<vmem>>, vector<32x256xf32>,
    } else {
    }
    %c0 = arith.constant 0 : index
    %c0_1 = arith.constant 0 : index
    %3 = vector.load %arg7[%c0, %c0_1] : memref<32x256xf32, #tpu.memory_space<vmem>>, vector<32x256xf32>
    %c0_2 = arith.constant 0 : index
    %c0_3 = arith.constant 0 : index
    %4 = vector.load %arg3[%c0_2, %c0_3] : memref<32x512xbf16, #tpu.memory_space<vmem>>, vector<32x512xbf16>
    %c0_4 = arith.constant 0 : index
    %c0_5 = arith.constant 0 : index
    %5 = vector.load %arg4[%c0_4, %c0_5] : memref<512x256xbf16, #tpu.memory_space<vmem>>, vector<512x256xbf16>
    %cst = arith.constant dense<0.000000e+00> : vector<32x256xf32>
    %6 = tpu.matmul %4, %5, %cst {dimension_numbers = #tpu.dot_dimension_numbers<[1], [0], [0], [1], [0, 0, 1, 1], [], []>} : vector<32x512xbf16>, vector<512x256xbf16>, vector<32x256xf32> -> vector<32x256xf32>
    %7 = arith.addf %3, %6 : vector<32x256xf32>
    %c0_6 = arith.constant 0 : index
    %c0_7 = arith.constant 0 : index
    %8 = vector.load %arg7[%c0_6, %c0_7] : memref<32x256xf32, #tpu.memory_space<vmem>>, vector<32x256xf32>
    tpu.vector_store %arg7[%c0_6, %c0_7], %7 {strides = array<i32>} : memref<32x256xf32, #tpu.memory_space<vmem>>, vector<32x256xf32>,
    %c3_i32 = arith.constant 3 : i32
    %9 = arith.cmpi eq, %arg2, %c3_i32 : i32
    %10 = arith.extui %9 : i1 to i32
    %c0_i32_8 = arith.constant 0 : i32
    %11 = arith.cmpi ne, %10, %c0_i32_8 : i32
    scf.if %11 {
      %c0_9 = arith.constant 0 : index
      %c0_10 = arith.constant 0 : index
      %12 = vector.load %arg7[%c0_9, %c0_10] : memref<32x256xf32, #tpu.memory_space<vmem>>, vector<32x256xf32>
      %c0_11 = arith.constant 0 : index
      %c0_12 = arith.constant 0 : index
      %13 = vector.load %arg5[%c0_11, %c0_12] : memref<1x256xf32, #tpu.memory_space<vmem>>, vector<1x256xf32>
      %14 = vector.broadcast %13 : vector<1x256xf32> to vector<32x256xf32>
      %15 = arith.addf %12, %14 : vector<32x256xf32>
      %cst_13 = arith.constant 0.000000e+00 : f32
      %16 = vector.broadcast %cst_13 : f32 to vector<32x256xf32>
      %17 = arith.cmpf oge, %15, %16 : vector<32x256xf32>
      %cst_14 = arith.constant 2.000000e-01 : f32
      %18 = vector.broadcast %cst_14 : f32 to vector<32x256xf32>
      %19 = arith.mulf %18, %15 : vector<32x256xf32>
      %20 = arith.select %17, %15, %19 : vector<32x256xi1>, vector<32x256xf32>
      %c0_15 = arith.constant 0 : index
      %c0_16 = arith.constant 0 : index
      %21 = vector.load %arg6[%c0_15, %c0_16] : memref<32x256xf32, #tpu.memory_space<vmem>>, vector<32x256xf32>
      tpu.vector_store %arg6[%c0_15, %c0_16], %20 {strides = array<i32>} : memref<32x256xf32, #tpu.memory_space<vmem>>, vector<32x256xf32>,
    } else {
    }
    return
  }
  func.func @transform_0(%arg0: i32, %arg1: i32, %arg2: i32) -> (i32, i32) {
    %c0_i32 = arith.constant 0 : i32
    return %arg0, %arg2 : i32, i32
  }
  func.func @transform_1(%arg0: i32, %arg1: i32, %arg2: i32) -> (i32, i32) {
    %c0_i32 = arith.constant 0 : i32
    return %arg2, %arg1 : i32, i32
  }
  func.func @transform_2(%arg0: i32, %arg1: i32, %arg2: i32) -> (i32, i32) {
    %c0_i32 = arith.constant 0 : i32
    %c0_i32_0 = arith.constant 0 : i32
    return %c0_i32, %arg1 : i32, i32
  }
  func.func @transform_3(%arg0: i32, %arg1: i32, %arg2: i32) -> (i32, i32) {
    %c0_i32 = arith.constant 0 : i32
    return %arg0, %arg1 : i32, i32
  }
}

module attributes {stable_mosaic.version = 11 : i64} {
  func.func @kernel(%arg0: i32, %arg1: i32, %arg2: i32, %arg3: memref<32x512xbf16, #tpu.memory_space<vmem>>, %arg4: memref<512x256xbf16, #tpu.memory_space<vmem>>, %arg5: memref<1x256xf32, #tpu.memory_space<vmem>>, %arg6: memref<32x256xf32, #tpu.memory_space<vmem>>, %arg7: memref<32x256xf32, #tpu.memory_space<vmem>>) attributes {dimension_semantics = [#tpu.dimension_semantics<parallel>, #tpu.dimension_semantics<parallel>, #tpu.dimension_semantics<arbitrary>], iteration_bounds = array<i64: 1, 2, 8>, scalar_prefetch = 0 : i64, scratch_operands = 1 : i64, tpu.core_type = #tpu.core_type<tc>, window_params = [{transform_indices = @transform_0, window_bounds = array<i64: 32, 512>}, {transform_indices = @transform_1, window_bounds = array<i64: 512, 256>}, {transform_indices = @transform_2, window_bounds = array<i64: 1, 256>}, {transform_indices = @transform_3, window_bounds = array<i64: 32, 256>}]} {
    %c0_i32 = arith.constant 0 : i32
    %0 = arith.cmpi eq, %arg2, %c0_i32 : i32
    %1 = arith.extui %0 : i1 to i32
    %c0_i32_0 = arith.constant 0 : i32
    %2 = arith.cmpi ne, %1, %c0_i32_0 : i32
    scf.if %2 {
      %cst_9 = arith.constant 0.000000e+00 : f32
      %12 = vector.broadcast %cst_9 : f32 to vector<32x256xf32>
      %c0_10 = arith.constant 0 : index
      %c0_11 = arith.constant 0 : index
      %13 = vector.load %arg7[%c0_10, %c0_11] : memref<32x256xf32, #tpu.memory_space<vmem>>, vector<32x256xf32>
      tpu.vector_store %arg7[%c0_10, %c0_11], %12 {strides = array<i32>} : memref<32x256xf32, #tpu.memory_space<vmem>>, vector<32x256xf32>,
    } else {
    }
    %c0 = arith.constant 0 : index
    %c0_1 = arith.constant 0 : index
    %3 = vector.load %arg7[%c0, %c0_1] : memref<32x256xf32, #tpu.memory_space<vmem>>, vector<32x256xf32>
    %c0_2 = arith.constant 0 : index
    %c0_3 = arith.constant 0 : index
    %4 = vector.load %arg3[%c0_2, %c0_3] : memref<32x512xbf16, #tpu.memory_space<vmem>>, vector<32x512xbf16>
    %c0_4 = arith.constant 0 : index
    %c0_5 = arith.constant 0 : index
    %5 = vector.load %arg4[%c0_4, %c0_5] : memref<512x256xbf16, #tpu.memory_space<vmem>>, vector<512x256xbf16>
    %cst = arith.constant dense<0.000000e+00> : vector<32x256xf32>
    %6 = tpu.matmul %4, %5, %cst {dimension_numbers = #tpu.dot_dimension_numbers<[1], [0], [0], [1], [0, 0, 1, 1], [], []>} : vector<32x512xbf16>, vector<512x256xbf16>, vector<32x256xf32> -> vector<32x256xf32>
    %7 = arith.addf %3, %6 : vector<32x256xf32>
    %c0_6 = arith.constant 0 : index
    %c0_7 = arith.constant 0 : index
    %8 = vector.load %arg7[%c0_6, %c0_7] : memref<32x256xf32, #tpu.memory_space<vmem>>, vector<32x256xf32>
    tpu.vector_store %arg7[%c0_6, %c0_7], %7 {strides = array<i32>} : memref<32x256xf32, #tpu.memory_space<vmem>>, vector<32x256xf32>,
    %c7_i32 = arith.constant 7 : i32
    %9 = arith.cmpi eq, %arg2, %c7_i32 : i32
    %10 = arith.extui %9 : i1 to i32
    %c0_i32_8 = arith.constant 0 : i32
    %11 = arith.cmpi ne, %10, %c0_i32_8 : i32
    scf.if %11 {
      %c0_9 = arith.constant 0 : index
      %c0_10 = arith.constant 0 : index
      %12 = vector.load %arg7[%c0_9, %c0_10] : memref<32x256xf32, #tpu.memory_space<vmem>>, vector<32x256xf32>
      %c0_11 = arith.constant 0 : index
      %c0_12 = arith.constant 0 : index
      %13 = vector.load %arg5[%c0_11, %c0_12] : memref<1x256xf32, #tpu.memory_space<vmem>>, vector<1x256xf32>
      %14 = vector.broadcast %13 : vector<1x256xf32> to vector<32x256xf32>
      %15 = arith.addf %12, %14 : vector<32x256xf32>
      %cst_13 = arith.constant 0.000000e+00 : f32
      %16 = vector.broadcast %cst_13 : f32 to vector<32x256xf32>
      %17 = arith.cmpf oge, %15, %16 : vector<32x256xf32>
      %cst_14 = arith.constant 2.000000e-01 : f32
      %18 = vector.broadcast %cst_14 : f32 to vector<32x256xf32>
      %19 = arith.mulf %18, %15 : vector<32x256xf32>
      %20 = arith.select %17, %15, %19 : vector<32x256xi1>, vector<32x256xf32>
      %c0_15 = arith.constant 0 : index
      %c0_16 = arith.constant 0 : index
      %21 = vector.load %arg6[%c0_15, %c0_16] : memref<32x256xf32, #tpu.memory_space<vmem>>, vector<32x256xf32>
      tpu.vector_store %arg6[%c0_15, %c0_16], %20 {strides = array<i32>} : memref<32x256xf32, #tpu.memory_space<vmem>>, vector<32x256xf32>,
    } else {
    }
    return
  }
  func.func @transform_0(%arg0: i32, %arg1: i32, %arg2: i32) -> (i32, i32) {
    %c0_i32 = arith.constant 0 : i32
    return %arg0, %arg2 : i32, i32
  }
  func.func @transform_1(%arg0: i32, %arg1: i32, %arg2: i32) -> (i32, i32) {
    %c0_i32 = arith.constant 0 : i32
    return %arg2, %arg1 : i32, i32
  }
  func.func @transform_2(%arg0: i32, %arg1: i32, %arg2: i32) -> (i32, i32) {
    %c0_i32 = arith.constant 0 : i32
    %c0_i32_0 = arith.constant 0 : i32
    return %c0_i32, %arg1 : i32, i32
  }
  func.func @transform_3(%arg0: i32, %arg1: i32, %arg2: i32) -> (i32, i32) {
    %c0_i32 = arith.constant 0 : i32
    return %arg0, %arg1 : i32, i32
  }
}

module attributes {stable_mosaic.version = 11 : i64} {
  func.func @kernel(%arg0: i32, %arg1: i32, %arg2: i32, %arg3: memref<16x512xbf16, #tpu.memory_space<vmem>>, %arg4: memref<512x128xbf16, #tpu.memory_space<vmem>>, %arg5: memref<1x128xf32, #tpu.memory_space<vmem>>, %arg6: memref<16x128xf32, #tpu.memory_space<vmem>>, %arg7: memref<16x128xf32, #tpu.memory_space<vmem>>) attributes {dimension_semantics = [#tpu.dimension_semantics<parallel>, #tpu.dimension_semantics<parallel>, #tpu.dimension_semantics<arbitrary>], iteration_bounds = array<i64: 1, 1, 16>, scalar_prefetch = 0 : i64, scratch_operands = 1 : i64, tpu.core_type = #tpu.core_type<tc>, window_params = [{transform_indices = @transform_0, window_bounds = array<i64: 16, 512>}, {transform_indices = @transform_1, window_bounds = array<i64: 512, 128>}, {transform_indices = @transform_2, window_bounds = array<i64: 1, 128>}, {transform_indices = @transform_3, window_bounds = array<i64: 16, 128>}]} {
    %c0_i32 = arith.constant 0 : i32
    %0 = arith.cmpi eq, %arg2, %c0_i32 : i32
    %1 = arith.extui %0 : i1 to i32
    %c0_i32_0 = arith.constant 0 : i32
    %2 = arith.cmpi ne, %1, %c0_i32_0 : i32
    scf.if %2 {
      %cst_9 = arith.constant 0.000000e+00 : f32
      %12 = vector.broadcast %cst_9 : f32 to vector<16x128xf32>
      %c0_10 = arith.constant 0 : index
      %c0_11 = arith.constant 0 : index
      %13 = vector.load %arg7[%c0_10, %c0_11] : memref<16x128xf32, #tpu.memory_space<vmem>>, vector<16x128xf32>
      tpu.vector_store %arg7[%c0_10, %c0_11], %12 {strides = array<i32>} : memref<16x128xf32, #tpu.memory_space<vmem>>, vector<16x128xf32>,
    } else {
    }
    %c0 = arith.constant 0 : index
    %c0_1 = arith.constant 0 : index
    %3 = vector.load %arg7[%c0, %c0_1] : memref<16x128xf32, #tpu.memory_space<vmem>>, vector<16x128xf32>
    %c0_2 = arith.constant 0 : index
    %c0_3 = arith.constant 0 : index
    %4 = vector.load %arg3[%c0_2, %c0_3] : memref<16x512xbf16, #tpu.memory_space<vmem>>, vector<16x512xbf16>
    %c0_4 = arith.constant 0 : index
    %c0_5 = arith.constant 0 : index
    %5 = vector.load %arg4[%c0_4, %c0_5] : memref<512x128xbf16, #tpu.memory_space<vmem>>, vector<512x128xbf16>
    %cst = arith.constant dense<0.000000e+00> : vector<16x128xf32>
    %6 = tpu.matmul %4, %5, %cst {dimension_numbers = #tpu.dot_dimension_numbers<[1], [0], [0], [1], [0, 0, 1, 1], [], []>} : vector<16x512xbf16>, vector<512x128xbf16>, vector<16x128xf32> -> vector<16x128xf32>
    %7 = arith.addf %3, %6 : vector<16x128xf32>
    %c0_6 = arith.constant 0 : index
    %c0_7 = arith.constant 0 : index
    %8 = vector.load %arg7[%c0_6, %c0_7] : memref<16x128xf32, #tpu.memory_space<vmem>>, vector<16x128xf32>
    tpu.vector_store %arg7[%c0_6, %c0_7], %7 {strides = array<i32>} : memref<16x128xf32, #tpu.memory_space<vmem>>, vector<16x128xf32>,
    %c15_i32 = arith.constant 15 : i32
    %9 = arith.cmpi eq, %arg2, %c15_i32 : i32
    %10 = arith.extui %9 : i1 to i32
    %c0_i32_8 = arith.constant 0 : i32
    %11 = arith.cmpi ne, %10, %c0_i32_8 : i32
    scf.if %11 {
      %c0_9 = arith.constant 0 : index
      %c0_10 = arith.constant 0 : index
      %12 = vector.load %arg7[%c0_9, %c0_10] : memref<16x128xf32, #tpu.memory_space<vmem>>, vector<16x128xf32>
      %c0_11 = arith.constant 0 : index
      %c0_12 = arith.constant 0 : index
      %13 = vector.load %arg5[%c0_11, %c0_12] : memref<1x128xf32, #tpu.memory_space<vmem>>, vector<1x128xf32>
      %14 = vector.broadcast %13 : vector<1x128xf32> to vector<16x128xf32>
      %15 = arith.addf %12, %14 : vector<16x128xf32>
      %c0_13 = arith.constant 0 : index
      %c0_14 = arith.constant 0 : index
      %16 = vector.load %arg6[%c0_13, %c0_14] : memref<16x128xf32, #tpu.memory_space<vmem>>, vector<16x128xf32>
      tpu.vector_store %arg6[%c0_13, %c0_14], %15 {strides = array<i32>} : memref<16x128xf32, #tpu.memory_space<vmem>>, vector<16x128xf32>,
    } else {
    }
    return
  }
  func.func @transform_0(%arg0: i32, %arg1: i32, %arg2: i32) -> (i32, i32) {
    %c0_i32 = arith.constant 0 : i32
    return %arg0, %arg2 : i32, i32
  }
  func.func @transform_1(%arg0: i32, %arg1: i32, %arg2: i32) -> (i32, i32) {
    %c0_i32 = arith.constant 0 : i32
    return %arg2, %arg1 : i32, i32
  }
  func.func @transform_2(%arg0: i32, %arg1: i32, %arg2: i32) -> (i32, i32) {
    %c0_i32 = arith.constant 0 : i32
    %c0_i32_0 = arith.constant 0 : i32
    return %c0_i32, %arg1 : i32, i32
  }
  func.func @transform_3(%arg0: i32, %arg1: i32, %arg2: i32) -> (i32, i32) {
    %c0_i32 = arith.constant 0 : i32
    return %arg0, %arg1 : i32, i32
  }
}

</mosaic_0001>

<bundles_post_ra>
// kernel: critic_forward.5
= control target key start
LH: loop header
LB: loop body
LE: loop exit
PB: predicated region body
PF: predicated region fallthrough
CT: control target
= control target key end

     0   :  { %s1276_s12 = smov 0   ;;  %s1278_s13 = smov 0   ;;  %s1426_s0 = inlined_call_operand.vmem [shape: bf16[512,128], index: 0, kind: input, shape index: {}]   ;;  %s1427_s1 = inlined_call_operand.vmem [shape: bf16[128,128], index: 1, kind: input, shape index: {}]   ;;  %s1428_s2 = inlined_call_operand.vmem [shape: f32[1,128], index: 2, kind: input, shape index: {}]   ;;  %s1429_s3 = inlined_call_operand.vmem [shape: f32[512,128], index: 3, kind: output, shape index: {}]  }
   0x1   :  { %s1280_s14 = smov 0  }
   0x2 LB: > { %s32_s15 = sadd.s32 1, %s1250_s13  ;;  %p1064_p0 = scmp.ge.s32.totalorder %s1254_s14, 1  ;;  %s1254_s14 = sphi %s1280_s14, %s13_s14   ;;  %s1250_s13 = sphi %s1278_s13, %s1431_s13   ;;  %s1246_s12 = sphi %s1276_s12, %s1430_s12  }
   0x3   : > { %p34_p1 = scmp.ge.s32.totalorder %s32_s15, 2  ;;  %p188_p2 = scmp.lt.s32.totalorder %s1254_s14, 3 }
   0x5   : > { %s1433_s15 = smov (%p34_p1, %s32_s15), 0  ;;  %p189_p3 = pnand %p1064_p0, %p188_p2 }
   0x6   : > { %s1065_s18 = sshll.u32 (!%p189_p3), %s1246_s12, 5 }
   0x7   : > { %192 = sbr.rel (%p189_p3) target bundleno = 275 (0x113), region = 32  ;;  %p230_p4 = scmp.lt.s32.totalorder (!%p189_p3), %s1065_s18, 63 }
   0xc   : > { %v1208_v0 = vld [vmem:[%s1427_s1 + $0x38] sm:$0xff]   ;;  %v1209_v1 = vld [vmem:[%s1427_s1 + $0x30] sm:$0xff]   ;;  %s1435_s18 = smov (!%p230_p4, %s1065_s18), 63  ;;  %v1210_v2 = vld [vmem:[%s1427_s1 + $0x28] sm:$0xff]  }
   0xd   : > { %1120 = vmatprep.subr.bf16.mxu0 %v1208_v0  ;;  %1168 = vmatprep.subr.bf16.mxu1 %v1208_v0  ;;  %s1066_s23 = sshll.u32 %s1435_s18, 2  ;;  %v1211_v3 = vld [vmem:[%s1427_s1 + $0x20] sm:$0xff]   ;;  %v1212_v6 = vld [vmem:[%s1427_s1 + $0x18] sm:$0xff]   ;;  %v1213_v7 = vld [vmem:[%s1427_s1 + $0x10] sm:$0xff]   ;;  %s1068_s12 = sshll.u32 %s1435_s18, 3 }
   0xe   : > { %1121 = vmatpush3.bf16.msra.mxu0 %v1208_v0  ;;  %1176 = vmatpush3.bf16.msra.mxu1 %v1208_v0  ;;  %s1309_s26 = scalar_lea.vmem %s1426_s0, %s1066_s23  ;;  %v1214_v8 = vld [vmem:[%s1427_s1 + $0x8] sm:$0xff]   ;;  %v1215_v9 = vld [vmem:[%s1427_s1] sm:$0xff]   ;;  %s1353_s19 = scalar_lea.vmem %s1429_s3, %s1068_s12 }
   0xf   : > { %1122 = vmatprep.subr.bf16.mxu0 %v1209_v1  ;;  %1169 = vmatprep.subr.bf16.mxu1 %v1209_v1  ;;  %v1216_v4 = vld [vmem:[%s1309_s26] sm:$0xff]   ;;  %v1218_v10 = vld [vmem:[%s1309_s26 + $0x8] sm:$0xff]   ;;  %v1220_v12 = vld [vmem:[%s1309_s26 + $0x10] sm:$0xff]  }
  0x10   : > { %v1217_v5 = vld [vmem:[%s1309_s26 + $0x40] sm:$0xff]   ;;  %1136 = vmatprep.mubr.bf16.mxu0 %v1216_v4  ;;  %v1219_v11 = vld [vmem:[%s1309_s26 + $0x48] sm:$0xff]   ;;  %v1221_v13 = vld [vmem:[%s1309_s26 + $0x50] sm:$0xff]  }
  0x11   : > { %1152 = vmatprep.mubr.bf16.mxu1 %v1217_v5  ;;  %v1222_v14 = vld [vmem:[%s1309_s26 + $0x18] sm:$0xff]   ;;  %v1224_v16 = vld [vmem:[%s1309_s26 + $0x20] sm:$0xff]   ;;  %v1226_v18 = vld [vmem:[%s1309_s26 + $0x28] sm:$0xff]  }
  0x12   : > { %1123 = vmatpush3.bf16.msra.mxu0 %v1209_v1  ;;  %1177 = vmatpush3.bf16.msra.mxu1 %v1209_v1  ;;  %v1223_v15 = vld [vmem:[%s1309_s26 + $0x58] sm:$0xff]   ;;  %v1225_v17 = vld [vmem:[%s1309_s26 + $0x60] sm:$0xff]   ;;  %v1227_v19 = vld [vmem:[%s1309_s26 + $0x68] sm:$0xff]  }
  0x13   : > { %1124 = vmatprep.subr.bf16.mxu0 %v1210_v2  ;;  %1170 = vmatprep.subr.bf16.mxu1 %v1210_v2  ;;  %v1228_v20 = vld [vmem:[%s1309_s26 + $0x30] sm:$0xff]   ;;  %v1230_v22 = vld [vmem:[%s1309_s26 + $0x38] sm:$0xff]   ;;  %v1345_v24 = vld [vmem:[%s1428_s2] ss:$0 sm:$0xff] }
  0x14   : > { %v1229_v21 = vld [vmem:[%s1309_s26 + $0x70] sm:$0xff]   ;;  %v1231_v23 = vld [vmem:[%s1309_s26 + $0x78] sm:$0xff]  }
  0x16   : > { %1125 = vmatpush3.bf16.msra.mxu0 %v1210_v2  ;;  %1178 = vmatpush3.bf16.msra.mxu1 %v1210_v2 }
  0x17   : > { %1126 = vmatprep.subr.bf16.mxu0 %v1211_v3  ;;  %1171 = vmatprep.subr.bf16.mxu1 %v1211_v3 }
  0x1a   : > { %1127 = vmatpush3.bf16.msra.mxu0 %v1211_v3  ;;  %1179 = vmatpush3.bf16.msra.mxu1 %v1211_v3 }
  0x1b   : > { %1128 = vmatprep.subr.bf16.mxu0 %v1212_v6  ;;  %1172 = vmatprep.subr.bf16.mxu1 %v1212_v6 }
  0x1e   : > { %1129 = vmatpush3.bf16.msra.mxu0 %v1212_v6  ;;  %1180 = vmatpush3.bf16.msra.mxu1 %v1212_v6 }
  0x1f   : > { %1130 = vmatprep.subr.bf16.mxu0 %v1213_v7  ;;  %1173 = vmatprep.subr.bf16.mxu1 %v1213_v7 }
  0x22   : > { %1131 = vmatpush3.bf16.msra.mxu0 %v1213_v7  ;;  %1181 = vmatpush3.bf16.msra.mxu1 %v1213_v7 }
  0x23   : > { %1132 = vmatprep.subr.bf16.mxu0 %v1214_v8  ;;  %1174 = vmatprep.subr.bf16.mxu1 %v1214_v8 }
  0x26   : > { %1133 = vmatpush3.bf16.msra.mxu0 %v1214_v8  ;;  %1182 = vmatpush3.bf16.msra.mxu1 %v1214_v8 }
  0x27   : > { %1134 = vmatprep.subr.bf16.mxu0 %v1215_v9  ;;  %1175 = vmatprep.subr.bf16.mxu1 %v1215_v9 }
  0x2a   : > { %1135 = vmatpush3.bf16.msra.mxu0 %v1215_v9  ;;  %1183 = vmatpush3.bf16.msra.mxu1 %v1215_v9 }
  0x2d   : > { %1137 = vmatmul.mubr.bf16.vlgmr.msra.gmra.mxu0 %v1218_v10  ;;  %1153 = vmatmul.mubr.bf16.vlgmr.msra.gmra.mxu1 %v1219_v11 }
  0x2e   : > { %1140 = vmatprep.mubr.bf16.mxu0 %v1220_v12  ;;  %1156 = vmatprep.mubr.bf16.mxu1 %v1221_v13 }
  0x35   : > { %1141 = vmatmul.mubr.bf16.gmra.mxu0 %v1222_v14  ;;  %1157 = vmatmul.mubr.bf16.gmra.mxu1 %v1223_v15 }
  0x36   : > { %1144 = vmatprep.mubr.bf16.mxu0 %v1224_v16  ;;  %1160 = vmatprep.mubr.bf16.mxu1 %v1225_v17 }
  0x3d   : > { %1145 = vmatmul.mubr.bf16.gmra.mxu0 %v1226_v18  ;;  %1161 = vmatmul.mubr.bf16.gmra.mxu1 %v1227_v19 }
  0x3e   : > { %1148 = vmatprep.mubr.bf16.mxu0 %v1228_v20  ;;  %1164 = vmatprep.mubr.bf16.mxu1 %v1229_v21 }
  0x45   : > { %1149 = vmatmul.mubr.bf16.gmra.mxu0 %v1230_v22  ;;  %1165 = vmatmul.mubr.bf16.gmra.mxu1 %v1231_v23 }
  0xed   : > { %v1138_v25 = vpop.f32.mrf.mxu0  ;;  %v1154_v26 = vpop.f32.mrf.mxu1 }
  0xee   : > { %v789_v27 = vadd.f32 %v1138_v25, %v1345_v24  ;;  %v805_v28 = vadd.f32 %v1154_v26, %v1345_v24 }
  0xef   : > { %v554_v29 = vpop.f32.mrf.mxu0  ;;  %v618_v30 = vpop.f32.mrf.mxu1 }
  0xf0   : > { %vm821_vm0 = vcmp.ge.f32.partialorder %v789_v27, 0.0  ;;  %v853_v31 = vmul.f32 0.2, %v789_v27  ;;  %vm837_vm1 = vcmp.ge.f32.partialorder %v805_v28, 0.0  ;;  %v869_v32 = vmul.f32 0.2, %v805_v28 }
  0xf1   : > { %v787_v33 = vadd.f32 %v1345_v24, %v554_v29  ;;  %v803_v34 = vadd.f32 %v1345_v24, %v618_v30  ;;  %v1139_v35 = vpop.f32.mrf.mxu0  ;;  %v1155_v36 = vpop.f32.mrf.mxu1 }
  0xf2   : > { %v885_v37 = vsel %vm821_vm0, %v789_v27, %v853_v31  ;;  %v901_v38 = vsel %vm837_vm1, %v805_v28, %v869_v32  ;;  %v790_v39 = vadd.f32 %v1139_v35, %v1345_v24  ;;  %v806_v40 = vadd.f32 %v1155_v36, %v1345_v24 }
  0xf3   : > { %917 = vst [vmem:[%s1353_s19 + $0x10] sm:$0xff] %v885_v37  ;;  %933 = vst [vmem:[%s1353_s19 + $0x90] sm:$0xff] %v901_v38  ;;  %vm819_vm2 = vcmp.ge.f32.partialorder %v787_v33, 0.0  ;;  %v851_v41 = vmul.f32 0.2, %v787_v33  ;;  %vm835_vm3 = vcmp.ge.f32.partialorder %v803_v34, 0.0  ;;  %v557_v43 = vpop.f32.mrf.mxu0  ;;  %v621_v44 = vpop.f32.mrf.mxu1 }
  0xf4   : > { %v867_v42 = vmul.f32 0.2, %v803_v34  ;;  %vm822_vm4 = vcmp.ge.f32.partialorder %v790_v39, 0.0  ;;  %v854_v45 = vmul.f32 0.2, %v790_v39  ;;  %vm838_vm5 = vcmp.ge.f32.partialorder %v806_v40, 0.0 }
  0xf5   : > { %v870_v46 = vmul.f32 0.2, %v806_v40  ;;  %v883_v47 = vsel %vm819_vm2, %v787_v33, %v851_v41  ;;  %v788_v49 = vadd.f32 %v1345_v24, %v557_v43  ;;  %v804_v50 = vadd.f32 %v1345_v24, %v621_v44  ;;  %v1142_v51 = vpop.f32.mrf.mxu0  ;;  %v1158_v52 = vpop.f32.mrf.mxu1 }
  0xf6   : > { %v899_v48 = vsel %vm835_vm3, %v803_v34, %v867_v42  ;;  %915 = vst [vmem:[%s1353_s19] sm:$0xff] %v883_v47  ;;  %v886_v53 = vsel %vm822_vm4, %v790_v39, %v854_v45  ;;  %v793_v55 = vadd.f32 %v1142_v51, %v1345_v24  ;;  %v809_v56 = vadd.f32 %v1158_v52, %v1345_v24 }
  0xf7   : > { %931 = vst [vmem:[%s1353_s19 + $0x80] sm:$0xff] %v899_v48  ;;  %v902_v54 = vsel %vm838_vm5, %v806_v40, %v870_v46  ;;  %918 = vst [vmem:[%s1353_s19 + $0x18] sm:$0xff] %v886_v53  ;;  %vm820_vm6 = vcmp.ge.f32.partialorder %v788_v49, 0.0  ;;  %v852_v57 = vmul.f32 0.2, %v788_v49  ;;  %vm836_vm7 = vcmp.ge.f32.partialorder %v804_v50, 0.0  ;;  %v570_v59 = vpop.f32.mrf.mxu0  ;;  %v634_v60 = vpop.f32.mrf.mxu1 }
  0xf8   : > { %934 = vst [vmem:[%s1353_s19 + $0x98] sm:$0xff] %v902_v54  ;;  %v868_v58 = vmul.f32 0.2, %v804_v50  ;;  %vm825_vm8 = vcmp.ge.f32.partialorder %v793_v55, 0.0  ;;  %v857_v61 = vmul.f32 0.2, %v793_v55  ;;  %v791_v1 = vadd.f32 %v1345_v24, %v570_v59 }
  0xf9   : > { %vm841_vm9 = vcmp.ge.f32.partialorder %v809_v56, 0.0  ;;  %v873_v62 = vmul.f32 0.2, %v809_v56  ;;  %v884_v63 = vsel %vm820_vm6, %v788_v49, %v852_v57  ;;  %v807_v2 = vadd.f32 %v1345_v24, %v634_v60  ;;  %v1143_v3 = vpop.f32.mrf.mxu0  ;;  %v1159_v4 = vpop.f32.mrf.mxu1 }
  0xfa   : > { %v900_v0 = vsel %vm836_vm7, %v804_v50, %v868_v58  ;;  %916 = vst [vmem:[%s1353_s19 + $0x8] sm:$0xff] %v884_v63  ;;  %v889_v5 = vsel %vm825_vm8, %v793_v55, %v857_v61  ;;  %v794_v7 = vadd.f32 %v1143_v3, %v1345_v24  ;;  %v810_v8 = vadd.f32 %v1159_v4, %v1345_v24 }
  0xfb   : > { %932 = vst [vmem:[%s1353_s19 + $0x88] sm:$0xff] %v900_v0  ;;  %v905_v6 = vsel %vm841_vm9, %v809_v56, %v873_v62  ;;  %921 = vst [vmem:[%s1353_s19 + $0x30] sm:$0xff] %v889_v5  ;;  %vm823_vm10 = vcmp.ge.f32.partialorder %v791_v1, 0.0  ;;  %v855_v9 = vmul.f32 0.2, %v791_v1  ;;  %vm839_vm11 = vcmp.ge.f32.partialorder %v807_v2, 0.0  ;;  %v573_v11 = vpop.f32.mrf.mxu0  ;;  %v637_v12 = vpop.f32.mrf.mxu1 }
  0xfc   : > { %937 = vst [vmem:[%s1353_s19 + $0xb0] sm:$0xff] %v905_v6  ;;  %v871_v10 = vmul.f32 0.2, %v807_v2  ;;  %vm826_vm12 = vcmp.ge.f32.partialorder %v794_v7, 0.0  ;;  %v858_v13 = vmul.f32 0.2, %v794_v7  ;;  %v792_v17 = vadd.f32 %v1345_v24, %v573_v11 }
  0xfd   : > { %vm842_vm13 = vcmp.ge.f32.partialorder %v810_v8, 0.0  ;;  %v874_v14 = vmul.f32 0.2, %v810_v8  ;;  %v887_v15 = vsel %vm823_vm10, %v791_v1, %v855_v9  ;;  %v808_v18 = vadd.f32 %v1345_v24, %v637_v12  ;;  %v1146_v19 = vpop.f32.mrf.mxu0  ;;  %v1162_v20 = vpop.f32.mrf.mxu1 }
  0xfe   : > { %v903_v16 = vsel %vm839_vm11, %v807_v2, %v871_v10  ;;  %919 = vst [vmem:[%s1353_s19 + $0x20] sm:$0xff] %v887_v15  ;;  %v890_v21 = vsel %vm826_vm12, %v794_v7, %v858_v13  ;;  %v797_v23 = vadd.f32 %v1146_v19, %v1345_v24  ;;  %v813_v25 = vadd.f32 %v1162_v20, %v1345_v24 }
  0xff   : > { %935 = vst [vmem:[%s1353_s19 + $0xa0] sm:$0xff] %v903_v16  ;;  %v906_v22 = vsel %vm842_vm13, %v810_v8, %v874_v14  ;;  %922 = vst [vmem:[%s1353_s19 + $0x38] sm:$0xff] %v890_v21  ;;  %vm824_vm14 = vcmp.ge.f32.partialorder %v792_v17, 0.0  ;;  %v856_v26 = vmul.f32 0.2, %v792_v17  ;;  %vm840_vm15 = vcmp.ge.f32.partialorder %v808_v18, 0.0  ;;  %v586_v28 = vpop.f32.mrf.mxu0  ;;  %v650_v29 = vpop.f32.mrf.mxu1 }
 0x100   : > { %938 = vst [vmem:[%s1353_s19 + $0xb8] sm:$0xff] %v906_v22  ;;  %v872_v27 = vmul.f32 0.2, %v808_v18  ;;  %vm829_vm0 = vcmp.ge.f32.partialorder %v797_v23, 0.0  ;;  %v861_v30 = vmul.f32 0.2, %v797_v23  ;;  %v795_v34 = vadd.f32 %v1345_v24, %v586_v28 }
 0x101   : > { %vm845_vm1 = vcmp.ge.f32.partialorder %v813_v25, 0.0  ;;  %v877_v31 = vmul.f32 0.2, %v813_v25  ;;  %v888_v32 = vsel %vm824_vm14, %v792_v17, %v856_v26  ;;  %v811_v35 = vadd.f32 %v1345_v24, %v650_v29  ;;  %v1147_v36 = vpop.f32.mrf.mxu0  ;;  %v1163_v37 = vpop.f32.mrf.mxu1 }
 0x102   : > { %v904_v33 = vsel %vm840_vm15, %v808_v18, %v872_v27  ;;  %920 = vst [vmem:[%s1353_s19 + $0x28] sm:$0xff] %v888_v32  ;;  %v893_v38 = vsel %vm829_vm0, %v797_v23, %v861_v30  ;;  %v798_v40 = vadd.f32 %v1147_v36, %v1345_v24  ;;  %v814_v41 = vadd.f32 %v1163_v37, %v1345_v24 }
 0x103   : > { %936 = vst [vmem:[%s1353_s19 + $0xa8] sm:$0xff] %v904_v33  ;;  %v909_v39 = vsel %vm845_vm1, %v813_v25, %v877_v31  ;;  %925 = vst [vmem:[%s1353_s19 + $0x50] sm:$0xff] %v893_v38  ;;  %vm827_vm2 = vcmp.ge.f32.partialorder %v795_v34, 0.0  ;;  %v859_v42 = vmul.f32 0.2, %v795_v34  ;;  %vm843_vm3 = vcmp.ge.f32.partialorder %v811_v35, 0.0  ;;  %v589_v44 = vpop.f32.mrf.mxu0  ;;  %v653_v45 = vpop.f32.mrf.mxu1 }
 0x104   : > { %941 = vst [vmem:[%s1353_s19 + $0xd0] sm:$0xff] %v909_v39  ;;  %v875_v43 = vmul.f32 0.2, %v811_v35  ;;  %vm830_vm4 = vcmp.ge.f32.partialorder %v798_v40, 0.0  ;;  %v862_v46 = vmul.f32 0.2, %v798_v40  ;;  %v796_v50 = vadd.f32 %v1345_v24, %v589_v44 }
 0x105   : > { %vm846_vm5 = vcmp.ge.f32.partialorder %v814_v41, 0.0  ;;  %v878_v47 = vmul.f32 0.2, %v814_v41  ;;  %v891_v48 = vsel %vm827_vm2, %v795_v34, %v859_v42  ;;  %v812_v51 = vadd.f32 %v1345_v24, %v653_v45  ;;  %v1150_v52 = vpop.f32.mrf.mxu0  ;;  %v1166_v53 = vpop.f32.mrf.mxu1 }
 0x106   : > { %v907_v49 = vsel %vm843_vm3, %v811_v35, %v875_v43  ;;  %923 = vst [vmem:[%s1353_s19 + $0x40] sm:$0xff] %v891_v48  ;;  %v894_v54 = vsel %vm830_vm4, %v798_v40, %v862_v46  ;;  %v801_v56 = vadd.f32 %v1150_v52, %v1345_v24  ;;  %v817_v57 = vadd.f32 %v1166_v53, %v1345_v24 }
 0x107   : > { %939 = vst [vmem:[%s1353_s19 + $0xc0] sm:$0xff] %v907_v49  ;;  %v910_v55 = vsel %vm846_vm5, %v814_v41, %v878_v47  ;;  %926 = vst [vmem:[%s1353_s19 + $0x58] sm:$0xff] %v894_v54  ;;  %vm828_vm6 = vcmp.ge.f32.partialorder %v796_v50, 0.0  ;;  %v860_v58 = vmul.f32 0.2, %v796_v50  ;;  %vm844_vm7 = vcmp.ge.f32.partialorder %v812_v51, 0.0  ;;  %v602_v60 = vpop.f32.mrf.mxu0  ;;  %v666_v61 = vpop.f32.mrf.mxu1 }
 0x108   : > { %942 = vst [vmem:[%s1353_s19 + $0xd8] sm:$0xff] %v910_v55  ;;  %v876_v59 = vmul.f32 0.2, %v812_v51  ;;  %vm833_vm8 = vcmp.ge.f32.partialorder %v801_v56, 0.0  ;;  %v865_v62 = vmul.f32 0.2, %v801_v56  ;;  %v799_v2 = vadd.f32 %v1345_v24, %v602_v60 }
 0x109   : > { %vm849_vm9 = vcmp.ge.f32.partialorder %v817_v57, 0.0  ;;  %v881_v63 = vmul.f32 0.2, %v817_v57  ;;  %v892_v0 = vsel %vm828_vm6, %v796_v50, %v860_v58  ;;  %v815_v3 = vadd.f32 %v1345_v24, %v666_v61  ;;  %v1151_v4 = vpop.f32.mrf.mxu0  ;;  %v1167_v5 = vpop.f32.mrf.mxu1 }
 0x10a   : > { %v908_v1 = vsel %vm844_vm7, %v812_v51, %v876_v59  ;;  %924 = vst [vmem:[%s1353_s19 + $0x48] sm:$0xff] %v892_v0  ;;  %v897_v6 = vsel %vm833_vm8, %v801_v56, %v865_v62  ;;  %v802_v8 = vadd.f32 %v1151_v4, %v1345_v24  ;;  %v818_v9 = vadd.f32 %v1167_v5, %v1345_v24 }
 0x10b   : > { %940 = vst [vmem:[%s1353_s19 + $0xc8] sm:$0xff] %v908_v1  ;;  %v913_v7 = vsel %vm849_vm9, %v817_v57, %v881_v63  ;;  %929 = vst [vmem:[%s1353_s19 + $0x70] sm:$0xff] %v897_v6  ;;  %vm831_vm10 = vcmp.ge.f32.partialorder %v799_v2, 0.0  ;;  %v863_v10 = vmul.f32 0.2, %v799_v2  ;;  %vm847_vm11 = vcmp.ge.f32.partialorder %v815_v3, 0.0  ;;  %v605_v12 = vpop.f32.mrf.mxu0  ;;  %v669_v13 = vpop.f32.mrf.mxu1 }
 0x10c   : > { %945 = vst [vmem:[%s1353_s19 + $0xf0] sm:$0xff] %v913_v7  ;;  %v879_v11 = vmul.f32 0.2, %v815_v3  ;;  %vm834_vm12 = vcmp.ge.f32.partialorder %v802_v8, 0.0  ;;  %v866_v14 = vmul.f32 0.2, %v802_v8  ;;  %v800_v18 = vadd.f32 %v1345_v24, %v605_v12 }
 0x10d   : > { %vm850_vm13 = vcmp.ge.f32.partialorder %v818_v9, 0.0  ;;  %v882_v15 = vmul.f32 0.2, %v818_v9  ;;  %v895_v16 = vsel %vm831_vm10, %v799_v2, %v863_v10  ;;  %v816_v19 = vadd.f32 %v1345_v24, %v669_v13 }
 0x10e   : > { %v911_v17 = vsel %vm847_vm11, %v815_v3, %v879_v11  ;;  %927 = vst [vmem:[%s1353_s19 + $0x60] sm:$0xff] %v895_v16  ;;  %v898_v20 = vsel %vm834_vm12, %v802_v8, %v866_v14  ;;  %vm832_vm14 = vcmp.ge.f32.partialorder %v800_v18, 0.0  ;;  %v864_v22 = vmul.f32 0.2, %v800_v18 }
 0x10f   : > { %943 = vst [vmem:[%s1353_s19 + $0xe0] sm:$0xff] %v911_v17  ;;  %v914_v21 = vsel %vm850_vm13, %v818_v9, %v882_v15  ;;  %930 = vst [vmem:[%s1353_s19 + $0x78] sm:$0xff] %v898_v20  ;;  %vm848_vm15 = vcmp.ge.f32.partialorder %v816_v19, 0.0  ;;  %v880_v23 = vmul.f32 0.2, %v816_v19 }
 0x110   : > { %946 = vst [vmem:[%s1353_s19 + $0xf8] sm:$0xff] %v914_v21  ;;  %v896_v25 = vsel %vm832_vm14, %v800_v18, %v864_v22 }
 0x111   : > { %v912_v26 = vsel %vm848_vm15, %v816_v19, %v880_v23  ;;  %928 = vst [vmem:[%s1353_s19 + $0x68] sm:$0xff] %v896_v25 }
 0x112   : > { %944 = vst [vmem:[%s1353_s19 + $0xe8] sm:$0xff] %v912_v26 }
 0x113 PF: > { %s13_s14 = sadd.s32 1, %s1254_s14   ;;  %s1430_s12 = smov %s1250_s13 }
 0x114   : > { %p10_p5 = scmp.ge.s32.totalorder %s13_s14, 4   ;;  %s1431_s13 = smov %s1433_s15 }
 0x116   :  { %12 = sbr.rel (!%p10_p5) target bundleno = 2 (0x2), region = 76 }

// kernel: critic_forward.6
= control target key start
LH: loop header
LB: loop body
LE: loop exit
PB: predicated region body
PF: predicated region fallthrough
CT: control target
= control target key end

     0   :  { %s1657_s12 = smov 0   ;;  %s1659_s13 = smov 0   ;;  %s1929_s0 = inlined_call_operand.vmem [shape: bf16[128,1024], index: 0, kind: input, shape index: {}]   ;;  %s1930_s1 = inlined_call_operand.vmem [shape: bf16[1024,128], index: 1, kind: input, shape index: {}]   ;;  %s1931_s2 = inlined_call_operand.vmem [shape: f32[1,128], index: 2, kind: input, shape index: {}]   ;;  %s1932_s3 = inlined_call_operand.vmem [shape: f32[128,128], index: 3, kind: output, shape index: {}]  }
   0x1   :  { %s1661_s14 = smov 0   ;;  %s1663_s15 = smov 0  }
   0x2   :  { %s1665_s16 = smov 0  }
   0x3 LB: > { %s25_s17 = sadd.s32 1, %s1630_s15  ;;  %p48_p1 = scmp.ne.s32.totalorder %s1622_s13, %s1618_s12  ;;  %s1634_s16 = sphi %s1665_s16, %s13_s16   ;;  %s1630_s15 = sphi %s1663_s15, %s1936_s15   ;;  %s1626_s14 = sphi %s1661_s14, %s1935_s14   ;;  %s1622_s13 = sphi %s1659_s13, %s1934_s13   ;;  %s1618_s12 = sphi %s1657_s12, %s1933_s12  }
   0x4   : > { %p26_p0 = scmp.ge.s32.totalorder %s25_s17, 2  ;;  %p49_p2 = scmp.eq.s32.totalorder %s1634_s16, 0 }
   0x5   : > { %s41_s19 = sadd.s32 1, %s1622_s13  ;;  %p1267_p5 = scmp.ge.s32.totalorder %s1634_s16, 2 }
   0x6   : > { %s1938_s17 = smov (%p26_p0, %s25_s17), 0  ;;  %p50_p3 = por %p49_p2, %p48_p1 }
   0x7   : > { %s37_s18 = ssub.s32 %s1630_s15, %s1938_s17  ;;  %162 = sbr.rel (%p1267_p5) target bundleno = 32 (0x20), region = 20 }
   0x8   : > { %p39_p4 = scmp.eq.s32.totalorder %s37_s18, 0 }
   0xa   : > { %s1692_s20 = scalar_select %p39_p4, %s1622_s13, %s41_s19  }
   0xc   : > { %165 = sbr.rel (!%p50_p3) target bundleno = 32 (0x20), region = 24  ;;  %s167_s21 = sand.u32 (%p50_p3), 1, %s1622_s13  }
   0xd   : > { %s1346_s22 = sshll.u32 (%p50_p3), %s1630_s15, 4  ;;  %s1268_s23 = sshll.u32 (%p50_p3), %s167_s21, 8 }
   0xe   : > { %s1700_s26 = scalar_lea.vmem (%p50_p3), %s1929_s0, %s1346_s22  ;;  %s1705_s27 = scalar_lea.vmem (%p50_p3), [#allocation3], %s1268_s23 }
   0xf   : > { %v188_v0 = vld [vmem:[%s1700_s26] sm:$0xff] (%p50_p3)  ;;  %v190_v1 = vld [vmem:[%s1700_s26 + $0x8] sm:$0xff] (%p50_p3) }
  0x10   : > { %v192_v2 = vld [vmem:[%s1700_s26 + $0x20] sm:$0xff] (%p50_p3)  ;;  %189 = vst [vmem:[%s1705_s27] sm:$0xff] (%p50_p3), %v188_v0  ;;  %191 = vst [vmem:[%s1705_s27 + $0x8] sm:$0xff] (%p50_p3), %v190_v1  ;;  %v194_v3 = vld [vmem:[%s1700_s26 + $0x28] sm:$0xff] (%p50_p3) }
  0x11   : > { %193 = vst [vmem:[%s1705_s27 + $0x10] sm:$0xff] %v192_v2  ;;  %v196_v4 = vld [vmem:[%s1700_s26 + $0x40] sm:$0xff]  ;;  %v198_v5 = vld [vmem:[%s1700_s26 + $0x48] sm:$0xff]  ;;  %195 = vst [vmem:[%s1705_s27 + $0x18] sm:$0xff] %v194_v3 }
  0x12   : > { %197 = vst [vmem:[%s1705_s27 + $0x20] sm:$0xff] %v196_v4  ;;  %199 = vst [vmem:[%s1705_s27 + $0x28] sm:$0xff] %v198_v5  ;;  %v200_v6 = vld [vmem:[%s1700_s26 + $0x60] sm:$0xff]  ;;  %v202_v7 = vld [vmem:[%s1700_s26 + $0x68] sm:$0xff] }
  0x13   : > { %v204_v8 = vld [vmem:[%s1700_s26 + $0x80] sm:$0xff]  ;;  %201 = vst [vmem:[%s1705_s27 + $0x30] sm:$0xff] %v200_v6  ;;  %203 = vst [vmem:[%s1705_s27 + $0x38] sm:$0xff] %v202_v7  ;;  %v206_v9 = vld [vmem:[%s1700_s26 + $0x88] sm:$0xff] }
  0x14   : > { %205 = vst [vmem:[%s1705_s27 + $0x40] sm:$0xff] %v204_v8  ;;  %v208_v10 = vld [vmem:[%s1700_s26 + $0xa0] sm:$0xff]  ;;  %v210_v11 = vld [vmem:[%s1700_s26 + $0xa8] sm:$0xff]  ;;  %207 = vst [vmem:[%s1705_s27 + $0x48] sm:$0xff] %v206_v9 }
  0x15   : > { %209 = vst [vmem:[%s1705_s27 + $0x50] sm:$0xff] %v208_v10  ;;  %211 = vst [vmem:[%s1705_s27 + $0x58] sm:$0xff] %v210_v11  ;;  %v212_v12 = vld [vmem:[%s1700_s26 + $0xc0] sm:$0xff]  ;;  %v214_v13 = vld [vmem:[%s1700_s26 + $0xc8] sm:$0xff] }
  0x16   : > { %v216_v14 = vld [vmem:[%s1700_s26 + $0xe0] sm:$0xff]  ;;  %213 = vst [vmem:[%s1705_s27 + $0x60] sm:$0xff] %v212_v12  ;;  %215 = vst [vmem:[%s1705_s27 + $0x68] sm:$0xff] %v214_v13  ;;  %v218_v15 = vld [vmem:[%s1700_s26 + $0xe8] sm:$0xff] }
  0x17   : > { %217 = vst [vmem:[%s1705_s27 + $0x70] sm:$0xff] %v216_v14  ;;  %v220_v16 = vld [vmem:[%s1700_s26 + $0x100] sm:$0xff]  ;;  %v222_v17 = vld [vmem:[%s1700_s26 + $0x108] sm:$0xff]  ;;  %219 = vst [vmem:[%s1705_s27 + $0x78] sm:$0xff] %v218_v15 }
  0x18   : > { %221 = vst [vmem:[%s1705_s27 + $0x80] sm:$0xff] %v220_v16  ;;  %223 = vst [vmem:[%s1705_s27 + $0x88] sm:$0xff] %v222_v17  ;;  %v224_v18 = vld [vmem:[%s1700_s26 + $0x120] sm:$0xff]  ;;  %v226_v19 = vld [vmem:[%s1700_s26 + $0x128] sm:$0xff] }
  0x19   : > { %v228_v20 = vld [vmem:[%s1700_s26 + $0x140] sm:$0xff]  ;;  %225 = vst [vmem:[%s1705_s27 + $0x90] sm:$0xff] %v224_v18  ;;  %227 = vst [vmem:[%s1705_s27 + $0x98] sm:$0xff] %v226_v19  ;;  %v230_v21 = vld [vmem:[%s1700_s26 + $0x148] sm:$0xff] }
  0x1a   : > { %229 = vst [vmem:[%s1705_s27 + $0xa0] sm:$0xff] %v228_v20  ;;  %v232_v22 = vld [vmem:[%s1700_s26 + $0x160] sm:$0xff]  ;;  %v234_v23 = vld [vmem:[%s1700_s26 + $0x168] sm:$0xff]  ;;  %231 = vst [vmem:[%s1705_s27 + $0xa8] sm:$0xff] %v230_v21 }
  0x1b   : > { %233 = vst [vmem:[%s1705_s27 + $0xb0] sm:$0xff] %v232_v22  ;;  %235 = vst [vmem:[%s1705_s27 + $0xb8] sm:$0xff] %v234_v23  ;;  %v236_v24 = vld [vmem:[%s1700_s26 + $0x180] sm:$0xff]  ;;  %v238_v25 = vld [vmem:[%s1700_s26 + $0x188] sm:$0xff] }
  0x1c   : > { %v240_v26 = vld [vmem:[%s1700_s26 + $0x1a0] sm:$0xff]  ;;  %237 = vst [vmem:[%s1705_s27 + $0xc0] sm:$0xff] %v236_v24  ;;  %239 = vst [vmem:[%s1705_s27 + $0xc8] sm:$0xff] %v238_v25  ;;  %v242_v27 = vld [vmem:[%s1700_s26 + $0x1a8] sm:$0xff] }
  0x1d   : > { %241 = vst [vmem:[%s1705_s27 + $0xd0] sm:$0xff] %v240_v26  ;;  %v244_v28 = vld [vmem:[%s1700_s26 + $0x1c0] sm:$0xff]  ;;  %v246_v29 = vld [vmem:[%s1700_s26 + $0x1c8] sm:$0xff]  ;;  %243 = vst [vmem:[%s1705_s27 + $0xd8] sm:$0xff] %v242_v27 }
  0x1e   : > { %245 = vst [vmem:[%s1705_s27 + $0xe0] sm:$0xff] %v244_v28  ;;  %247 = vst [vmem:[%s1705_s27 + $0xe8] sm:$0xff] %v246_v29  ;;  %v248_v30 = vld [vmem:[%s1700_s26 + $0x1e0] sm:$0xff]  ;;  %v250_v31 = vld [vmem:[%s1700_s26 + $0x1e8] sm:$0xff] }
  0x1f   : > { %249 = vst [vmem:[%s1705_s27 + $0xf0] sm:$0xff] %v248_v30  ;;  %251 = vst [vmem:[%s1705_s27 + $0xf8] sm:$0xff] %v250_v31 }
  0x20 PF: > { %p1271_p6 = scmp.ge.s32.totalorder %s1634_s16, 1  ;;  %p268_p7 = scmp.lt.s32.totalorder %s1634_s16, 3 }
  0x22   : > { %p269_p8 = pnand %p1271_p6, %p268_p7 }
  0x23   : > { %s275_s28 = sand.u32 (!%p269_p8), 1, %s1618_s12   ;;  %s1273_s29 = sshll.u32 (!%p269_p8), %s1626_s14, 6 }
  0x24   : > { %272 = sbr.rel (%p269_p8) target bundleno = 374 (0x176), region = 51  ;;  %s1272_s30 = sshll.u32 (!%p269_p8), %s275_s28, 8 }
  0x25   : > { %p315_p9 = scmp.lt.s32.totalorder (!%p269_p8), %s1273_s29, 127  ;;  %s1777_s8 = scalar_lea.vmem (!%p269_p8), [#allocation3], %s1272_s30 }
  0x26   : > { %p1275_p10 = scmp.ne.s32.totalorder (!%p269_p8), %s1626_s14, 0 }
  0x29   : > { %s1940_s29 = smov (!%p315_p9, %s1273_s29), 127  ;;  %339 = sbr.rel (%p1275_p10) target bundleno = 55 (0x37), region = 59 }
  0x2a   : > { %s1274_s4 = sshll.u32 %s1940_s29, 2 }
  0x2b   : > { %s1775_s7 = scalar_lea.vmem %s1930_s1, %s1274_s4 }
  0x2e   : > { %v1636_v32 = vmov 0.0  }
  0x2f   : > { %340 = vst [vmem:[#allocation2 + $0x30] sm:$0xff] %v1636_v32  ;;  %341 = vst [vmem:[#allocation2] sm:$0xff] %v1636_v32 }
  0x30   : > { %342 = vst [vmem:[#allocation2 + $0x58] sm:$0xff] %v1636_v32  ;;  %343 = vst [vmem:[#allocation2 + $0x18] sm:$0xff] %v1636_v32 }
  0x31   : > { %344 = vst [vmem:[#allocation2 + $0x50] sm:$0xff] %v1636_v32  ;;  %345 = vst [vmem:[#allocation2 + $0x68] sm:$0xff] %v1636_v32 }
  0x32   : > { %346 = vst [vmem:[#allocation2 + $0x8] sm:$0xff] %v1636_v32  ;;  %347 = vst [vmem:[#allocation2 + $0x48] sm:$0xff] %v1636_v32 }
  0x33   : > { %348 = vst [vmem:[#allocation2 + $0x40] sm:$0xff] %v1636_v32  ;;  %349 = vst [vmem:[#allocation2 + $0x20] sm:$0xff] %v1636_v32 }
  0x34   : > { %350 = vst [vmem:[#allocation2 + $0x10] sm:$0xff] %v1636_v32  ;;  %351 = vst [vmem:[#allocation2 + $0x38] sm:$0xff] %v1636_v32 }
  0x35   : > { %352 = vst [vmem:[#allocation2 + $0x60] sm:$0xff] %v1636_v32  ;;  %353 = vst [vmem:[#allocation2 + $0x70] sm:$0xff] %v1636_v32 }
  0x36   : > { %354 = vst [vmem:[#allocation2 + $0x78] sm:$0xff] %v1636_v32  ;;  %355 = vst [vmem:[#allocation2 + $0x28] sm:$0xff] %v1636_v32 }
  0x37 PF: > { %v1516_v33 = vld [vmem:[%s1775_s7 + $0x78] sm:$0xff]   ;;  %v1520_v37 = vld [vmem:[%s1775_s7 + $0x70] sm:$0xff]   ;;  %v1524_v41 = vld [vmem:[%s1775_s7 + $0x68] sm:$0xff]   ;;  %p1340_p11 = scmp.ne.s32.totalorder %s1626_s14, 1 }
  0x38   : > { %v1517_v34 = vld [vmem:[%s1775_s7 + $0xf8] sm:$0xff]   ;;  %1347 = vmatprep.subr.bf16.mxu0 %v1516_v33  ;;  %v1521_v38 = vld [vmem:[%s1775_s7 + $0xf0] sm:$0xff]   ;;  %v1525_v42 = vld [vmem:[%s1775_s7 + $0xe8] sm:$0xff]  }
  0x39   : > { %v1518_v35 = vld [vmem:[%s1775_s7 + $0x38] sm:$0xff]   ;;  %1411 = vmatprep.subr.bf16.mxu1 %v1517_v34  ;;  %v1522_v39 = vld [vmem:[%s1775_s7 + $0x30] sm:$0xff]   ;;  %v1526_v43 = vld [vmem:[%s1775_s7 + $0x28] sm:$0xff]  }
  0x3a   : > { %v1519_v36 = vld [vmem:[%s1775_s7 + $0xb8] sm:$0xff]   ;;  %1348 = vmatpush3.bf16.msra.mxu0 %v1518_v35  ;;  %v1523_v40 = vld [vmem:[%s1775_s7 + $0xb0] sm:$0xff]   ;;  %v1527_v44 = vld [vmem:[%s1775_s7 + $0xa8] sm:$0xff]  }
  0x3b   : > { %1412 = vmatpush3.bf16.msra.mxu1 %v1519_v36  ;;  %1349 = vmatprep.subr.bf16.mxu0 %v1520_v37  ;;  %v1528_v45 = vld [vmem:[%s1775_s7 + $0x60] sm:$0xff]   ;;  %v1532_v49 = vld [vmem:[%s1775_s7 + $0x58] sm:$0xff]   ;;  %v1536_v53 = vld [vmem:[%s1775_s7 + $0x50] sm:$0xff]  }
  0x3c   : > { %1413 = vmatprep.subr.bf16.mxu1 %v1521_v38  ;;  %v1529_v46 = vld [vmem:[%s1775_s7 + $0xe0] sm:$0xff]   ;;  %v1533_v50 = vld [vmem:[%s1775_s7 + $0xd8] sm:$0xff]   ;;  %v1537_v54 = vld [vmem:[%s1775_s7 + $0xd0] sm:$0xff]  }
  0x3d   : > { %v1530_v47 = vld [vmem:[%s1775_s7 + $0x20] sm:$0xff]   ;;  %v1534_v51 = vld [vmem:[%s1775_s7 + $0x18] sm:$0xff]   ;;  %v1538_v55 = vld [vmem:[%s1775_s7 + $0x10] sm:$0xff]  }
  0x3e   : > { %1350 = vmatpush3.bf16.msra.mxu0 %v1522_v39  ;;  %v1531_v48 = vld [vmem:[%s1775_s7 + $0xa0] sm:$0xff]   ;;  %v1535_v52 = vld [vmem:[%s1775_s7 + $0x98] sm:$0xff]   ;;  %v1539_v56 = vld [vmem:[%s1775_s7 + $0x90] sm:$0xff]  }
  0x3f   : > { %1414 = vmatpush3.bf16.msra.mxu1 %v1523_v40  ;;  %1351 = vmatprep.subr.bf16.mxu0 %v1524_v41  ;;  %v1540_v57 = vld [vmem:[%s1775_s7 + $0x48] sm:$0xff]   ;;  %v1544_v61 = vld [vmem:[%s1775_s7 + $0x40] sm:$0xff]   ;;  %v356_v40 = vld [vmem:[#allocation2 + $0x30] sm:$0xff] }
  0x40   : > { %1415 = vmatprep.subr.bf16.mxu1 %v1525_v42  ;;  %v1541_v58 = vld [vmem:[%s1775_s7 + $0xc8] sm:$0xff]   ;;  %v1545_v62 = vld [vmem:[%s1775_s7 + $0xc0] sm:$0xff]  }
  0x41   : > { %v1542_v59 = vld [vmem:[%s1775_s7 + $0x8] sm:$0xff]   ;;  %v1546_v63 = vld [vmem:[%s1775_s7] sm:$0xff]  }
  0x42   : > { %1352 = vmatpush3.bf16.msra.mxu0 %v1526_v43  ;;  %v1543_v60 = vld [vmem:[%s1775_s7 + $0x88] sm:$0xff]   ;;  %v1547_v0 = vld [vmem:[%s1775_s7 + $0x80] sm:$0xff]  }
  0x43   : > { %1416 = vmatpush3.bf16.msra.mxu1 %v1527_v44  ;;  %1353 = vmatprep.subr.bf16.mxu0 %v1528_v45  ;;  %v1548_v1 = vld [vmem:[%s1777_s8] ss:$16 sps:$4 sm:$0xff]   ;;  %v1550_v2 = vld [vmem:[%s1777_s8 + $0x4] ss:$16 sps:$4 sm:$0xff]   ;;  %v1551_v3 = vld [vmem:[%s1777_s8 + $0x8] ss:$16 sps:$4 sm:$0xff]  }
  0x44   : > { %1417 = vmatprep.subr.bf16.mxu1 %v1529_v46  ;;  %v1553_v4 = vld [vmem:[%s1777_s8 + $0xc] ss:$16 sps:$4 sm:$0xff]   ;;  %852 = vmatprep.mubr.bf16.mxu0 %v1550_v2  ;;  %v1554_v5 = vld [vmem:[%s1777_s8 + $0x24] ss:$16 sps:$4 sm:$0xff]   ;;  %v1558_v7 = vld [vmem:[%s1777_s8 + $0x20] ss:$16 sps:$4 sm:$0xff]  }
  0x45   : > { %949 = vmatprep.mubr.bf16.mxu1 %v1553_v4  ;;  %v1556_v6 = vld [vmem:[%s1777_s8 + $0x2c] ss:$16 sps:$4 sm:$0xff]   ;;  %v1559_v8 = vld [vmem:[%s1777_s8 + $0x28] ss:$16 sps:$4 sm:$0xff]   ;;  %v1560_v9 = vld [vmem:[%s1777_s8 + $0x44] ss:$16 sps:$4 sm:$0xff]  }
  0x46   : > { %1354 = vmatpush3.bf16.msra.mxu0 %v1530_v47  ;;  %v1562_v10 = vld [vmem:[%s1777_s8 + $0x4c] ss:$16 sps:$4 sm:$0xff]   ;;  %v1564_v11 = vld [vmem:[%s1777_s8 + $0x40] ss:$16 sps:$4 sm:$0xff]   ;;  %v1565_v12 = vld [vmem:[%s1777_s8 + $0x48] ss:$16 sps:$4 sm:$0xff]  }
  0x47   : > { %1418 = vmatpush3.bf16.msra.mxu1 %v1531_v48  ;;  %1355 = vmatprep.subr.bf16.mxu0 %v1532_v49  ;;  %v1566_v13 = vld [vmem:[%s1777_s8 + $0x64] ss:$16 sps:$4 sm:$0xff]   ;;  %v1568_v14 = vld [vmem:[%s1777_s8 + $0x6c] ss:$16 sps:$4 sm:$0xff]   ;;  %v1570_v15 = vld [vmem:[%s1777_s8 + $0x60] ss:$16 sps:$4 sm:$0xff]  }
  0x48   : > { %1419 = vmatprep.subr.bf16.mxu1 %v1533_v50  ;;  %v1571_v16 = vld [vmem:[%s1777_s8 + $0x68] ss:$16 sps:$4 sm:$0xff]   ;;  %v1572_v17 = vld [vmem:[%s1777_s8 + $0x84] ss:$16 sps:$4 sm:$0xff]   ;;  %v1574_v18 = vld [vmem:[%s1777_s8 + $0x8c] ss:$16 sps:$4 sm:$0xff]  }
  0x49   : > { %v1576_v19 = vld [vmem:[%s1777_s8 + $0x80] ss:$16 sps:$4 sm:$0xff]   ;;  %v1577_v20 = vld [vmem:[%s1777_s8 + $0x88] ss:$16 sps:$4 sm:$0xff]   ;;  %v1578_v21 = vld [vmem:[%s1777_s8 + $0xa4] ss:$16 sps:$4 sm:$0xff]  }
  0x4a   : > { %1356 = vmatpush3.bf16.msra.mxu0 %v1534_v51  ;;  %v1580_v22 = vld [vmem:[%s1777_s8 + $0xac] ss:$16 sps:$4 sm:$0xff]   ;;  %v1582_v23 = vld [vmem:[%s1777_s8 + $0xa0] ss:$16 sps:$4 sm:$0xff]   ;;  %v1583_v24 = vld [vmem:[%s1777_s8 + $0xa8] ss:$16 sps:$4 sm:$0xff]  }
  0x4b   : > { %1420 = vmatpush3.bf16.msra.mxu1 %v1535_v52  ;;  %1357 = vmatprep.subr.bf16.mxu0 %v1536_v53  ;;  %v1584_v25 = vld [vmem:[%s1777_s8 + $0xc4] ss:$16 sps:$4 sm:$0xff]   ;;  %v1586_v26 = vld [vmem:[%s1777_s8 + $0xcc] ss:$16 sps:$4 sm:$0xff]   ;;  %v1588_v27 = vld [vmem:[%s1777_s8 + $0xc0] ss:$16 sps:$4 sm:$0xff]  }
  0x4c   : > { %1421 = vmatprep.subr.bf16.mxu1 %v1537_v54  ;;  %v1589_v28 = vld [vmem:[%s1777_s8 + $0xc8] ss:$16 sps:$4 sm:$0xff]   ;;  %v1590_v29 = vld [vmem:[%s1777_s8 + $0xe4] ss:$16 sps:$4 sm:$0xff]   ;;  %v1592_v30 = vld [vmem:[%s1777_s8 + $0xec] ss:$16 sps:$4 sm:$0xff]  }
  0x4d   : > { %v1594_v31 = vld [vmem:[%s1777_s8 + $0xe0] ss:$16 sps:$4 sm:$0xff]   ;;  %v1595_v32 = vld [vmem:[%s1777_s8 + $0xe8] ss:$16 sps:$4 sm:$0xff]  }
  0x4e   : > { %1358 = vmatpush3.bf16.msra.mxu0 %v1538_v55  ;;  %v357_v49 = vld [vmem:[#allocation2] sm:$0xff] }
  0x4f   : > { %1422 = vmatpush3.bf16.msra.mxu1 %v1539_v56  ;;  %1359 = vmatprep.subr.bf16.mxu0 %v1540_v57 }
  0x50   : > { %1423 = vmatprep.subr.bf16.mxu1 %v1541_v58  ;;  %v358_v58 = vld [vmem:[#allocation2 + $0x58] sm:$0xff] }
  0x52   : > { %1360 = vmatpush3.bf16.msra.mxu0 %v1542_v59 }
  0x53   : > { %1424 = vmatpush3.bf16.msra.mxu1 %v1543_v60  ;;  %1361 = vmatprep.subr.bf16.mxu0 %v1544_v61 }
  0x54   : > { %1425 = vmatprep.subr.bf16.mxu1 %v1545_v62 }
  0x56   : > { %1362 = vmatpush3.bf16.msra.mxu0 %v1546_v63 }
  0x57   : > { %1426 = vmatpush3.bf16.msra.mxu1 %v1547_v0 }
  0x59   : > { %853 = vmatmul.mubr.bf16.vlgmr.msra.gmra.mxu0 %v1548_v1 }
  0x5a   : > { %950 = vmatmul.mubr.bf16.vlgmr.msra.gmra.mxu1 %v1551_v3  ;;  %860 = vmatprep.mubr.bf16.mxu0 %v1554_v5  ;;  %v359_v3 = vld [vmem:[#allocation2 + $0x18] sm:$0xff] }
  0x5b   : > { %957 = vmatprep.mubr.bf16.mxu1 %v1556_v6 }
  0x61   : > { %861 = vmatmul.mubr.bf16.gmra.mxu0 %v1558_v7 }
  0x62   : > { %958 = vmatmul.mubr.bf16.gmra.mxu1 %v1559_v8  ;;  %868 = vmatprep.mubr.bf16.mxu0 %v1560_v9 }
  0x63   : > { %965 = vmatprep.mubr.bf16.mxu1 %v1562_v10 }
  0x69   : > { %869 = vmatmul.mubr.bf16.gmra.mxu0 %v1564_v11 }
  0x6a   : > { %966 = vmatmul.mubr.bf16.gmra.mxu1 %v1565_v12  ;;  %876 = vmatprep.mubr.bf16.mxu0 %v1566_v13  ;;  %v360_v12 = vld [vmem:[#allocation2 + $0x50] sm:$0xff] }
  0x6b   : > { %973 = vmatprep.mubr.bf16.mxu1 %v1568_v14 }
  0x71   : > { %877 = vmatmul.mubr.bf16.gmra.mxu0 %v1570_v15 }
  0x72   : > { %974 = vmatmul.mubr.bf16.gmra.mxu1 %v1571_v16  ;;  %884 = vmatprep.mubr.bf16.mxu0 %v1572_v17 }
  0x73   : > { %981 = vmatprep.mubr.bf16.mxu1 %v1574_v18 }
  0x79   : > { %885 = vmatmul.mubr.bf16.gmra.mxu0 %v1576_v19 }
  0x7a   : > { %982 = vmatmul.mubr.bf16.gmra.mxu1 %v1577_v20  ;;  %892 = vmatprep.mubr.bf16.mxu0 %v1578_v21  ;;  %v361_v21 = vld [vmem:[#allocation2 + $0x68] sm:$0xff] }
  0x7b   : > { %989 = vmatprep.mubr.bf16.mxu1 %v1580_v22 }
  0x81   : > { %893 = vmatmul.mubr.bf16.gmra.mxu0 %v1582_v23 }
  0x82   : > { %990 = vmatmul.mubr.bf16.gmra.mxu1 %v1583_v24  ;;  %900 = vmatprep.mubr.bf16.mxu0 %v1584_v25 }
  0x83   : > { %997 = vmatprep.mubr.bf16.mxu1 %v1586_v26 }
  0x89   : > { %901 = vmatmul.mubr.bf16.gmra.mxu0 %v1588_v27 }
  0x8a   : > { %998 = vmatmul.mubr.bf16.gmra.mxu1 %v1589_v28  ;;  %908 = vmatprep.mubr.bf16.mxu0 %v1590_v29 }
  0x8b   : > { %1005 = vmatprep.mubr.bf16.mxu1 %v1592_v30  ;;  %v362_v30 = vld [vmem:[#allocation2 + $0x8] sm:$0xff] }
  0x91   : > { %909 = vmatmul.mubr.bf16.gmra.mxu0 %v1594_v31 }
  0x92   : > { %1006 = vmatmul.mubr.bf16.gmra.mxu1 %v1595_v32 }
 0x119   : > { %v1363_v33 = vpop.f32.mrf.mxu0 }
 0x11a   : > { %v1427_v34 = vpop.f32.mrf.mxu1 }
 0x11b   : > { %v1364_v35 = vpop.f32.mrf.mxu0 }
 0x11c   : > { %v1365_v36 = vadd.f32 %v1364_v35, %v1363_v33  ;;  %v1428_v37 = vpop.f32.mrf.mxu1 }
 0x11d   : > { %v1429_v38 = vadd.f32 %v1428_v37, %v1427_v34  ;;  %v1366_v39 = vpop.f32.mrf.mxu0 }
 0x11e   : > { %v1430_v41 = vpop.f32.mrf.mxu1 }
 0x11f   : > { %v952_v42 = vadd.f32 %v1429_v38, %v1365_v36  ;;  %v1367_v43 = vpop.f32.mrf.mxu0 }
 0x120   : > { %v1368_v44 = vadd.f32 %v1367_v43, %v1366_v39  ;;  %v1431_v45 = vpop.f32.mrf.mxu1  ;;  %v363_v39 = vld [vmem:[#allocation2 + $0x48] sm:$0xff] }
 0x121   : > { %v1014_v46 = vadd.f32 %v952_v42, %v356_v40  ;;  %v1432_v47 = vadd.f32 %v1431_v45, %v1430_v41  ;;  %v1369_v48 = vpop.f32.mrf.mxu0 }
 0x122   : > { %v1433_v50 = vpop.f32.mrf.mxu1 }
 0x123   : > { %1030 = vst [vmem:[#allocation2 + $0x30] sm:$0xff] %v1014_v46  ;;  %v955_v51 = vadd.f32 %v1432_v47, %v1368_v44  ;;  %v1370_v52 = vpop.f32.mrf.mxu0 }
 0x124   : > { %v1371_v53 = vadd.f32 %v1370_v52, %v1369_v48  ;;  %v1434_v54 = vpop.f32.mrf.mxu1  ;;  %v364_v48 = vld [vmem:[#allocation2 + $0x40] sm:$0xff] }
 0x125   : > { %v1015_v55 = vadd.f32 %v955_v51, %v357_v49  ;;  %v1435_v56 = vadd.f32 %v1434_v54, %v1433_v50  ;;  %v1372_v57 = vpop.f32.mrf.mxu0 }
 0x126   : > { %v1436_v59 = vpop.f32.mrf.mxu1 }
 0x127   : > { %1031 = vst [vmem:[#allocation2] sm:$0xff] %v1015_v55  ;;  %v960_v60 = vadd.f32 %v1435_v56, %v1371_v53  ;;  %v1373_v61 = vpop.f32.mrf.mxu0 }
 0x128   : > { %v1374_v62 = vadd.f32 %v1373_v61, %v1372_v57  ;;  %v1437_v63 = vpop.f32.mrf.mxu1  ;;  %v365_v57 = vld [vmem:[#allocation2 + $0x20] sm:$0xff] }
 0x129   : > { %v1016_v0 = vadd.f32 %v960_v60, %v358_v58  ;;  %v1438_v1 = vadd.f32 %v1437_v63, %v1436_v59  ;;  %v1375_v2 = vpop.f32.mrf.mxu0 }
 0x12a   : > { %v1439_v4 = vpop.f32.mrf.mxu1 }
 0x12b   : > { %1032 = vst [vmem:[#allocation2 + $0x58] sm:$0xff] %v1016_v0  ;;  %v963_v5 = vadd.f32 %v1438_v1, %v1374_v62  ;;  %v1376_v6 = vpop.f32.mrf.mxu0 }
 0x12c   : > { %v1377_v7 = vadd.f32 %v1376_v6, %v1375_v2  ;;  %v1440_v8 = vpop.f32.mrf.mxu1  ;;  %v366_v2 = vld [vmem:[#allocation2 + $0x10] sm:$0xff] }
 0x12d   : > { %v1017_v9 = vadd.f32 %v963_v5, %v359_v3  ;;  %v1441_v10 = vadd.f32 %v1440_v8, %v1439_v4  ;;  %v1378_v11 = vpop.f32.mrf.mxu0 }
 0x12e   : > { %v1442_v13 = vpop.f32.mrf.mxu1 }
 0x12f   : > { %1033 = vst [vmem:[#allocation2 + $0x18] sm:$0xff] %v1017_v9  ;;  %v968_v14 = vadd.f32 %v1441_v10, %v1377_v7  ;;  %v1379_v15 = vpop.f32.mrf.mxu0 }
 0x130   : > { %v1380_v16 = vadd.f32 %v1379_v15, %v1378_v11  ;;  %v1443_v17 = vpop.f32.mrf.mxu1  ;;  %v367_v11 = vld [vmem:[#allocation2 + $0x38] sm:$0xff] }
 0x131   : > { %v1018_v18 = vadd.f32 %v968_v14, %v360_v12  ;;  %v1444_v19 = vadd.f32 %v1443_v17, %v1442_v13  ;;  %v1381_v20 = vpop.f32.mrf.mxu0 }
 0x132   : > { %v1445_v22 = vpop.f32.mrf.mxu1 }
 0x133   : > { %1034 = vst [vmem:[#allocation2 + $0x50] sm:$0xff] %v1018_v18  ;;  %v971_v23 = vadd.f32 %v1444_v19, %v1380_v16  ;;  %v1382_v24 = vpop.f32.mrf.mxu0 }
 0x134   : > { %v1383_v25 = vadd.f32 %v1382_v24, %v1381_v20  ;;  %v1446_v26 = vpop.f32.mrf.mxu1  ;;  %v368_v20 = vld [vmem:[#allocation2 + $0x60] sm:$0xff] }
 0x135   : > { %v1019_v27 = vadd.f32 %v971_v23, %v361_v21  ;;  %v1447_v28 = vadd.f32 %v1446_v26, %v1445_v22  ;;  %v1384_v29 = vpop.f32.mrf.mxu0 }
 0x136   : > { %v1448_v31 = vpop.f32.mrf.mxu1 }
 0x137   : > { %1035 = vst [vmem:[#allocation2 + $0x68] sm:$0xff] %v1019_v27  ;;  %v976_v32 = vadd.f32 %v1447_v28, %v1383_v25  ;;  %v1385_v33 = vpop.f32.mrf.mxu0 }
 0x138   : > { %v1386_v34 = vadd.f32 %v1385_v33, %v1384_v29  ;;  %v1449_v35 = vpop.f32.mrf.mxu1  ;;  %v369_v29 = vld [vmem:[#allocation2 + $0x70] sm:$0xff] }
 0x139   : > { %v1020_v36 = vadd.f32 %v976_v32, %v362_v30  ;;  %v1450_v37 = vadd.f32 %v1449_v35, %v1448_v31  ;;  %v1387_v38 = vpop.f32.mrf.mxu0 }
 0x13a   : > { %v1451_v40 = vpop.f32.mrf.mxu1 }
 0x13b   : > { %1036 = vst [vmem:[#allocation2 + $0x8] sm:$0xff] %v1020_v36  ;;  %v979_v41 = vadd.f32 %v1450_v37, %v1386_v34  ;;  %v1388_v42 = vpop.f32.mrf.mxu0 }
 0x13c   : > { %v1389_v43 = vadd.f32 %v1388_v42, %v1387_v38  ;;  %v1452_v44 = vpop.f32.mrf.mxu1  ;;  %v370_v38 = vld [vmem:[#allocation2 + $0x78] sm:$0xff] }
 0x13d   : > { %v1021_v45 = vadd.f32 %v979_v41, %v363_v39  ;;  %v1453_v46 = vadd.f32 %v1452_v44, %v1451_v40  ;;  %v1390_v47 = vpop.f32.mrf.mxu0 }
 0x13e   : > { %v1454_v49 = vpop.f32.mrf.mxu1 }
 0x13f   : > { %1037 = vst [vmem:[#allocation2 + $0x48] sm:$0xff] %v1021_v45  ;;  %v984_v50 = vadd.f32 %v1453_v46, %v1389_v43  ;;  %v1391_v51 = vpop.f32.mrf.mxu0  ;;  %v371_v46 = vld [vmem:[#allocation2 + $0x28] sm:$0xff] }
 0x140   : > { %v1392_v52 = vadd.f32 %v1391_v51, %v1390_v47  ;;  %v1455_v53 = vpop.f32.mrf.mxu1 }
 0x141   : > { %v1022_v54 = vadd.f32 %v984_v50, %v364_v48  ;;  %v1456_v55 = vadd.f32 %v1455_v53, %v1454_v49  ;;  %v1393_v56 = vpop.f32.mrf.mxu0 }
 0x142   : > { %v1457_v58 = vpop.f32.mrf.mxu1 }
 0x143   : > { %1038 = vst [vmem:[#allocation2 + $0x40] sm:$0xff] %v1022_v54  ;;  %v987_v59 = vadd.f32 %v1456_v55, %v1392_v52  ;;  %v1394_v60 = vpop.f32.mrf.mxu0 }
 0x144   : > { %v1395_v61 = vadd.f32 %v1394_v60, %v1393_v56  ;;  %v1458_v62 = vpop.f32.mrf.mxu1 }
 0x145   : > { %v1023_v63 = vadd.f32 %v987_v59, %v365_v57  ;;  %v1459_v0 = vadd.f32 %v1458_v62, %v1457_v58  ;;  %v1396_v1 = vpop.f32.mrf.mxu0 }
 0x146   : > { %v1460_v3 = vpop.f32.mrf.mxu1 }
 0x147   : > { %1039 = vst [vmem:[#allocation2 + $0x20] sm:$0xff] %v1023_v63  ;;  %v992_v4 = vadd.f32 %v1459_v0, %v1395_v61  ;;  %v1397_v5 = vpop.f32.mrf.mxu0 }
 0x148   : > { %v1398_v6 = vadd.f32 %v1397_v5, %v1396_v1  ;;  %v1461_v7 = vpop.f32.mrf.mxu1 }
 0x149   : > { %v1024_v8 = vadd.f32 %v992_v4, %v366_v2  ;;  %v1462_v9 = vadd.f32 %v1461_v7, %v1460_v3  ;;  %v1399_v10 = vpop.f32.mrf.mxu0 }
 0x14a   : > { %v1463_v12 = vpop.f32.mrf.mxu1 }
 0x14b   : > { %1040 = vst [vmem:[#allocation2 + $0x10] sm:$0xff] %v1024_v8  ;;  %v995_v13 = vadd.f32 %v1462_v9, %v1398_v6  ;;  %v1400_v14 = vpop.f32.mrf.mxu0 }
 0x14c   : > { %v1401_v15 = vadd.f32 %v1400_v14, %v1399_v10  ;;  %v1464_v16 = vpop.f32.mrf.mxu1 }
 0x14d   : > { %v1025_v17 = vadd.f32 %v995_v13, %v367_v11  ;;  %v1465_v18 = vadd.f32 %v1464_v16, %v1463_v12  ;;  %v1402_v19 = vpop.f32.mrf.mxu0 }
 0x14e   : > { %v1466_v21 = vpop.f32.mrf.mxu1 }
 0x14f   : > { %1041 = vst [vmem:[#allocation2 + $0x38] sm:$0xff] %v1025_v17  ;;  %v1000_v22 = vadd.f32 %v1465_v18, %v1401_v15  ;;  %v1403_v23 = vpop.f32.mrf.mxu0 }
 0x150   : > { %v1404_v24 = vadd.f32 %v1403_v23, %v1402_v19  ;;  %v1467_v25 = vpop.f32.mrf.mxu1 }
 0x151   : > { %v1026_v26 = vadd.f32 %v1000_v22, %v368_v20  ;;  %v1468_v27 = vadd.f32 %v1467_v25, %v1466_v21  ;;  %v1405_v28 = vpop.f32.mrf.mxu0 }
 0x152   : > { %v1469_v30 = vpop.f32.mrf.mxu1 }
 0x153   : > { %1042 = vst [vmem:[#allocation2 + $0x60] sm:$0xff] %v1026_v26  ;;  %v1003_v31 = vadd.f32 %v1468_v27, %v1404_v24  ;;  %v1406_v32 = vpop.f32.mrf.mxu0 }
 0x154   : > { %v1407_v33 = vadd.f32 %v1406_v32, %v1405_v28  ;;  %v1470_v34 = vpop.f32.mrf.mxu1 }
 0x155   : > { %v1027_v35 = vadd.f32 %v1003_v31, %v369_v29  ;;  %v1471_v36 = vadd.f32 %v1470_v34, %v1469_v30  ;;  %v1408_v37 = vpop.f32.mrf.mxu0 }
 0x156   : > { %v1472_v39 = vpop.f32.mrf.mxu1 }
 0x157   : > { %1043 = vst [vmem:[#allocation2 + $0x70] sm:$0xff] %v1027_v35  ;;  %v1008_v40 = vadd.f32 %v1471_v36, %v1407_v33  ;;  %v1409_v41 = vpop.f32.mrf.mxu0 }
 0x158   : > { %v1410_v42 = vadd.f32 %v1409_v41, %v1408_v37  ;;  %v1473_v43 = vpop.f32.mrf.mxu1 }
 0x159   : > { %v1028_v44 = vadd.f32 %v1008_v40, %v370_v38  ;;  %v1474_v45 = vadd.f32 %v1473_v43, %v1472_v39 }
 0x15b   : > { %1044 = vst [vmem:[#allocation2 + $0x78] sm:$0xff] %v1028_v44  ;;  %v1011_v47 = vadd.f32 %v1474_v45, %v1410_v42  ;;  %1049 = sbr.rel (%p1340_p11) target bundleno = 374 (0x176), region = 63 }
 0x15d   : > { %v1029_v48 = vadd.f32 %v1011_v47, %v371_v46 }
 0x15f   : > { %1045 = vst [vmem:[#allocation2 + $0x28] sm:$0xff] %v1029_v48 }
 0x160   : > { %v1050_v49 = vld [vmem:[#allocation2 + $0x30] sm:$0xff]  ;;  %v1848_v50 = vld [vmem:[%s1931_s2] ss:$0 sm:$0xff]  ;;  %v1052_v54 = vld [vmem:[#allocation2 + $0x58] sm:$0xff] }
 0x161   : > { %v1051_v51 = vld [vmem:[#allocation2] sm:$0xff]  ;;  %v1073_v52 = vadd.f32 %v1848_v50, %v1050_v49  ;;  %v1053_v55 = vld [vmem:[#allocation2 + $0x18] sm:$0xff]  ;;  %v1054_v56 = vld [vmem:[#allocation2 + $0x50] sm:$0xff]  ;;  %v1075_v57 = vadd.f32 %v1848_v50, %v1052_v54 }
 0x162   : > { %v1074_v53 = vadd.f32 %v1848_v50, %v1051_v51  ;;  %v1076_v58 = vadd.f32 %v1848_v50, %v1053_v55  ;;  %v1077_v59 = vadd.f32 %v1848_v50, %v1054_v56  ;;  %v1055_v60 = vld [vmem:[#allocation2 + $0x68] sm:$0xff]  ;;  %v1058_v6 = vld [vmem:[#allocation2 + $0x40] sm:$0xff]  ;;  %v1060_v12 = vld [vmem:[#allocation2 + $0x10] sm:$0xff] }
 0x163   : > { %v1056_v61 = vld [vmem:[#allocation2 + $0x8] sm:$0xff]  ;;  %vm1089_vm0 = vcmp.ge.f32.partialorder %v1073_v52, 0.0  ;;  %v1105_v63 = vmul.f32 0.2, %v1073_v52  ;;  %vm1091_vm2 = vcmp.ge.f32.partialorder %v1075_v57, 0.0  ;;  %v1059_v7 = vld [vmem:[#allocation2 + $0x20] sm:$0xff]  ;;  %v1078_v10 = vadd.f32 %v1848_v50, %v1055_v60 }
 0x164   : > { %v1057_v62 = vld [vmem:[#allocation2 + $0x48] sm:$0xff]  ;;  %vm1090_vm1 = vcmp.ge.f32.partialorder %v1074_v53, 0.0  ;;  %v1106_v0 = vmul.f32 0.2, %v1074_v53  ;;  %v1107_v1 = vmul.f32 0.2, %v1075_v57  ;;  %v1079_v11 = vadd.f32 %v1848_v50, %v1056_v61 }
 0x165   : > { %vm1092_vm3 = vcmp.ge.f32.partialorder %v1076_v58, 0.0  ;;  %v1108_v2 = vmul.f32 0.2, %v1076_v58  ;;  %v1121_v3 = vsel %vm1089_vm0, %v1073_v52, %v1105_v63  ;;  %vm1093_vm4 = vcmp.ge.f32.partialorder %v1077_v59, 0.0  ;;  %v1061_v13 = vld [vmem:[#allocation2 + $0x38] sm:$0xff]  ;;  %v1062_v18 = vld [vmem:[#allocation2 + $0x60] sm:$0xff] }
 0x166   : > { %v1122_v4 = vsel %vm1090_vm1, %v1074_v53, %v1106_v0  ;;  %v1109_v5 = vmul.f32 0.2, %v1077_v59  ;;  %1137 = vst [vmem:[%s1932_s3] sm:$0xff] %v1121_v3  ;;  %v1123_v8 = vsel %vm1091_vm2, %v1075_v57, %v1107_v1  ;;  %v1080_v15 = vadd.f32 %v1848_v50, %v1057_v62  ;;  %v1063_v19 = vld [vmem:[#allocation2 + $0x70] sm:$0xff]  ;;  %v1064_v20 = vld [vmem:[#allocation2 + $0x78] sm:$0xff]  ;;  %v1065_v36 = vld [vmem:[#allocation2 + $0x28] sm:$0xff] }
 0x167   : > { %1138 = vst [vmem:[%s1932_s3 + $0x8] sm:$0xff] %v1122_v4  ;;  %v1124_v9 = vsel %vm1092_vm3, %v1076_v58, %v1108_v2  ;;  %1139 = vst [vmem:[%s1932_s3 + $0x10] sm:$0xff] %v1123_v8  ;;  %v1081_v16 = vadd.f32 %v1848_v50, %v1058_v6  ;;  %v1082_v17 = vadd.f32 %v1848_v50, %v1059_v7  ;;  %vm1094_vm5 = vcmp.ge.f32.partialorder %v1078_v10, 0.0 }
 0x168   : > { %1140 = vst [vmem:[%s1932_s3 + $0x18] sm:$0xff] %v1124_v9  ;;  %v1125_v14 = vsel %vm1093_vm4, %v1077_v59, %v1109_v5  ;;  %v1110_v21 = vmul.f32 0.2, %v1078_v10  ;;  %vm1095_vm6 = vcmp.ge.f32.partialorder %v1079_v11, 0.0  ;;  %v1111_v22 = vmul.f32 0.2, %v1079_v11 }
 0x169   : > { %1141 = vst [vmem:[%s1932_s3 + $0x20] sm:$0xff] %v1125_v14  ;;  %vm1096_vm7 = vcmp.ge.f32.partialorder %v1080_v15, 0.0  ;;  %v1112_v23 = vmul.f32 0.2, %v1080_v15  ;;  %vm1097_vm8 = vcmp.ge.f32.partialorder %v1081_v16, 0.0  ;;  %vm1098_vm9 = vcmp.ge.f32.partialorder %v1082_v17, 0.0 }
 0x16a   : > { %v1113_v24 = vmul.f32 0.2, %v1081_v16  ;;  %v1126_v25 = vsel %vm1094_vm5, %v1078_v10, %v1110_v21  ;;  %v1127_v26 = vsel %vm1095_vm6, %v1079_v11, %v1111_v22  ;;  %v1114_v27 = vmul.f32 0.2, %v1082_v17 }
 0x16b   : > { %1142 = vst [vmem:[%s1932_s3 + $0x28] sm:$0xff] %v1126_v25  ;;  %1143 = vst [vmem:[%s1932_s3 + $0x30] sm:$0xff] %v1127_v26  ;;  %v1128_v28 = vsel %vm1096_vm7, %v1080_v15, %v1112_v23  ;;  %v1083_v30 = vadd.f32 %v1848_v50, %v1060_v12  ;;  %v1084_v31 = vadd.f32 %v1848_v50, %v1061_v13 }
 0x16c   : > { %v1129_v29 = vsel %vm1097_vm8, %v1081_v16, %v1113_v24  ;;  %1144 = vst [vmem:[%s1932_s3 + $0x38] sm:$0xff] %v1128_v28  ;;  %v1130_v32 = vsel %vm1098_vm9, %v1082_v17, %v1114_v27  ;;  %v1085_v33 = vadd.f32 %v1848_v50, %v1062_v18  ;;  %v1086_v34 = vadd.f32 %v1848_v50, %v1063_v19 }
 0x16d   : > { %1145 = vst [vmem:[%s1932_s3 + $0x40] sm:$0xff] %v1129_v29  ;;  %v1087_v35 = vadd.f32 %v1848_v50, %v1064_v20  ;;  %1146 = vst [vmem:[%s1932_s3 + $0x48] sm:$0xff] %v1130_v32  ;;  %vm1099_vm10 = vcmp.ge.f32.partialorder %v1083_v30, 0.0  ;;  %v1115_v37 = vmul.f32 0.2, %v1083_v30  ;;  %vm1100_vm11 = vcmp.ge.f32.partialorder %v1084_v31, 0.0 }
 0x16e   : > { %v1116_v38 = vmul.f32 0.2, %v1084_v31  ;;  %vm1101_vm12 = vcmp.ge.f32.partialorder %v1085_v33, 0.0  ;;  %v1117_v39 = vmul.f32 0.2, %v1085_v33  ;;  %vm1102_vm13 = vcmp.ge.f32.partialorder %v1086_v34, 0.0 }
 0x16f   : > { %v1118_v40 = vmul.f32 0.2, %v1086_v34  ;;  %v1131_v41 = vsel %vm1099_vm10, %v1083_v30, %v1115_v37  ;;  %vm1103_vm14 = vcmp.ge.f32.partialorder %v1087_v35, 0.0  ;;  %v1119_v43 = vmul.f32 0.2, %v1087_v35 }
 0x170   : > { %v1132_v42 = vsel %vm1100_vm11, %v1084_v31, %v1116_v38  ;;  %1147 = vst [vmem:[%s1932_s3 + $0x50] sm:$0xff] %v1131_v41  ;;  %v1133_v44 = vsel %vm1101_vm12, %v1085_v33, %v1117_v39  ;;  %v1088_v46 = vadd.f32 %v1848_v50, %v1065_v36 }
 0x171   : > { %1148 = vst [vmem:[%s1932_s3 + $0x58] sm:$0xff] %v1132_v42  ;;  %v1134_v45 = vsel %vm1102_vm13, %v1086_v34, %v1118_v40  ;;  %1149 = vst [vmem:[%s1932_s3 + $0x60] sm:$0xff] %v1133_v44  ;;  %v1135_v47 = vsel %vm1103_vm14, %v1087_v35, %v1119_v43 }
 0x172   : > { %1150 = vst [vmem:[%s1932_s3 + $0x68] sm:$0xff] %v1134_v45  ;;  %1151 = vst [vmem:[%s1932_s3 + $0x70] sm:$0xff] %v1135_v47  ;;  %vm1104_vm15 = vcmp.ge.f32.partialorder %v1088_v46, 0.0  ;;  %v1120_v48 = vmul.f32 0.2, %v1088_v46 }
 0x174   : > { %v1136_v49 = vsel %vm1104_vm15, %v1088_v46, %v1120_v48 }
 0x175   : > { %1152 = vst [vmem:[%s1932_s3 + $0x78] sm:$0xff] %v1136_v49 }
 0x176 PF: > { %s13_s16 = sadd.s32 1, %s1634_s16   ;;  %s1933_s12 = smov %s1622_s13 }
 0x177   : > { %p10_p12 = scmp.ge.s32.totalorder %s13_s16, 4   ;;  %s1934_s13 = smov %s1692_s20 }
 0x178   : > { %s1935_s14 = smov %s1630_s15  ;;  %s1936_s15 = smov %s1938_s17 }
 0x179   :  { %12 = sbr.rel (!%p10_p12) target bundleno = 3 (0x3), region = 104 }

// kernel: critic_forward.7
= control target key start
LH: loop header
LB: loop body
LE: loop exit
PB: predicated region body
PF: predicated region fallthrough
CT: control target
= control target key end

     0   :  { %s1368_s12 = smov 0   ;;  %s1370_s13 = smov 0   ;;  %s1538_s0 = inlined_call_operand.vmem [shape: bf16[32,2048], index: 0, kind: input, shape index: {}]   ;;  %s1539_s1 = inlined_call_operand.vmem [shape: bf16[2048,256], index: 1, kind: input, shape index: {}]   ;;  %s1540_s2 = inlined_call_operand.vmem [shape: f32[1,256], index: 2, kind: input, shape index: {}]   ;;  %s1541_s3 = inlined_call_operand.vmem [shape: f32[32,256], index: 3, kind: output, shape index: {}]  }
   0x1   :  { %s1372_s14 = smov 0   ;;  %s1374_s15 = smov 0  }
   0x2   :  { %s1376_s16 = smov 0  }
   0x3 LB: > { %s25_s17 = sadd.s32 1, %s1341_s15  ;;  %p48_p1 = scmp.ne.s32.totalorder %s1333_s13, %s1329_s12  ;;  %s1345_s16 = sphi %s1376_s16, %s13_s16   ;;  %s1341_s15 = sphi %s1374_s15, %s1545_s15   ;;  %s1337_s14 = sphi %s1372_s14, %s1544_s14   ;;  %s1333_s13 = sphi %s1370_s13, %s1543_s13   ;;  %s1329_s12 = sphi %s1368_s12, %s1542_s12  }
   0x4   : > { %p26_p0 = scmp.ge.s32.totalorder %s25_s17, 4  ;;  %p49_p2 = scmp.eq.s32.totalorder %s1345_s16, 0 }
   0x5   : > { %s41_s19 = sadd.s32 1, %s1333_s13  ;;  %p1069_p5 = scmp.ge.s32.totalorder %s1345_s16, 4 }
   0x6   : > { %s1547_s17 = smov (%p26_p0, %s25_s17), 0  ;;  %p50_p3 = por %p49_p2, %p48_p1 }
   0x7   : > { %s37_s18 = ssub.s32 %s1341_s15, %s1547_s17  ;;  %164 = sbr.rel (%p1069_p5) target bundleno = 20 (0x14), region = 20 }
   0x8   : > { %p39_p4 = scmp.eq.s32.totalorder %s37_s18, 0 }
   0xa   : > { %s1403_s20 = scalar_select %p39_p4, %s1333_s13, %s41_s19  }
   0xc   : > { %167 = sbr.rel (!%p50_p3) target bundleno = 20 (0x14), region = 24  ;;  %s169_s21 = sand.u32 (%p50_p3), 1, %s1333_s13  }
   0xd   : > { %s1156_s22 = sshll.u32 (%p50_p3), %s1341_s15, 4  ;;  %s1070_s23 = sshll.u32 (%p50_p3), %s169_s21, 6 }
   0xe   : > { %s177_s26 = scalar_lea.vmem (%p50_p3), %s1538_s0, %s1156_s22  ;;  %s171_s27 = scalar_lea.vmem (%p50_p3), [#allocation3], %s1070_s23 }
   0xf   : > { %v190_v0 = vld [vmem:[%s177_s26] sm:$0xff] (%p50_p3)  ;;  %v192_v1 = vld [vmem:[%s177_s26 + $0x8] sm:$0xff] (%p50_p3) }
  0x10   : > { %v194_v2 = vld [vmem:[%s177_s26 + $0x40] sm:$0xff] (%p50_p3)  ;;  %191 = vst [vmem:[%s171_s27] sm:$0xff] (%p50_p3), %v190_v0  ;;  %193 = vst [vmem:[%s171_s27 + $0x8] sm:$0xff] (%p50_p3), %v192_v1  ;;  %v196_v3 = vld [vmem:[%s177_s26 + $0x48] sm:$0xff] (%p50_p3) }
  0x11   : > { %195 = vst [vmem:[%s171_s27 + $0x10] sm:$0xff] %v194_v2  ;;  %v198_v4 = vld [vmem:[%s177_s26 + $0x80] sm:$0xff]  ;;  %v200_v5 = vld [vmem:[%s177_s26 + $0x88] sm:$0xff]  ;;  %197 = vst [vmem:[%s171_s27 + $0x18] sm:$0xff] %v196_v3 }
  0x12   : > { %199 = vst [vmem:[%s171_s27 + $0x20] sm:$0xff] %v198_v4  ;;  %201 = vst [vmem:[%s171_s27 + $0x28] sm:$0xff] %v200_v5  ;;  %v202_v6 = vld [vmem:[%s177_s26 + $0xc0] sm:$0xff]  ;;  %v204_v7 = vld [vmem:[%s177_s26 + $0xc8] sm:$0xff] }
  0x13   : > { %203 = vst [vmem:[%s171_s27 + $0x30] sm:$0xff] %v202_v6  ;;  %205 = vst [vmem:[%s171_s27 + $0x38] sm:$0xff] %v204_v7 }
  0x14 PF: > { %p1073_p6 = scmp.ge.s32.totalorder %s1345_s16, 1  ;;  %p225_p7 = scmp.lt.s32.totalorder %s1345_s16, 5 }
  0x16   : > { %p226_p8 = pnand %p1073_p6, %p225_p7 }
  0x17   : > { %s232_s28 = sand.u32 (!%p226_p8), 1, %s1329_s12   ;;  %s1075_s29 = sshll.u32 (!%p226_p8), %s1337_s14, 6 }
  0x18   : > { %229 = sbr.rel (%p226_p8) target bundleno = 336 (0x150), region = 51  ;;  %s1074_s30 = sshll.u32 (!%p226_p8), %s232_s28, 6 }
  0x19   : > { %p278_p9 = scmp.lt.s32.totalorder (!%p226_p8), %s1075_s29, 255  ;;  %s1420_s8 = scalar_lea.vmem (!%p226_p8), [#allocation3], %s1074_s30 }
  0x1a   : > { %p1078_p10 = scmp.ne.s32.totalorder (!%p226_p8), %s1337_s14, 0 }
  0x1d   : > { %s1549_s29 = smov (!%p278_p9, %s1075_s29), 255  ;;  %308 = sbr.rel (%p1078_p10) target bundleno = 39 (0x27), region = 59 }
  0x1e   : > { %s1157_s4 = sshll.u32 %s1549_s29, 3 }
  0x1f   : > { %s1418_s7 = scalar_lea.vmem %s1539_s1, %s1157_s4 }
  0x22   : > { %v1347_v8 = vmov 0.0  }
  0x23   : > { %309 = vst [vmem:[#allocation2 + $0x30] sm:$0xff] %v1347_v8  ;;  %310 = vst [vmem:[#allocation2] sm:$0xff] %v1347_v8 }
  0x24   : > { %311 = vst [vmem:[#allocation2 + $0x18] sm:$0xff] %v1347_v8  ;;  %312 = vst [vmem:[#allocation2 + $0x10] sm:$0xff] %v1347_v8 }
  0x25   : > { %313 = vst [vmem:[#allocation2 + $0x8] sm:$0xff] %v1347_v8  ;;  %314 = vst [vmem:[#allocation2 + $0x20] sm:$0xff] %v1347_v8 }
  0x26   : > { %315 = vst [vmem:[#allocation2 + $0x28] sm:$0xff] %v1347_v8  ;;  %316 = vst [vmem:[#allocation2 + $0x38] sm:$0xff] %v1347_v8 }
  0x27 PF: > { %v1199_v9 = vld [vmem:[%s1418_s7 + $0x74] ss:$8 sps:$4 sm:$0xff]   ;;  %v1203_v11 = vld [vmem:[%s1418_s7 + $0x70] ss:$8 sps:$4 sm:$0xff]   ;;  %v1205_v13 = vld [vmem:[%s1418_s7 + $0x64] ss:$8 sps:$4 sm:$0xff]  }
  0x28   : > { %v1201_v10 = vld [vmem:[%s1418_s7 + $0x174] ss:$8 sps:$4 sm:$0xff]   ;;  %757 = vmatprep.subr.bf16.mxu0 %v1199_v9  ;;  %v1204_v12 = vld [vmem:[%s1418_s7 + $0x170] ss:$8 sps:$4 sm:$0xff]   ;;  %v1207_v14 = vld [vmem:[%s1418_s7 + $0x164] ss:$8 sps:$4 sm:$0xff]  }
  0x29   : > { %810 = vmatprep.subr.bf16.mxu1 %v1201_v10  ;;  %758 = vmatpush1.bf16.msra.mxu0 %v1203_v11  ;;  %v1209_v15 = vld [vmem:[%s1418_s7 + $0x60] ss:$8 sps:$4 sm:$0xff]   ;;  %v1211_v17 = vld [vmem:[%s1418_s7 + $0x54] ss:$8 sps:$4 sm:$0xff]   ;;  %v1215_v19 = vld [vmem:[%s1418_s7 + $0x50] ss:$8 sps:$4 sm:$0xff]  }
  0x2a   : > { %811 = vmatpush1.bf16.msra.mxu1 %v1204_v12  ;;  %759 = vmatprep.subr.bf16.mxu0 %v1205_v13  ;;  %v1210_v16 = vld [vmem:[%s1418_s7 + $0x160] ss:$8 sps:$4 sm:$0xff]   ;;  %v1213_v18 = vld [vmem:[%s1418_s7 + $0x154] ss:$8 sps:$4 sm:$0xff]   ;;  %v1216_v20 = vld [vmem:[%s1418_s7 + $0x150] ss:$8 sps:$4 sm:$0xff]  }
  0x2b   : > { %812 = vmatprep.subr.bf16.mxu1 %v1207_v14  ;;  %v1217_v21 = vld [vmem:[%s1418_s7 + $0x44] ss:$8 sps:$4 sm:$0xff]   ;;  %v1221_v23 = vld [vmem:[%s1418_s7 + $0x40] ss:$8 sps:$4 sm:$0xff]   ;;  %v1223_v25 = vld [vmem:[%s1418_s7 + $0x34] ss:$8 sps:$4 sm:$0xff]  }
  0x2c   : > { %v1219_v22 = vld [vmem:[%s1418_s7 + $0x144] ss:$8 sps:$4 sm:$0xff]   ;;  %v1222_v24 = vld [vmem:[%s1418_s7 + $0x140] ss:$8 sps:$4 sm:$0xff]   ;;  %v1225_v26 = vld [vmem:[%s1418_s7 + $0x134] ss:$8 sps:$4 sm:$0xff]  }
  0x2d   : > { %760 = vmatpush1.bf16.msra.mxu0 %v1209_v15  ;;  %v1227_v27 = vld [vmem:[%s1418_s7 + $0x30] ss:$8 sps:$4 sm:$0xff]   ;;  %v1229_v29 = vld [vmem:[%s1418_s7 + $0x24] ss:$8 sps:$4 sm:$0xff]   ;;  %v1233_v31 = vld [vmem:[%s1418_s7 + $0x20] ss:$8 sps:$4 sm:$0xff]  }
  0x2e   : > { %813 = vmatpush1.bf16.msra.mxu1 %v1210_v16  ;;  %761 = vmatprep.subr.bf16.mxu0 %v1211_v17  ;;  %v1228_v28 = vld [vmem:[%s1418_s7 + $0x130] ss:$8 sps:$4 sm:$0xff]   ;;  %v1231_v30 = vld [vmem:[%s1418_s7 + $0x124] ss:$8 sps:$4 sm:$0xff]   ;;  %v1234_v32 = vld [vmem:[%s1418_s7 + $0x120] ss:$8 sps:$4 sm:$0xff]  }
  0x2f   : > { %814 = vmatprep.subr.bf16.mxu1 %v1213_v18  ;;  %v1235_v33 = vld [vmem:[%s1418_s7 + $0x14] ss:$8 sps:$4 sm:$0xff]   ;;  %v1239_v35 = vld [vmem:[%s1418_s7 + $0x10] ss:$8 sps:$4 sm:$0xff]   ;;  %v1241_v37 = vld [vmem:[%s1418_s7 + $0x4] ss:$8 sps:$4 sm:$0xff]  }
  0x30   : > { %v1237_v34 = vld [vmem:[%s1418_s7 + $0x114] ss:$8 sps:$4 sm:$0xff]   ;;  %v1240_v36 = vld [vmem:[%s1418_s7 + $0x110] ss:$8 sps:$4 sm:$0xff]   ;;  %v1243_v38 = vld [vmem:[%s1418_s7 + $0x104] ss:$8 sps:$4 sm:$0xff]  }
  0x31   : > { %762 = vmatpush1.bf16.msra.mxu0 %v1215_v19  ;;  %v1245_v39 = vld [vmem:[%s1418_s7] ss:$8 sps:$4 sm:$0xff]   ;;  %v1247_v41 = vld [vmem:[%s1418_s7 + $0xf4] ss:$8 sps:$4 sm:$0xff]   ;;  %v1251_v43 = vld [vmem:[%s1418_s7 + $0xf0] ss:$8 sps:$4 sm:$0xff]  }
  0x32   : > { %815 = vmatpush1.bf16.msra.mxu1 %v1216_v20  ;;  %763 = vmatprep.subr.bf16.mxu0 %v1217_v21  ;;  %v1246_v40 = vld [vmem:[%s1418_s7 + $0x100] ss:$8 sps:$4 sm:$0xff]   ;;  %v1249_v42 = vld [vmem:[%s1418_s7 + $0x1f4] ss:$8 sps:$4 sm:$0xff]   ;;  %v1252_v44 = vld [vmem:[%s1418_s7 + $0x1f0] ss:$8 sps:$4 sm:$0xff]  }
  0x33   : > { %816 = vmatprep.subr.bf16.mxu1 %v1219_v22  ;;  %v1253_v45 = vld [vmem:[%s1418_s7 + $0xe4] ss:$8 sps:$4 sm:$0xff]   ;;  %v1257_v47 = vld [vmem:[%s1418_s7 + $0xe0] ss:$8 sps:$4 sm:$0xff]   ;;  %v1259_v49 = vld [vmem:[%s1418_s7 + $0xd4] ss:$8 sps:$4 sm:$0xff]  }
  0x34   : > { %v1255_v46 = vld [vmem:[%s1418_s7 + $0x1e4] ss:$8 sps:$4 sm:$0xff]   ;;  %v1258_v48 = vld [vmem:[%s1418_s7 + $0x1e0] ss:$8 sps:$4 sm:$0xff]   ;;  %v1261_v50 = vld [vmem:[%s1418_s7 + $0x1d4] ss:$8 sps:$4 sm:$0xff]  }
  0x35   : > { %764 = vmatpush1.bf16.msra.mxu0 %v1221_v23  ;;  %v1263_v51 = vld [vmem:[%s1418_s7 + $0xd0] ss:$8 sps:$4 sm:$0xff]   ;;  %v1265_v53 = vld [vmem:[%s1418_s7 + $0xc4] ss:$8 sps:$4 sm:$0xff]   ;;  %v1269_v55 = vld [vmem:[%s1418_s7 + $0xc0] ss:$8 sps:$4 sm:$0xff]  }
  0x36   : > { %817 = vmatpush1.bf16.msra.mxu1 %v1222_v24  ;;  %765 = vmatprep.subr.bf16.mxu0 %v1223_v25  ;;  %v1264_v52 = vld [vmem:[%s1418_s7 + $0x1d0] ss:$8 sps:$4 sm:$0xff]   ;;  %v1267_v54 = vld [vmem:[%s1418_s7 + $0x1c4] ss:$8 sps:$4 sm:$0xff]   ;;  %v1270_v56 = vld [vmem:[%s1418_s7 + $0x1c0] ss:$8 sps:$4 sm:$0xff]  }
  0x37   : > { %818 = vmatprep.subr.bf16.mxu1 %v1225_v26  ;;  %v1271_v57 = vld [vmem:[%s1418_s7 + $0xb4] ss:$8 sps:$4 sm:$0xff]   ;;  %v1275_v61 = vld [vmem:[%s1418_s7 + $0xb0] ss:$8 sps:$4 sm:$0xff]   ;;  %v1277_v63 = vld [vmem:[%s1418_s7 + $0xa4] ss:$8 sps:$4 sm:$0xff]  }
  0x38   : > { %v1297_v58 = vld [vmem:[%s1420_s8 + $0x4] ss:$16 sps:$4 sm:$0xff]   ;;  %v1300_v60 = vld [vmem:[%s1420_s8 + $0xc] ss:$16 sps:$4 sm:$0xff]   ;;  %v1276_v62 = vld [vmem:[%s1418_s7 + $0x1b0] ss:$8 sps:$4 sm:$0xff]  }
  0x39   : > { %766 = vmatpush1.bf16.msra.mxu0 %v1227_v27  ;;  %v1273_v59 = vld [vmem:[%s1418_s7 + $0x1b4] ss:$8 sps:$4 sm:$0xff]   ;;  %789 = vmatprep.mubr.bf16.mxu0 %v1297_v58  ;;  %v1279_v0 = vld [vmem:[%s1418_s7 + $0x1a4] ss:$8 sps:$4 sm:$0xff]   ;;  %v1281_v1 = vld [vmem:[%s1418_s7 + $0xa0] ss:$8 sps:$4 sm:$0xff]  }
  0x3a   : > { %819 = vmatpush1.bf16.msra.mxu1 %v1228_v28  ;;  %767 = vmatprep.subr.bf16.mxu0 %v1229_v29  ;;  %v1282_v2 = vld [vmem:[%s1418_s7 + $0x1a0] ss:$8 sps:$4 sm:$0xff]   ;;  %v1283_v3 = vld [vmem:[%s1418_s7 + $0x94] ss:$8 sps:$4 sm:$0xff]   ;;  %v1287_v5 = vld [vmem:[%s1418_s7 + $0x90] ss:$8 sps:$4 sm:$0xff]  }
  0x3b   : > { %820 = vmatprep.subr.bf16.mxu1 %v1231_v30  ;;  %842 = vmatprep.mubr.bf16.mxu1 %v1300_v60  ;;  %v1285_v4 = vld [vmem:[%s1418_s7 + $0x194] ss:$8 sps:$4 sm:$0xff]   ;;  %v1288_v6 = vld [vmem:[%s1418_s7 + $0x190] ss:$8 sps:$4 sm:$0xff]   ;;  %v1289_v7 = vld [vmem:[%s1418_s7 + $0x84] ss:$8 sps:$4 sm:$0xff]  }
  0x3c   : > { %v1291_v8 = vld [vmem:[%s1418_s7 + $0x184] ss:$8 sps:$4 sm:$0xff]   ;;  %v1293_v9 = vld [vmem:[%s1418_s7 + $0x80] ss:$8 sps:$4 sm:$0xff]   ;;  %v317_v18 = vld [vmem:[#allocation2 + $0x30] sm:$0xff]  ;;  %p1151_p11 = scmp.ne.s32.totalorder %s1337_s14, 3 }
  0x3d   : > { %768 = vmatpush1.bf16.msra.mxu0 %v1233_v31  ;;  %v1294_v10 = vld [vmem:[%s1418_s7 + $0x180] ss:$8 sps:$4 sm:$0xff]   ;;  %v1301_v13 = vld [vmem:[%s1420_s8 + $0x24] ss:$16 sps:$4 sm:$0xff]   ;;  %v1303_v14 = vld [vmem:[%s1420_s8 + $0x2c] ss:$16 sps:$4 sm:$0xff]  }
  0x3e   : > { %821 = vmatpush1.bf16.msra.mxu1 %v1234_v32  ;;  %769 = vmatprep.subr.bf16.mxu0 %v1235_v33  ;;  %v1295_v11 = vld [vmem:[%s1420_s8] ss:$16 sps:$4 sm:$0xff]   ;;  %v1298_v12 = vld [vmem:[%s1420_s8 + $0x8] ss:$16 sps:$4 sm:$0xff]  }
  0x3f   : > { %822 = vmatprep.subr.bf16.mxu1 %v1237_v34  ;;  %v1305_v15 = vld [vmem:[%s1420_s8 + $0x20] ss:$16 sps:$4 sm:$0xff]   ;;  %v1306_v16 = vld [vmem:[%s1420_s8 + $0x28] ss:$16 sps:$4 sm:$0xff]  }
  0x40   : > { %v318_v22 = vld [vmem:[#allocation2] sm:$0xff]  ;;  %v319_v27 = vld [vmem:[#allocation2 + $0x18] sm:$0xff]  ;;  %v320_v32 = vld [vmem:[#allocation2 + $0x10] sm:$0xff] }
  0x41   : > { %770 = vmatpush1.bf16.msra.mxu0 %v1239_v35 }
  0x42   : > { %823 = vmatpush1.bf16.msra.mxu1 %v1240_v36  ;;  %771 = vmatprep.subr.bf16.mxu0 %v1241_v37  ;;  %v321_v37 = vld [vmem:[#allocation2 + $0x8] sm:$0xff] }
  0x43   : > { %824 = vmatprep.subr.bf16.mxu1 %v1243_v38 }
  0x45   : > { %772 = vmatpush1.bf16.msra.mxu0 %v1245_v39 }
  0x46   : > { %825 = vmatpush1.bf16.msra.mxu1 %v1246_v40  ;;  %773 = vmatprep.subr.bf16.mxu0 %v1247_v41 }
  0x47   : > { %826 = vmatprep.subr.bf16.mxu1 %v1249_v42  ;;  %v322_v42 = vld [vmem:[#allocation2 + $0x20] sm:$0xff] }
  0x49   : > { %774 = vmatpush2.bf16.msra.mxu0 %v1251_v43 }
  0x4a   : > { %827 = vmatpush2.bf16.msra.mxu1 %v1252_v44  ;;  %775 = vmatprep.subr.bf16.mxu0 %v1253_v45 }
  0x4b   : > { %828 = vmatprep.subr.bf16.mxu1 %v1255_v46 }
  0x4d   : > { %776 = vmatpush2.bf16.msra.mxu0 %v1257_v47  ;;  %v323_v47 = vld [vmem:[#allocation2 + $0x28] sm:$0xff] }
  0x4e   : > { %829 = vmatpush2.bf16.msra.mxu1 %v1258_v48  ;;  %777 = vmatprep.subr.bf16.mxu0 %v1259_v49 }
  0x4f   : > { %830 = vmatprep.subr.bf16.mxu1 %v1261_v50 }
  0x51   : > { %778 = vmatpush2.bf16.msra.mxu0 %v1263_v51 }
  0x52   : > { %831 = vmatpush2.bf16.msra.mxu1 %v1264_v52  ;;  %779 = vmatprep.subr.bf16.mxu0 %v1265_v53  ;;  %v324_v52 = vld [vmem:[#allocation2 + $0x38] sm:$0xff] }
  0x53   : > { %832 = vmatprep.subr.bf16.mxu1 %v1267_v54 }
  0x55   : > { %780 = vmatpush2.bf16.msra.mxu0 %v1269_v55 }
  0x56   : > { %833 = vmatpush2.bf16.msra.mxu1 %v1270_v56  ;;  %781 = vmatprep.subr.bf16.mxu0 %v1271_v57 }
  0x57   : > { %834 = vmatprep.subr.bf16.mxu1 %v1273_v59 }
  0x59   : > { %782 = vmatpush2.bf16.msra.mxu0 %v1275_v61 }
  0x5a   : > { %835 = vmatpush2.bf16.msra.mxu1 %v1276_v62  ;;  %783 = vmatprep.subr.bf16.mxu0 %v1277_v63 }
  0x5b   : > { %836 = vmatprep.subr.bf16.mxu1 %v1279_v0 }
  0x5d   : > { %784 = vmatpush2.bf16.msra.mxu0 %v1281_v1 }
  0x5e   : > { %837 = vmatpush2.bf16.msra.mxu1 %v1282_v2  ;;  %785 = vmatprep.subr.bf16.mxu0 %v1283_v3 }
  0x5f   : > { %838 = vmatprep.subr.bf16.mxu1 %v1285_v4 }
  0x61   : > { %786 = vmatpush2.bf16.msra.mxu0 %v1287_v5 }
  0x62   : > { %839 = vmatpush2.bf16.msra.mxu1 %v1288_v6  ;;  %787 = vmatprep.subr.bf16.mxu0 %v1289_v7 }
  0x63   : > { %840 = vmatprep.subr.bf16.mxu1 %v1291_v8 }
  0x65   : > { %788 = vmatpush2.bf16.msra.mxu0 %v1293_v9 }
  0x66   : > { %841 = vmatpush2.bf16.msra.mxu1 %v1294_v10 }
  0x68   : > { %790 = vmatmul.mubr.bf16.vlgmr.msra.gmra.mxu0 %v1295_v11 }
  0x69   : > { %843 = vmatmul.mubr.bf16.vlgmr.msra.gmra.mxu1 %v1298_v12  ;;  %799 = vmatprep.mubr.bf16.mxu0 %v1301_v13 }
  0x6a   : > { %852 = vmatprep.mubr.bf16.mxu1 %v1303_v14 }
  0x70   : > { %800 = vmatmul.mubr.bf16.gmra.mxu0 %v1305_v15 }
  0x71   : > { %853 = vmatmul.mubr.bf16.gmra.mxu1 %v1306_v16 }
 0x128   : > { %v791_v17 = vpop.f32.mrf.mxu0 }
 0x129   : > { %v844_v19 = vpop.f32.mrf.mxu1 }
 0x12a   : > { %v845_v20 = vadd.f32 %v844_v19, %v791_v17  ;;  %v793_v21 = vpop.f32.mrf.mxu0 }
 0x12b   : > { %v846_v23 = vpop.f32.mrf.mxu1 }
 0x12c   : > { %v863_v24 = vadd.f32 %v845_v20, %v317_v18  ;;  %v847_v25 = vadd.f32 %v846_v23, %v793_v21  ;;  %v795_v26 = vpop.f32.mrf.mxu0 }
 0x12d   : > { %v848_v28 = vpop.f32.mrf.mxu1 }
 0x12e   : > { %871 = vst [vmem:[#allocation2 + $0x30] sm:$0xff] %v863_v24  ;;  %v864_v29 = vadd.f32 %v847_v25, %v318_v22  ;;  %v849_v30 = vadd.f32 %v848_v28, %v795_v26  ;;  %v797_v31 = vpop.f32.mrf.mxu0 }
 0x12f   : > { %v850_v33 = vpop.f32.mrf.mxu1 }
 0x130   : > { %872 = vst [vmem:[#allocation2] sm:$0xff] %v864_v29  ;;  %v865_v34 = vadd.f32 %v849_v30, %v319_v27  ;;  %v851_v35 = vadd.f32 %v850_v33, %v797_v31  ;;  %v801_v36 = vpop.f32.mrf.mxu0 }
 0x131   : > { %v854_v38 = vpop.f32.mrf.mxu1 }
 0x132   : > { %873 = vst [vmem:[#allocation2 + $0x18] sm:$0xff] %v865_v34  ;;  %v866_v39 = vadd.f32 %v851_v35, %v320_v32  ;;  %v855_v40 = vadd.f32 %v854_v38, %v801_v36  ;;  %v803_v41 = vpop.f32.mrf.mxu0 }
 0x133   : > { %v856_v43 = vpop.f32.mrf.mxu1 }
 0x134   : > { %874 = vst [vmem:[#allocation2 + $0x10] sm:$0xff] %v866_v39  ;;  %v867_v44 = vadd.f32 %v855_v40, %v321_v37  ;;  %v857_v45 = vadd.f32 %v856_v43, %v803_v41  ;;  %v805_v46 = vpop.f32.mrf.mxu0 }
 0x135   : > { %v858_v48 = vpop.f32.mrf.mxu1 }
 0x136   : > { %875 = vst [vmem:[#allocation2 + $0x8] sm:$0xff] %v867_v44  ;;  %v868_v49 = vadd.f32 %v857_v45, %v322_v42  ;;  %v859_v50 = vadd.f32 %v858_v48, %v805_v46  ;;  %v807_v51 = vpop.f32.mrf.mxu0 }
 0x137   : > { %v860_v53 = vpop.f32.mrf.mxu1 }
 0x138   : > { %876 = vst [vmem:[#allocation2 + $0x20] sm:$0xff] %v868_v49  ;;  %v869_v54 = vadd.f32 %v859_v50, %v323_v47  ;;  %v861_v55 = vadd.f32 %v860_v53, %v807_v51  ;;  %882 = sbr.rel (%p1151_p11) target bundleno = 336 (0x150), region = 63 }
 0x13a   : > { %877 = vst [vmem:[#allocation2 + $0x28] sm:$0xff] %v869_v54  ;;  %v870_v56 = vadd.f32 %v861_v55, %v324_v52 }
 0x13c   : > { %878 = vst [vmem:[#allocation2 + $0x38] sm:$0xff] %v870_v56 }
 0x13d   : > { %v893_v57 = vlaneseq  ;;  %v891_v59 = vld [vmem:[%s1540_s2] sm:$0x3]  ;;  %v883_v60 = vld [vmem:[#allocation2 + $0x30] sm:$0xff]  ;;  %v885_v0 = vld [vmem:[#allocation2 + $0x18] sm:$0xff] }
 0x13e   : > { %v884_v62 = vld [vmem:[#allocation2] sm:$0xff]  ;;  %v886_v1 = vld [vmem:[#allocation2 + $0x10] sm:$0xff]  ;;  %v887_v2 = vld [vmem:[#allocation2 + $0x8] sm:$0xff] }
 0x13f   : > { %v894_v58 = vshrl.u32 %v893_v57, 7  ;;  %v888_v5 = vld [vmem:[#allocation2 + $0x20] sm:$0xff] }
 0x141   : > { %v895_v61 = vsub.s32 0, %v894_v58  ;;  %v899_v63 = vsub.s32 1, %v894_v58  ;;  %v889_v6 = vld [vmem:[#allocation2 + $0x28] sm:$0xff] }
 0x143   : > { %v896_v3 = vrot.slane %v891_v59, %v895_v61  ;;  %v900_v4 = vrot.slane %v891_v59, %v899_v63  ;;  %v890_v7 = vld [vmem:[#allocation2 + $0x38] sm:$0xff] }
 0x145   : > { %v903_v8 = vadd.f32 %v896_v3, %v883_v60  ;;  %v904_v9 = vadd.f32 %v900_v4, %v884_v62  ;;  %v905_v10 = vadd.f32 %v896_v3, %v885_v0  ;;  %v906_v11 = vadd.f32 %v900_v4, %v886_v1 }
 0x146   : > { %v907_v12 = vadd.f32 %v896_v3, %v887_v2  ;;  %v908_v13 = vadd.f32 %v900_v4, %v888_v5  ;;  %v909_v14 = vadd.f32 %v896_v3, %v889_v6  ;;  %v910_v15 = vadd.f32 %v900_v4, %v890_v7 }
 0x147   : > { %vm911_vm0 = vcmp.ge.f32.partialorder %v903_v8, 0.0  ;;  %v919_v16 = vmul.f32 0.2, %v903_v8  ;;  %vm912_vm1 = vcmp.ge.f32.partialorder %v904_v9, 0.0  ;;  %v920_v17 = vmul.f32 0.2, %v904_v9 }
 0x148   : > { %vm913_vm2 = vcmp.ge.f32.partialorder %v905_v10, 0.0  ;;  %v921_v18 = vmul.f32 0.2, %v905_v10  ;;  %vm914_vm3 = vcmp.ge.f32.partialorder %v906_v11, 0.0  ;;  %v922_v19 = vmul.f32 0.2, %v906_v11 }
 0x149   : > { %v927_v20 = vsel %vm911_vm0, %v903_v8, %v919_v16  ;;  %v928_v21 = vsel %vm912_vm1, %v904_v9, %v920_v17  ;;  %vm915_vm4 = vcmp.ge.f32.partialorder %v907_v12, 0.0  ;;  %v923_v22 = vmul.f32 0.2, %v907_v12 }
 0x14a   : > { %935 = vst [vmem:[%s1541_s3] sm:$0xff] %v927_v20  ;;  %936 = vst [vmem:[%s1541_s3 + $0x8] sm:$0xff] %v928_v21  ;;  %v929_v23 = vsel %vm913_vm2, %v905_v10, %v921_v18  ;;  %v930_v24 = vsel %vm914_vm3, %v906_v11, %v922_v19  ;;  %vm916_vm5 = vcmp.ge.f32.partialorder %v908_v13, 0.0  ;;  %v924_v25 = vmul.f32 0.2, %v908_v13 }
 0x14b   : > { %937 = vst [vmem:[%s1541_s3 + $0x10] sm:$0xff] %v929_v23  ;;  %938 = vst [vmem:[%s1541_s3 + $0x18] sm:$0xff] %v930_v24  ;;  %v931_v26 = vsel %vm915_vm4, %v907_v12, %v923_v22  ;;  %vm917_vm6 = vcmp.ge.f32.partialorder %v909_v14, 0.0  ;;  %v925_v27 = vmul.f32 0.2, %v909_v14  ;;  %vm918_vm7 = vcmp.ge.f32.partialorder %v910_v15, 0.0 }
 0x14c   : > { %939 = vst [vmem:[%s1541_s3 + $0x20] sm:$0xff] %v931_v26  ;;  %v932_v28 = vsel %vm916_vm5, %v908_v13, %v924_v25  ;;  %v926_v29 = vmul.f32 0.2, %v910_v15 }
 0x14d   : > { %940 = vst [vmem:[%s1541_s3 + $0x28] sm:$0xff] %v932_v28  ;;  %v933_v30 = vsel %vm917_vm6, %v909_v14, %v925_v27 }
 0x14e   : > { %941 = vst [vmem:[%s1541_s3 + $0x30] sm:$0xff] %v933_v30  ;;  %v934_v31 = vsel %vm918_vm7, %v910_v15, %v926_v29 }
 0x14f   : > { %942 = vst [vmem:[%s1541_s3 + $0x38] sm:$0xff] %v934_v31 }
 0x150 PF: > { %s13_s16 = sadd.s32 1, %s1345_s16   ;;  %s1542_s12 = smov %s1333_s13 }
 0x151   : > { %p10_p12 = scmp.ge.s32.totalorder %s13_s16, 6   ;;  %s1543_s13 = smov %s1403_s20 }
 0x152   : > { %s1544_s14 = smov %s1341_s15  ;;  %s1545_s15 = smov %s1547_s17 }
 0x153   :  { %12 = sbr.rel (!%p10_p12) target bundleno = 3 (0x3), region = 104 }

// kernel: critic_forward.8
= control target key start
LH: loop header
LB: loop body
LE: loop exit
PB: predicated region body
PF: predicated region fallthrough
CT: control target
= control target key end

     0   :  { %s2155_s0 = inlined_call_operand.vmem [shape: bf16[32,4096], index: 0, kind: input, shape index: {}]   ;;  %s2156_s1 = inlined_call_operand.vmem [shape: bf16[4096,512], index: 1, kind: input, shape index: {}]   ;;  %s2157_s2 = inlined_call_operand.vmem [shape: f32[1,512], index: 2, kind: input, shape index: {}]   ;;  %s2158_s3 = inlined_call_operand.vmem [shape: f32[32,512], index: 3, kind: output, shape index: {}]  }
   0x1   :  { %2160 = sst [smem:[#allocation7_spill]] %s2155_s0 }
   0x2   :  { %2161 = sst [smem:[#allocation8_spill]] %s2156_s1 }
   0x3   :  { %s1757_s12 = smov 0   ;;  %s1759_s13 = smov 0  }
   0x4   :  { %s1761_s14 = smov 0   ;;  %s1763_s15 = smov 0  }
   0x5   :  { %s1765_s16 = smov 0   ;;  %s1767_s17 = smov 0  }
   0x6   :  { %s1769_s18 = smov 0   ;;  %s1771_s19 = smov 0  }
   0x7   :  { %s1773_s20 = smov 0   ;;  %s1775_s21 = smov 0  }
   0x8   :  { %s1777_s22 = smov 0  }
   0x9 LB: > { %s1352_s23 = sadd.s32 4294967295, %s1734_s22   ;;  %s25_s24 = sadd.s32 1, %s1726_s20  ;;  %s1734_s22 = sphi %s1777_s22, %s13_s22   ;;  %s1730_s21 = sphi %s1775_s21, %s2178_s21   ;;  %s1726_s20 = sphi %s1773_s20, %s2177_s20   ;;  %s1722_s19 = sphi %s1771_s19, %s2176_s19   ;;  %s1718_s18 = sphi %s1769_s18, %s2175_s18   ;;  %s1714_s17 = sphi %s1767_s17, %s2174_s17   ;;  %s1710_s16 = sphi %s1765_s16, %s2173_s16   ;;  %s1706_s15 = sphi %s1763_s15, %s2172_s15   ;;  %s1702_s14 = sphi %s1761_s14, %s2171_s14   ;;  %s1698_s13 = sphi %s1759_s13, %s2170_s13   ;;  %s1694_s12 = sphi %s1757_s12, %s2169_s12  }
   0xa   : > { %p26_p0 = scmp.ge.s32.totalorder %s25_s24, 8  ;;  %s28_s25 = sadd.s32 1, %s1730_s21 }
   0xb   : > { %s41_s26 = sadd.s32 1, %s1714_s17  ;;  %p48_p1 = scmp.ne.s32.totalorder %s1714_s17, %s1710_s16 }
   0xc   : > { %s2180_s24 = smov (%p26_p0, %s25_s24), 0  ;;  %s2182_s25 = smov (!%p26_p0, %s28_s25), %s1730_s21 }
   0xd   : > { %s37_s27 = ssub.s32 %s1726_s20, %s2180_s24  ;;  %p49_p2 = scmp.eq.s32.totalorder %s1734_s22, 0 }
   0xe   : > { %p30_p3 = scmp.ge.s32.totalorder %s2182_s25, 2  ;;  %p39_p4 = scmp.eq.s32.totalorder %s37_s27, 0 }
   0xf   : > { %p1824_p5 = por %p49_p2, %p48_p1  ;;  %s69_s29 = sadd.s32 1, %s1706_s15 }
  0x10   : > { %s2184_s25 = smov (%p30_p3, %s2182_s25), 0  ;;  %p76_p6 = scmp.ne.s32.totalorder %s1706_s15, %s1702_s14 }
  0x11   : > { %2163 = sst [smem:[#allocation6_spill]] %s2184_s25  ;;  %s65_s4 = ssub.s32 %s1730_s21, %s2184_s25 }
  0x12   : > { %s1832_s30 = scalar_select %p39_p4, %s1714_s17, %s41_s26  }
  0x13   : > { %s66_s5 = sor.u32 %s65_s4, %s37_s27  ;;  %p121_p7 = scmp.eq.s32.totalorder %s65_s4, 0 }
  0x14   : > { %p67_p8 = scmp.eq.s32.totalorder %s66_s5, 0  ;;  %p1838_p9 = por %p76_p6, %p49_p2 }
  0x15   : > { %s123_s7 = sadd.s32 1, %s1698_s13  ;;  %p133_p10 = scmp.ne.s32.totalorder %s1698_s13, %s1694_s12 }
  0x16   : > { %s1846_s8 = scalar_select %p67_p8, %s1706_s15, %s69_s29  }
  0x17   : > { %s1849_s9 = scalar_select %p121_p7, %s1698_s13, %s123_s7  }
  0x18   : > { %p134_p11 = scmp.eq.s32.totalorder %s1352_s23, 15  ;;  %p1355_p13 = scmp.ge.s32.totalorder %s1734_s22, 16 }
  0x1a   : > { %p1851_p12 = por %p134_p11, %p133_p10  ;;  %156 = sbr.rel (%p1355_p13) target bundleno = 87 (0x57), region = 16 }
  0x1f   : > { %159 = sbr.rel (!%p1824_p5) target bundleno = 45 (0x2d), region = 20  ;;  %s161_s11 = sand.u32 (%p1824_p5), 1, %s1714_s17  }
  0x20   : > { %s1448_s26 = sshll.u32 (%p1824_p5), %s1726_s20, 4  ;;  %s1356_s27 = sshll.u32 (%p1824_p5), %s161_s11, 6 }
  0x21   : > { %s2166_s0 = sld [smem:[#allocation7_spill]] (%p1824_p5)  ;;  %s163_s23 = scalar_lea.vmem (%p1824_p5), [#allocation3], %s1356_s27 }
  0x27   : > { %s169_s5 = scalar_lea.vmem %s2166_s0, %s1448_s26 }
  0x28   : > { %v182_v0 = vld [vmem:[%s169_s5] sm:$0xff]  ;;  %v184_v1 = vld [vmem:[%s169_s5 + $0x8] sm:$0xff] }
  0x29   : > { %v186_v2 = vld [vmem:[%s169_s5 + $0x80] sm:$0xff]  ;;  %183 = vst [vmem:[%s163_s23] sm:$0xff] %v182_v0  ;;  %185 = vst [vmem:[%s163_s23 + $0x8] sm:$0xff] %v184_v1  ;;  %v188_v3 = vld [vmem:[%s169_s5 + $0x88] sm:$0xff] }
  0x2a   : > { %187 = vst [vmem:[%s163_s23 + $0x10] sm:$0xff] %v186_v2  ;;  %v190_v4 = vld [vmem:[%s169_s5 + $0x100] sm:$0xff]  ;;  %v192_v5 = vld [vmem:[%s169_s5 + $0x108] sm:$0xff]  ;;  %189 = vst [vmem:[%s163_s23 + $0x18] sm:$0xff] %v188_v3 }
  0x2b   : > { %191 = vst [vmem:[%s163_s23 + $0x20] sm:$0xff] %v190_v4  ;;  %193 = vst [vmem:[%s163_s23 + $0x28] sm:$0xff] %v192_v5  ;;  %v194_v6 = vld [vmem:[%s169_s5 + $0x180] sm:$0xff]  ;;  %v196_v7 = vld [vmem:[%s169_s5 + $0x188] sm:$0xff] }
  0x2c   : > { %195 = vst [vmem:[%s163_s23 + $0x30] sm:$0xff] %v194_v6  ;;  %197 = vst [vmem:[%s163_s23 + $0x38] sm:$0xff] %v196_v7 }
  0x2d PF: > { %203 = sbr.rel (!%p1838_p9) target bundleno = 87 (0x57), region = 43  ;;  %s205_s28 = sand.u32 (%p1838_p9), 1, %s1706_s15  }
  0x2e   : > { %s1361_s7 = sshll.u32 (%p1838_p9), %s1730_s21, 1  ;;  %s1359_s11 = sshll.u32 (%p1838_p9), %s205_s28, 9 }
  0x2f   : > { %s1449_s26 = sshll.u32 (%p1838_p9), %s1726_s20, 8  ;;  %s2167_s1 = sld [smem:[#allocation8_spill]] (%p1838_p9) }
  0x30   : > { %s211_s27 = sadd.s32 (%p1838_p9), %s1449_s26, %s1361_s7  ;;  %s1876_s6 = scalar_lea.vmem (%p1838_p9), [#allocation4], %s1359_s11 }
  0x31   : > { %s1363_s29 = sshll.u32 (%p1838_p9), %s211_s27, 2 }
  0x35   : > { %s1871_s25 = scalar_lea.vmem %s2167_s1, %s1363_s29 }
  0x36   : > { %v368_v8 = vld [vmem:[%s1871_s25] sm:$0xff]  ;;  %v370_v9 = vld [vmem:[%s1871_s25 + $0x10] sm:$0xff] }
  0x37   : > { %v372_v10 = vld [vmem:[%s1871_s25 + $0x20] sm:$0xff]  ;;  %369 = vst [vmem:[%s1876_s6] sm:$0xff] %v368_v8  ;;  %371 = vst [vmem:[%s1876_s6 + $0x8] sm:$0xff] %v370_v9  ;;  %v374_v11 = vld [vmem:[%s1871_s25 + $0x30] sm:$0xff] }
  0x38   : > { %373 = vst [vmem:[%s1876_s6 + $0x10] sm:$0xff] %v372_v10  ;;  %v376_v12 = vld [vmem:[%s1871_s25 + $0x40] sm:$0xff]  ;;  %v378_v13 = vld [vmem:[%s1871_s25 + $0x50] sm:$0xff]  ;;  %375 = vst [vmem:[%s1876_s6 + $0x18] sm:$0xff] %v374_v11 }
  0x39   : > { %377 = vst [vmem:[%s1876_s6 + $0x20] sm:$0xff] %v376_v12  ;;  %379 = vst [vmem:[%s1876_s6 + $0x28] sm:$0xff] %v378_v13  ;;  %v380_v14 = vld [vmem:[%s1871_s25 + $0x60] sm:$0xff]  ;;  %v382_v15 = vld [vmem:[%s1871_s25 + $0x70] sm:$0xff] }
  0x3a   : > { %v384_v16 = vld [vmem:[%s1871_s25 + $0x80] sm:$0xff]  ;;  %381 = vst [vmem:[%s1876_s6 + $0x30] sm:$0xff] %v380_v14  ;;  %383 = vst [vmem:[%s1876_s6 + $0x38] sm:$0xff] %v382_v15  ;;  %v386_v17 = vld [vmem:[%s1871_s25 + $0x90] sm:$0xff] }
  0x3b   : > { %385 = vst [vmem:[%s1876_s6 + $0x40] sm:$0xff] %v384_v16  ;;  %v388_v18 = vld [vmem:[%s1871_s25 + $0xa0] sm:$0xff]  ;;  %v390_v19 = vld [vmem:[%s1871_s25 + $0xb0] sm:$0xff]  ;;  %387 = vst [vmem:[%s1876_s6 + $0x48] sm:$0xff] %v386_v17 }
  0x3c   : > { %389 = vst [vmem:[%s1876_s6 + $0x50] sm:$0xff] %v388_v18  ;;  %391 = vst [vmem:[%s1876_s6 + $0x58] sm:$0xff] %v390_v19  ;;  %v392_v20 = vld [vmem:[%s1871_s25 + $0xc0] sm:$0xff]  ;;  %v394_v21 = vld [vmem:[%s1871_s25 + $0xd0] sm:$0xff] }
  0x3d   : > { %v396_v22 = vld [vmem:[%s1871_s25 + $0xe0] sm:$0xff]  ;;  %393 = vst [vmem:[%s1876_s6 + $0x60] sm:$0xff] %v392_v20  ;;  %395 = vst [vmem:[%s1876_s6 + $0x68] sm:$0xff] %v394_v21  ;;  %v398_v23 = vld [vmem:[%s1871_s25 + $0xf0] sm:$0xff] }
  0x3e   : > { %397 = vst [vmem:[%s1876_s6 + $0x70] sm:$0xff] %v396_v22  ;;  %v400_v24 = vld [vmem:[%s1871_s25 + $0x100] sm:$0xff]  ;;  %v402_v25 = vld [vmem:[%s1871_s25 + $0x110] sm:$0xff]  ;;  %399 = vst [vmem:[%s1876_s6 + $0x78] sm:$0xff] %v398_v23 }
  0x3f   : > { %401 = vst [vmem:[%s1876_s6 + $0x80] sm:$0xff] %v400_v24  ;;  %403 = vst [vmem:[%s1876_s6 + $0x88] sm:$0xff] %v402_v25  ;;  %v404_v26 = vld [vmem:[%s1871_s25 + $0x120] sm:$0xff]  ;;  %v406_v27 = vld [vmem:[%s1871_s25 + $0x130] sm:$0xff] }
  0x40   : > { %v408_v28 = vld [vmem:[%s1871_s25 + $0x140] sm:$0xff]  ;;  %405 = vst [vmem:[%s1876_s6 + $0x90] sm:$0xff] %v404_v26  ;;  %407 = vst [vmem:[%s1876_s6 + $0x98] sm:$0xff] %v406_v27  ;;  %v410_v29 = vld [vmem:[%s1871_s25 + $0x150] sm:$0xff] }
  0x41   : > { %409 = vst [vmem:[%s1876_s6 + $0xa0] sm:$0xff] %v408_v28  ;;  %v412_v30 = vld [vmem:[%s1871_s25 + $0x160] sm:$0xff]  ;;  %v414_v31 = vld [vmem:[%s1871_s25 + $0x170] sm:$0xff]  ;;  %411 = vst [vmem:[%s1876_s6 + $0xa8] sm:$0xff] %v410_v29 }
  0x42   : > { %413 = vst [vmem:[%s1876_s6 + $0xb0] sm:$0xff] %v412_v30  ;;  %415 = vst [vmem:[%s1876_s6 + $0xb8] sm:$0xff] %v414_v31  ;;  %v416_v32 = vld [vmem:[%s1871_s25 + $0x180] sm:$0xff]  ;;  %v418_v33 = vld [vmem:[%s1871_s25 + $0x190] sm:$0xff] }
  0x43   : > { %v420_v34 = vld [vmem:[%s1871_s25 + $0x1a0] sm:$0xff]  ;;  %417 = vst [vmem:[%s1876_s6 + $0xc0] sm:$0xff] %v416_v32  ;;  %419 = vst [vmem:[%s1876_s6 + $0xc8] sm:$0xff] %v418_v33  ;;  %v422_v35 = vld [vmem:[%s1871_s25 + $0x1b0] sm:$0xff] }
  0x44   : > { %421 = vst [vmem:[%s1876_s6 + $0xd0] sm:$0xff] %v420_v34  ;;  %v424_v36 = vld [vmem:[%s1871_s25 + $0x1c0] sm:$0xff]  ;;  %v426_v37 = vld [vmem:[%s1871_s25 + $0x1d0] sm:$0xff]  ;;  %423 = vst [vmem:[%s1876_s6 + $0xd8] sm:$0xff] %v422_v35 }
  0x45   : > { %425 = vst [vmem:[%s1876_s6 + $0xe0] sm:$0xff] %v424_v36  ;;  %427 = vst [vmem:[%s1876_s6 + $0xe8] sm:$0xff] %v426_v37  ;;  %v428_v38 = vld [vmem:[%s1871_s25 + $0x1e0] sm:$0xff]  ;;  %v430_v39 = vld [vmem:[%s1871_s25 + $0x1f0] sm:$0xff] }
  0x46   : > { %v432_v40 = vld [vmem:[%s1871_s25 + $0x200] sm:$0xff]  ;;  %429 = vst [vmem:[%s1876_s6 + $0xf0] sm:$0xff] %v428_v38  ;;  %431 = vst [vmem:[%s1876_s6 + $0xf8] sm:$0xff] %v430_v39  ;;  %v434_v41 = vld [vmem:[%s1871_s25 + $0x210] sm:$0xff] }
  0x47   : > { %433 = vst [vmem:[%s1876_s6 + $0x100] sm:$0xff] %v432_v40  ;;  %v436_v42 = vld [vmem:[%s1871_s25 + $0x220] sm:$0xff]  ;;  %v438_v43 = vld [vmem:[%s1871_s25 + $0x230] sm:$0xff]  ;;  %435 = vst [vmem:[%s1876_s6 + $0x108] sm:$0xff] %v434_v41 }
  0x48   : > { %437 = vst [vmem:[%s1876_s6 + $0x110] sm:$0xff] %v436_v42  ;;  %439 = vst [vmem:[%s1876_s6 + $0x118] sm:$0xff] %v438_v43  ;;  %v440_v44 = vld [vmem:[%s1871_s25 + $0x240] sm:$0xff]  ;;  %v442_v45 = vld [vmem:[%s1871_s25 + $0x250] sm:$0xff] }
  0x49   : > { %v444_v46 = vld [vmem:[%s1871_s25 + $0x260] sm:$0xff]  ;;  %441 = vst [vmem:[%s1876_s6 + $0x120] sm:$0xff] %v440_v44  ;;  %443 = vst [vmem:[%s1876_s6 + $0x128] sm:$0xff] %v442_v45  ;;  %v446_v47 = vld [vmem:[%s1871_s25 + $0x270] sm:$0xff] }
  0x4a   : > { %445 = vst [vmem:[%s1876_s6 + $0x130] sm:$0xff] %v444_v46  ;;  %v448_v48 = vld [vmem:[%s1871_s25 + $0x280] sm:$0xff]  ;;  %v450_v49 = vld [vmem:[%s1871_s25 + $0x290] sm:$0xff]  ;;  %447 = vst [vmem:[%s1876_s6 + $0x138] sm:$0xff] %v446_v47 }
  0x4b   : > { %449 = vst [vmem:[%s1876_s6 + $0x140] sm:$0xff] %v448_v48  ;;  %451 = vst [vmem:[%s1876_s6 + $0x148] sm:$0xff] %v450_v49  ;;  %v452_v50 = vld [vmem:[%s1871_s25 + $0x2a0] sm:$0xff]  ;;  %v454_v51 = vld [vmem:[%s1871_s25 + $0x2b0] sm:$0xff] }
  0x4c   : > { %v456_v52 = vld [vmem:[%s1871_s25 + $0x2c0] sm:$0xff]  ;;  %453 = vst [vmem:[%s1876_s6 + $0x150] sm:$0xff] %v452_v50  ;;  %455 = vst [vmem:[%s1876_s6 + $0x158] sm:$0xff] %v454_v51  ;;  %v458_v53 = vld [vmem:[%s1871_s25 + $0x2d0] sm:$0xff] }
  0x4d   : > { %457 = vst [vmem:[%s1876_s6 + $0x160] sm:$0xff] %v456_v52  ;;  %v460_v54 = vld [vmem:[%s1871_s25 + $0x2e0] sm:$0xff]  ;;  %v462_v55 = vld [vmem:[%s1871_s25 + $0x2f0] sm:$0xff]  ;;  %459 = vst [vmem:[%s1876_s6 + $0x168] sm:$0xff] %v458_v53 }
  0x4e   : > { %461 = vst [vmem:[%s1876_s6 + $0x170] sm:$0xff] %v460_v54  ;;  %463 = vst [vmem:[%s1876_s6 + $0x178] sm:$0xff] %v462_v55  ;;  %v464_v56 = vld [vmem:[%s1871_s25 + $0x300] sm:$0xff]  ;;  %v466_v57 = vld [vmem:[%s1871_s25 + $0x310] sm:$0xff] }
  0x4f   : > { %v468_v58 = vld [vmem:[%s1871_s25 + $0x320] sm:$0xff]  ;;  %465 = vst [vmem:[%s1876_s6 + $0x180] sm:$0xff] %v464_v56  ;;  %467 = vst [vmem:[%s1876_s6 + $0x188] sm:$0xff] %v466_v57  ;;  %v470_v59 = vld [vmem:[%s1871_s25 + $0x330] sm:$0xff] }
  0x50   : > { %469 = vst [vmem:[%s1876_s6 + $0x190] sm:$0xff] %v468_v58  ;;  %v472_v60 = vld [vmem:[%s1871_s25 + $0x340] sm:$0xff]  ;;  %v474_v61 = vld [vmem:[%s1871_s25 + $0x350] sm:$0xff]  ;;  %471 = vst [vmem:[%s1876_s6 + $0x198] sm:$0xff] %v470_v59 }
  0x51   : > { %473 = vst [vmem:[%s1876_s6 + $0x1a0] sm:$0xff] %v472_v60  ;;  %475 = vst [vmem:[%s1876_s6 + $0x1a8] sm:$0xff] %v474_v61  ;;  %v476_v62 = vld [vmem:[%s1871_s25 + $0x360] sm:$0xff]  ;;  %v478_v63 = vld [vmem:[%s1871_s25 + $0x370] sm:$0xff] }
  0x52   : > { %v480_v0 = vld [vmem:[%s1871_s25 + $0x380] sm:$0xff]  ;;  %477 = vst [vmem:[%s1876_s6 + $0x1b0] sm:$0xff] %v476_v62  ;;  %479 = vst [vmem:[%s1876_s6 + $0x1b8] sm:$0xff] %v478_v63  ;;  %v482_v1 = vld [vmem:[%s1871_s25 + $0x390] sm:$0xff] }
  0x53   : > { %481 = vst [vmem:[%s1876_s6 + $0x1c0] sm:$0xff] %v480_v0  ;;  %v484_v2 = vld [vmem:[%s1871_s25 + $0x3a0] sm:$0xff]  ;;  %v486_v3 = vld [vmem:[%s1871_s25 + $0x3b0] sm:$0xff]  ;;  %483 = vst [vmem:[%s1876_s6 + $0x1c8] sm:$0xff] %v482_v1 }
  0x54   : > { %485 = vst [vmem:[%s1876_s6 + $0x1d0] sm:$0xff] %v484_v2  ;;  %487 = vst [vmem:[%s1876_s6 + $0x1d8] sm:$0xff] %v486_v3  ;;  %v488_v4 = vld [vmem:[%s1871_s25 + $0x3c0] sm:$0xff]  ;;  %v490_v5 = vld [vmem:[%s1871_s25 + $0x3d0] sm:$0xff] }
  0x55   : > { %v492_v6 = vld [vmem:[%s1871_s25 + $0x3e0] sm:$0xff]  ;;  %489 = vst [vmem:[%s1876_s6 + $0x1e0] sm:$0xff] %v488_v4  ;;  %491 = vst [vmem:[%s1876_s6 + $0x1e8] sm:$0xff] %v490_v5  ;;  %v494_v7 = vld [vmem:[%s1871_s25 + $0x3f0] sm:$0xff] }
  0x56   : > { %493 = vst [vmem:[%s1876_s6 + $0x1f0] sm:$0xff] %v492_v6  ;;  %495 = vst [vmem:[%s1876_s6 + $0x1f8] sm:$0xff] %v494_v7 }
  0x57 PF: > { %p1364_p0 = scmp.ge.s32.totalorder %s1734_s22, 1  ;;  %p508_p1 = scmp.lt.s32.totalorder %s1734_s22, 17 }
  0x59   : > { %p509_p2 = pnand %p1364_p0, %p508_p1 }
  0x5a   : > { %s515_s0 = sand.u32 (!%p509_p2), 1, %s1710_s16   ;;  %s522_s5 = sand.u32 (!%p509_p2), 1, %s1702_s14  }
  0x5b   : > { %512 = sbr.rel (%p509_p2) target bundleno = 413 (0x19d), region = 85  ;;  %s1365_s23 = sshll.u32 (!%p509_p2), %s515_s0, 6 }
  0x5c   : > { %s1366_s28 = sshll.u32 (!%p509_p2), %s522_s5, 9  ;;  %s549_s7 = sand.u32 (!%p509_p2), 1, %s1694_s12  }
  0x5d   : > { %s1368_s11 = sshll.u32 (!%p509_p2), %s1722_s19, 1  ;;  %s1367_s25 = sshll.u32 (!%p509_p2), %s549_s7, 6 }
  0x5e   : > { %p557_p3 = scmp.lt.s32.totalorder (!%p509_p2), %s1368_s11, 3  ;;  %s2015_s4 = scalar_lea.vmem (!%p509_p2), [#allocation3], %s1365_s23 }
  0x5f   : > { %s2017_s6 = scalar_lea.vmem (!%p509_p2), [#allocation4], %s1366_s28  ;;  %s2019_s1 = scalar_lea.vmem (!%p509_p2), [#allocation5], %s1367_s25 }
  0x60   : > { %s2186_s11 = smov (!%p557_p3, %s1368_s11), 3  ;;  %p1369_p4 = scmp.ne.s32.totalorder %s1718_s18, 0 }
  0x61   : > { %s559_s29 = scalar_lea.vmem %s2157_s2, %s2186_s11 }
  0x62   : > { %566 = sbr.rel (%p1369_p4) target bundleno = 108 (0x6c), region = 97 }
  0x67   : > { %v1736_v8 = vmov 0.0  }
  0x68   : > { %567 = vst [vmem:[#allocation2 + $0x30] sm:$0xff] %v1736_v8  ;;  %568 = vst [vmem:[#allocation2] sm:$0xff] %v1736_v8 }
  0x69   : > { %569 = vst [vmem:[#allocation2 + $0x18] sm:$0xff] %v1736_v8  ;;  %570 = vst [vmem:[#allocation2 + $0x10] sm:$0xff] %v1736_v8 }
  0x6a   : > { %571 = vst [vmem:[#allocation2 + $0x8] sm:$0xff] %v1736_v8  ;;  %572 = vst [vmem:[#allocation2 + $0x20] sm:$0xff] %v1736_v8 }
  0x6b   : > { %573 = vst [vmem:[#allocation2 + $0x28] sm:$0xff] %v1736_v8  ;;  %574 = vst [vmem:[#allocation2 + $0x38] sm:$0xff] %v1736_v8 }
  0x6c PF: > { %v1540_v9 = vld [vmem:[%s2017_s6 + $0x74] ss:$8 sps:$4 sm:$0xff]   ;;  %v1544_v11 = vld [vmem:[%s2017_s6 + $0x70] ss:$8 sps:$4 sm:$0xff]   ;;  %v1546_v13 = vld [vmem:[%s2017_s6 + $0x64] ss:$8 sps:$4 sm:$0xff]  }
  0x6d   : > { %v1542_v10 = vld [vmem:[%s2017_s6 + $0x174] ss:$8 sps:$4 sm:$0xff]   ;;  %1015 = vmatprep.subr.bf16.mxu0 %v1540_v9  ;;  %v1545_v12 = vld [vmem:[%s2017_s6 + $0x170] ss:$8 sps:$4 sm:$0xff]   ;;  %v1548_v14 = vld [vmem:[%s2017_s6 + $0x164] ss:$8 sps:$4 sm:$0xff]  }
  0x6e   : > { %1068 = vmatprep.subr.bf16.mxu1 %v1542_v10  ;;  %1016 = vmatpush1.bf16.msra.mxu0 %v1544_v11  ;;  %v1550_v15 = vld [vmem:[%s2017_s6 + $0x60] ss:$8 sps:$4 sm:$0xff]   ;;  %v1552_v17 = vld [vmem:[%s2017_s6 + $0x54] ss:$8 sps:$4 sm:$0xff]   ;;  %v1556_v19 = vld [vmem:[%s2017_s6 + $0x50] ss:$8 sps:$4 sm:$0xff]  }
  0x6f   : > { %1069 = vmatpush1.bf16.msra.mxu1 %v1545_v12  ;;  %1017 = vmatprep.subr.bf16.mxu0 %v1546_v13  ;;  %v1551_v16 = vld [vmem:[%s2017_s6 + $0x160] ss:$8 sps:$4 sm:$0xff]   ;;  %v1554_v18 = vld [vmem:[%s2017_s6 + $0x154] ss:$8 sps:$4 sm:$0xff]   ;;  %v1557_v20 = vld [vmem:[%s2017_s6 + $0x150] ss:$8 sps:$4 sm:$0xff]  }
  0x70   : > { %1070 = vmatprep.subr.bf16.mxu1 %v1548_v14  ;;  %v1558_v21 = vld [vmem:[%s2017_s6 + $0x44] ss:$8 sps:$4 sm:$0xff]   ;;  %v1562_v23 = vld [vmem:[%s2017_s6 + $0x40] ss:$8 sps:$4 sm:$0xff]   ;;  %v1564_v25 = vld [vmem:[%s2017_s6 + $0x34] ss:$8 sps:$4 sm:$0xff]  }
  0x71   : > { %v1560_v22 = vld [vmem:[%s2017_s6 + $0x144] ss:$8 sps:$4 sm:$0xff]   ;;  %v1563_v24 = vld [vmem:[%s2017_s6 + $0x140] ss:$8 sps:$4 sm:$0xff]   ;;  %v1566_v26 = vld [vmem:[%s2017_s6 + $0x134] ss:$8 sps:$4 sm:$0xff]  }
  0x72   : > { %1018 = vmatpush1.bf16.msra.mxu0 %v1550_v15  ;;  %v1568_v27 = vld [vmem:[%s2017_s6 + $0x30] ss:$8 sps:$4 sm:$0xff]   ;;  %v1570_v29 = vld [vmem:[%s2017_s6 + $0x24] ss:$8 sps:$4 sm:$0xff]   ;;  %v1574_v31 = vld [vmem:[%s2017_s6 + $0x20] ss:$8 sps:$4 sm:$0xff]  }
  0x73   : > { %1071 = vmatpush1.bf16.msra.mxu1 %v1551_v16  ;;  %1019 = vmatprep.subr.bf16.mxu0 %v1552_v17  ;;  %v1569_v28 = vld [vmem:[%s2017_s6 + $0x130] ss:$8 sps:$4 sm:$0xff]   ;;  %v1572_v30 = vld [vmem:[%s2017_s6 + $0x124] ss:$8 sps:$4 sm:$0xff]   ;;  %v1575_v32 = vld [vmem:[%s2017_s6 + $0x120] ss:$8 sps:$4 sm:$0xff]  }
  0x74   : > { %1072 = vmatprep.subr.bf16.mxu1 %v1554_v18  ;;  %v1576_v33 = vld [vmem:[%s2017_s6 + $0x14] ss:$8 sps:$4 sm:$0xff]   ;;  %v1580_v35 = vld [vmem:[%s2017_s6 + $0x10] ss:$8 sps:$4 sm:$0xff]   ;;  %v1582_v37 = vld [vmem:[%s2017_s6 + $0x4] ss:$8 sps:$4 sm:$0xff]  }
  0x75   : > { %v1578_v34 = vld [vmem:[%s2017_s6 + $0x114] ss:$8 sps:$4 sm:$0xff]   ;;  %v1581_v36 = vld [vmem:[%s2017_s6 + $0x110] ss:$8 sps:$4 sm:$0xff]   ;;  %v1584_v38 = vld [vmem:[%s2017_s6 + $0x104] ss:$8 sps:$4 sm:$0xff]  }
  0x76   : > { %1020 = vmatpush1.bf16.msra.mxu0 %v1556_v19  ;;  %v1586_v39 = vld [vmem:[%s2017_s6] ss:$8 sps:$4 sm:$0xff]   ;;  %v1588_v41 = vld [vmem:[%s2017_s6 + $0xf4] ss:$8 sps:$4 sm:$0xff]   ;;  %v1592_v43 = vld [vmem:[%s2017_s6 + $0xf0] ss:$8 sps:$4 sm:$0xff]  }
  0x77   : > { %1073 = vmatpush1.bf16.msra.mxu1 %v1557_v20  ;;  %1021 = vmatprep.subr.bf16.mxu0 %v1558_v21  ;;  %v1587_v40 = vld [vmem:[%s2017_s6 + $0x100] ss:$8 sps:$4 sm:$0xff]   ;;  %v1590_v42 = vld [vmem:[%s2017_s6 + $0x1f4] ss:$8 sps:$4 sm:$0xff]   ;;  %v1593_v44 = vld [vmem:[%s2017_s6 + $0x1f0] ss:$8 sps:$4 sm:$0xff]  }
  0x78   : > { %1074 = vmatprep.subr.bf16.mxu1 %v1560_v22  ;;  %v1594_v45 = vld [vmem:[%s2017_s6 + $0xe4] ss:$8 sps:$4 sm:$0xff]   ;;  %v1598_v47 = vld [vmem:[%s2017_s6 + $0xe0] ss:$8 sps:$4 sm:$0xff]   ;;  %v1600_v49 = vld [vmem:[%s2017_s6 + $0xd4] ss:$8 sps:$4 sm:$0xff]  }
  0x79   : > { %v1596_v46 = vld [vmem:[%s2017_s6 + $0x1e4] ss:$8 sps:$4 sm:$0xff]   ;;  %v1599_v48 = vld [vmem:[%s2017_s6 + $0x1e0] ss:$8 sps:$4 sm:$0xff]   ;;  %v1602_v50 = vld [vmem:[%s2017_s6 + $0x1d4] ss:$8 sps:$4 sm:$0xff]  }
  0x7a   : > { %1022 = vmatpush1.bf16.msra.mxu0 %v1562_v23  ;;  %v1604_v51 = vld [vmem:[%s2017_s6 + $0xd0] ss:$8 sps:$4 sm:$0xff]   ;;  %v1606_v53 = vld [vmem:[%s2017_s6 + $0xc4] ss:$8 sps:$4 sm:$0xff]   ;;  %v1610_v55 = vld [vmem:[%s2017_s6 + $0xc0] ss:$8 sps:$4 sm:$0xff]  }
  0x7b   : > { %1075 = vmatpush1.bf16.msra.mxu1 %v1563_v24  ;;  %1023 = vmatprep.subr.bf16.mxu0 %v1564_v25  ;;  %v1605_v52 = vld [vmem:[%s2017_s6 + $0x1d0] ss:$8 sps:$4 sm:$0xff]   ;;  %v1608_v54 = vld [vmem:[%s2017_s6 + $0x1c4] ss:$8 sps:$4 sm:$0xff]   ;;  %v1611_v56 = vld [vmem:[%s2017_s6 + $0x1c0] ss:$8 sps:$4 sm:$0xff]  }
  0x7c   : > { %1076 = vmatprep.subr.bf16.mxu1 %v1566_v26  ;;  %v1612_v57 = vld [vmem:[%s2017_s6 + $0xb4] ss:$8 sps:$4 sm:$0xff]   ;;  %v1616_v61 = vld [vmem:[%s2017_s6 + $0xb0] ss:$8 sps:$4 sm:$0xff]   ;;  %v1618_v63 = vld [vmem:[%s2017_s6 + $0xa4] ss:$8 sps:$4 sm:$0xff]  }
  0x7d   : > { %v1638_v58 = vld [vmem:[%s2015_s4 + $0x4] ss:$16 sps:$4 sm:$0xff]   ;;  %v1641_v60 = vld [vmem:[%s2015_s4 + $0xc] ss:$16 sps:$4 sm:$0xff]   ;;  %v1617_v62 = vld [vmem:[%s2017_s6 + $0x1b0] ss:$8 sps:$4 sm:$0xff]  }
  0x7e   : > { %1024 = vmatpush1.bf16.msra.mxu0 %v1568_v27  ;;  %v1614_v59 = vld [vmem:[%s2017_s6 + $0x1b4] ss:$8 sps:$4 sm:$0xff]   ;;  %1047 = vmatprep.mubr.bf16.mxu0 %v1638_v58  ;;  %v1620_v0 = vld [vmem:[%s2017_s6 + $0x1a4] ss:$8 sps:$4 sm:$0xff]   ;;  %v1622_v1 = vld [vmem:[%s2017_s6 + $0xa0] ss:$8 sps:$4 sm:$0xff]  }
  0x7f   : > { %1077 = vmatpush1.bf16.msra.mxu1 %v1569_v28  ;;  %1025 = vmatprep.subr.bf16.mxu0 %v1570_v29  ;;  %v1623_v2 = vld [vmem:[%s2017_s6 + $0x1a0] ss:$8 sps:$4 sm:$0xff]   ;;  %v1624_v3 = vld [vmem:[%s2017_s6 + $0x94] ss:$8 sps:$4 sm:$0xff]   ;;  %v1628_v5 = vld [vmem:[%s2017_s6 + $0x90] ss:$8 sps:$4 sm:$0xff]  }
  0x80   : > { %1078 = vmatprep.subr.bf16.mxu1 %v1572_v30  ;;  %1100 = vmatprep.mubr.bf16.mxu1 %v1641_v60  ;;  %v1626_v4 = vld [vmem:[%s2017_s6 + $0x194] ss:$8 sps:$4 sm:$0xff]   ;;  %v1629_v6 = vld [vmem:[%s2017_s6 + $0x190] ss:$8 sps:$4 sm:$0xff]   ;;  %v1630_v7 = vld [vmem:[%s2017_s6 + $0x84] ss:$8 sps:$4 sm:$0xff]  }
  0x81   : > { %v1632_v8 = vld [vmem:[%s2017_s6 + $0x184] ss:$8 sps:$4 sm:$0xff]   ;;  %v1634_v9 = vld [vmem:[%s2017_s6 + $0x80] ss:$8 sps:$4 sm:$0xff]   ;;  %v575_v18 = vld [vmem:[#allocation2 + $0x30] sm:$0xff]  ;;  %p1442_p5 = scmp.ne.s32.totalorder %s1718_s18, 7 }
  0x82   : > { %1026 = vmatpush1.bf16.msra.mxu0 %v1574_v31  ;;  %v1635_v10 = vld [vmem:[%s2017_s6 + $0x180] ss:$8 sps:$4 sm:$0xff]   ;;  %v1642_v13 = vld [vmem:[%s2015_s4 + $0x24] ss:$16 sps:$4 sm:$0xff]   ;;  %v1644_v14 = vld [vmem:[%s2015_s4 + $0x2c] ss:$16 sps:$4 sm:$0xff]  }
  0x83   : > { %1079 = vmatpush1.bf16.msra.mxu1 %v1575_v32  ;;  %1027 = vmatprep.subr.bf16.mxu0 %v1576_v33  ;;  %v1636_v11 = vld [vmem:[%s2015_s4] ss:$16 sps:$4 sm:$0xff]   ;;  %v1639_v12 = vld [vmem:[%s2015_s4 + $0x8] ss:$16 sps:$4 sm:$0xff]  }
  0x84   : > { %1080 = vmatprep.subr.bf16.mxu1 %v1578_v34  ;;  %v1646_v15 = vld [vmem:[%s2015_s4 + $0x20] ss:$16 sps:$4 sm:$0xff]   ;;  %v1647_v16 = vld [vmem:[%s2015_s4 + $0x28] ss:$16 sps:$4 sm:$0xff]  }
  0x85   : > { %v576_v22 = vld [vmem:[#allocation2] sm:$0xff]  ;;  %v577_v27 = vld [vmem:[#allocation2 + $0x18] sm:$0xff]  ;;  %v578_v32 = vld [vmem:[#allocation2 + $0x10] sm:$0xff] }
  0x86   : > { %1028 = vmatpush1.bf16.msra.mxu0 %v1580_v35 }
  0x87   : > { %1081 = vmatpush1.bf16.msra.mxu1 %v1581_v36  ;;  %1029 = vmatprep.subr.bf16.mxu0 %v1582_v37  ;;  %v579_v37 = vld [vmem:[#allocation2 + $0x8] sm:$0xff] }
  0x88   : > { %1082 = vmatprep.subr.bf16.mxu1 %v1584_v38 }
  0x8a   : > { %1030 = vmatpush1.bf16.msra.mxu0 %v1586_v39 }
  0x8b   : > { %1083 = vmatpush1.bf16.msra.mxu1 %v1587_v40  ;;  %1031 = vmatprep.subr.bf16.mxu0 %v1588_v41 }
  0x8c   : > { %1084 = vmatprep.subr.bf16.mxu1 %v1590_v42  ;;  %v580_v42 = vld [vmem:[#allocation2 + $0x20] sm:$0xff] }
  0x8e   : > { %1032 = vmatpush2.bf16.msra.mxu0 %v1592_v43 }
  0x8f   : > { %1085 = vmatpush2.bf16.msra.mxu1 %v1593_v44  ;;  %1033 = vmatprep.subr.bf16.mxu0 %v1594_v45 }
  0x90   : > { %1086 = vmatprep.subr.bf16.mxu1 %v1596_v46 }
  0x92   : > { %1034 = vmatpush2.bf16.msra.mxu0 %v1598_v47  ;;  %v581_v47 = vld [vmem:[#allocation2 + $0x28] sm:$0xff] }
  0x93   : > { %1087 = vmatpush2.bf16.msra.mxu1 %v1599_v48  ;;  %1035 = vmatprep.subr.bf16.mxu0 %v1600_v49 }
  0x94   : > { %1088 = vmatprep.subr.bf16.mxu1 %v1602_v50 }
  0x96   : > { %1036 = vmatpush2.bf16.msra.mxu0 %v1604_v51 }
  0x97   : > { %1089 = vmatpush2.bf16.msra.mxu1 %v1605_v52  ;;  %1037 = vmatprep.subr.bf16.mxu0 %v1606_v53  ;;  %v582_v52 = vld [vmem:[#allocation2 + $0x38] sm:$0xff] }
  0x98   : > { %1090 = vmatprep.subr.bf16.mxu1 %v1608_v54 }
  0x9a   : > { %1038 = vmatpush2.bf16.msra.mxu0 %v1610_v55 }
  0x9b   : > { %1091 = vmatpush2.bf16.msra.mxu1 %v1611_v56  ;;  %1039 = vmatprep.subr.bf16.mxu0 %v1612_v57 }
  0x9c   : > { %1092 = vmatprep.subr.bf16.mxu1 %v1614_v59 }
  0x9e   : > { %1040 = vmatpush2.bf16.msra.mxu0 %v1616_v61 }
  0x9f   : > { %1093 = vmatpush2.bf16.msra.mxu1 %v1617_v62  ;;  %1041 = vmatprep.subr.bf16.mxu0 %v1618_v63 }
  0xa0   : > { %1094 = vmatprep.subr.bf16.mxu1 %v1620_v0 }
  0xa2   : > { %1042 = vmatpush2.bf16.msra.mxu0 %v1622_v1 }
  0xa3   : > { %1095 = vmatpush2.bf16.msra.mxu1 %v1623_v2  ;;  %1043 = vmatprep.subr.bf16.mxu0 %v1624_v3 }
  0xa4   : > { %1096 = vmatprep.subr.bf16.mxu1 %v1626_v4 }
  0xa6   : > { %1044 = vmatpush2.bf16.msra.mxu0 %v1628_v5 }
  0xa7   : > { %1097 = vmatpush2.bf16.msra.mxu1 %v1629_v6  ;;  %1045 = vmatprep.subr.bf16.mxu0 %v1630_v7 }
  0xa8   : > { %1098 = vmatprep.subr.bf16.mxu1 %v1632_v8 }
  0xaa   : > { %1046 = vmatpush2.bf16.msra.mxu0 %v1634_v9 }
  0xab   : > { %1099 = vmatpush2.bf16.msra.mxu1 %v1635_v10 }
  0xad   : > { %1048 = vmatmul.mubr.bf16.vlgmr.msra.gmra.mxu0 %v1636_v11 }
  0xae   : > { %1101 = vmatmul.mubr.bf16.vlgmr.msra.gmra.mxu1 %v1639_v12  ;;  %1057 = vmatprep.mubr.bf16.mxu0 %v1642_v13 }
  0xaf   : > { %1110 = vmatprep.mubr.bf16.mxu1 %v1644_v14 }
  0xb5   : > { %1058 = vmatmul.mubr.bf16.gmra.mxu0 %v1646_v15 }
  0xb6   : > { %1111 = vmatmul.mubr.bf16.gmra.mxu1 %v1647_v16 }
 0x16d   : > { %v1049_v17 = vpop.f32.mrf.mxu0 }
 0x16e   : > { %v1102_v19 = vpop.f32.mrf.mxu1 }
 0x16f   : > { %v1103_v20 = vadd.f32 %v1102_v19, %v1049_v17  ;;  %v1051_v21 = vpop.f32.mrf.mxu0 }
 0x170   : > { %v1104_v23 = vpop.f32.mrf.mxu1 }
 0x171   : > { %v1121_v24 = vadd.f32 %v1103_v20, %v575_v18  ;;  %v1105_v25 = vadd.f32 %v1104_v23, %v1051_v21  ;;  %v1053_v26 = vpop.f32.mrf.mxu0 }
 0x172   : > { %v1106_v28 = vpop.f32.mrf.mxu1 }
 0x173   : > { %1129 = vst [vmem:[#allocation2 + $0x30] sm:$0xff] %v1121_v24  ;;  %v1122_v29 = vadd.f32 %v1105_v25, %v576_v22  ;;  %v1107_v30 = vadd.f32 %v1106_v28, %v1053_v26  ;;  %v1055_v31 = vpop.f32.mrf.mxu0 }
 0x174   : > { %v1108_v33 = vpop.f32.mrf.mxu1 }
 0x175   : > { %1130 = vst [vmem:[#allocation2] sm:$0xff] %v1122_v29  ;;  %v1123_v34 = vadd.f32 %v1107_v30, %v577_v27  ;;  %v1109_v35 = vadd.f32 %v1108_v33, %v1055_v31  ;;  %v1059_v36 = vpop.f32.mrf.mxu0 }
 0x176   : > { %v1112_v38 = vpop.f32.mrf.mxu1 }
 0x177   : > { %1131 = vst [vmem:[#allocation2 + $0x18] sm:$0xff] %v1123_v34  ;;  %v1124_v39 = vadd.f32 %v1109_v35, %v578_v32  ;;  %v1113_v40 = vadd.f32 %v1112_v38, %v1059_v36  ;;  %v1061_v41 = vpop.f32.mrf.mxu0 }
 0x178   : > { %v1114_v43 = vpop.f32.mrf.mxu1 }
 0x179   : > { %1132 = vst [vmem:[#allocation2 + $0x10] sm:$0xff] %v1124_v39  ;;  %v1125_v44 = vadd.f32 %v1113_v40, %v579_v37  ;;  %v1115_v45 = vadd.f32 %v1114_v43, %v1061_v41  ;;  %v1063_v46 = vpop.f32.mrf.mxu0 }
 0x17a   : > { %v1116_v48 = vpop.f32.mrf.mxu1 }
 0x17b   : > { %1133 = vst [vmem:[#allocation2 + $0x8] sm:$0xff] %v1125_v44  ;;  %v1126_v49 = vadd.f32 %v1115_v45, %v580_v42  ;;  %v1117_v50 = vadd.f32 %v1116_v48, %v1063_v46  ;;  %v1065_v51 = vpop.f32.mrf.mxu0 }
 0x17c   : > { %v1118_v53 = vpop.f32.mrf.mxu1 }
 0x17d   : > { %1134 = vst [vmem:[#allocation2 + $0x20] sm:$0xff] %v1126_v49  ;;  %v1127_v54 = vadd.f32 %v1117_v50, %v581_v47  ;;  %v1119_v55 = vadd.f32 %v1118_v53, %v1065_v51  ;;  %1140 = sbr.rel (%p1442_p5) target bundleno = 405 (0x195), region = 101 }
 0x17f   : > { %1135 = vst [vmem:[#allocation2 + $0x28] sm:$0xff] %v1127_v54  ;;  %v1128_v56 = vadd.f32 %v1119_v55, %v582_v52 }
 0x181   : > { %1136 = vst [vmem:[#allocation2 + $0x38] sm:$0xff] %v1128_v56 }
 0x182   : > { %v1151_v57 = vlaneseq  ;;  %v1149_v59 = vld [vmem:[%s559_s29] sm:$0x3]  ;;  %v1141_v60 = vld [vmem:[#allocation2 + $0x30] sm:$0xff]  ;;  %v1143_v0 = vld [vmem:[#allocation2 + $0x18] sm:$0xff] }
 0x183   : > { %v1142_v62 = vld [vmem:[#allocation2] sm:$0xff]  ;;  %v1144_v1 = vld [vmem:[#allocation2 + $0x10] sm:$0xff]  ;;  %v1145_v2 = vld [vmem:[#allocation2 + $0x8] sm:$0xff] }
 0x184   : > { %v1152_v58 = vshrl.u32 %v1151_v57, 7  ;;  %v1146_v5 = vld [vmem:[#allocation2 + $0x20] sm:$0xff] }
 0x186   : > { %v1153_v61 = vsub.s32 0, %v1152_v58  ;;  %v1157_v63 = vsub.s32 1, %v1152_v58  ;;  %v1147_v6 = vld [vmem:[#allocation2 + $0x28] sm:$0xff] }
 0x188   : > { %v1154_v3 = vrot.slane %v1149_v59, %v1153_v61  ;;  %v1158_v4 = vrot.slane %v1149_v59, %v1157_v63  ;;  %v1148_v7 = vld [vmem:[#allocation2 + $0x38] sm:$0xff] }
 0x18a   : > { %v1161_v8 = vadd.f32 %v1154_v3, %v1141_v60  ;;  %v1162_v9 = vadd.f32 %v1158_v4, %v1142_v62  ;;  %v1163_v10 = vadd.f32 %v1154_v3, %v1143_v0  ;;  %v1164_v11 = vadd.f32 %v1158_v4, %v1144_v1 }
 0x18b   : > { %v1165_v12 = vadd.f32 %v1154_v3, %v1145_v2  ;;  %v1166_v13 = vadd.f32 %v1158_v4, %v1146_v5  ;;  %v1167_v14 = vadd.f32 %v1154_v3, %v1147_v6  ;;  %v1168_v15 = vadd.f32 %v1158_v4, %v1148_v7 }
 0x18c   : > { %vm1169_vm0 = vcmp.ge.f32.partialorder %v1161_v8, 0.0  ;;  %v1177_v16 = vmul.f32 0.2, %v1161_v8  ;;  %vm1170_vm1 = vcmp.ge.f32.partialorder %v1162_v9, 0.0  ;;  %v1178_v17 = vmul.f32 0.2, %v1162_v9 }
 0x18d   : > { %vm1171_vm2 = vcmp.ge.f32.partialorder %v1163_v10, 0.0  ;;  %v1179_v18 = vmul.f32 0.2, %v1163_v10  ;;  %vm1172_vm3 = vcmp.ge.f32.partialorder %v1164_v11, 0.0  ;;  %v1180_v19 = vmul.f32 0.2, %v1164_v11 }
 0x18e   : > { %v1185_v20 = vsel %vm1169_vm0, %v1161_v8, %v1177_v16  ;;  %v1186_v21 = vsel %vm1170_vm1, %v1162_v9, %v1178_v17  ;;  %vm1173_vm4 = vcmp.ge.f32.partialorder %v1165_v12, 0.0  ;;  %v1181_v22 = vmul.f32 0.2, %v1165_v12 }
 0x18f   : > { %1193 = vst [vmem:[%s2019_s1] sm:$0xff] %v1185_v20  ;;  %1194 = vst [vmem:[%s2019_s1 + $0x8] sm:$0xff] %v1186_v21  ;;  %v1187_v23 = vsel %vm1171_vm2, %v1163_v10, %v1179_v18  ;;  %v1188_v24 = vsel %vm1172_vm3, %v1164_v11, %v1180_v19  ;;  %vm1174_vm5 = vcmp.ge.f32.partialorder %v1166_v13, 0.0  ;;  %v1182_v25 = vmul.f32 0.2, %v1166_v13 }
 0x190   : > { %1195 = vst [vmem:[%s2019_s1 + $0x10] sm:$0xff] %v1187_v23  ;;  %1196 = vst [vmem:[%s2019_s1 + $0x18] sm:$0xff] %v1188_v24  ;;  %v1189_v26 = vsel %vm1173_vm4, %v1165_v12, %v1181_v22  ;;  %vm1175_vm6 = vcmp.ge.f32.partialorder %v1167_v14, 0.0  ;;  %v1183_v27 = vmul.f32 0.2, %v1167_v14  ;;  %vm1176_vm7 = vcmp.ge.f32.partialorder %v1168_v15, 0.0 }
 0x191   : > { %1197 = vst [vmem:[%s2019_s1 + $0x20] sm:$0xff] %v1189_v26  ;;  %v1190_v28 = vsel %vm1174_vm5, %v1166_v13, %v1182_v25  ;;  %v1184_v29 = vmul.f32 0.2, %v1168_v15 }
 0x192   : > { %1198 = vst [vmem:[%s2019_s1 + $0x28] sm:$0xff] %v1190_v28  ;;  %v1191_v30 = vsel %vm1175_vm6, %v1167_v14, %v1183_v27 }
 0x193   : > { %1199 = vst [vmem:[%s2019_s1 + $0x30] sm:$0xff] %v1191_v30  ;;  %v1192_v31 = vsel %vm1176_vm7, %v1168_v15, %v1184_v29 }
 0x194   : > { %1200 = vst [vmem:[%s2019_s1 + $0x38] sm:$0xff] %v1192_v31 }
 0x195 PF: > { %1207 = sbr.rel (!%p1851_p12) target bundleno = 413 (0x19d), region = 105  ;;  %s1450_s16 = sshll.u32 (%p1851_p12), %s1722_s19, 4 }
 0x196   : > { %v1226_v32 = vld [vmem:[%s2019_s1] sm:$0xff] (%p1851_p12)  ;;  %v1228_v33 = vld [vmem:[%s2019_s1 + $0x8] sm:$0xff] (%p1851_p12)  ;;  %s1213_s5 = scalar_lea.vmem (%p1851_p12), %s2158_s3, %s1450_s16 }
 0x197   : > { %v1230_v34 = vld [vmem:[%s2019_s1 + $0x10] sm:$0xff] (%p1851_p12)  ;;  %v1232_v35 = vld [vmem:[%s2019_s1 + $0x18] sm:$0xff] (%p1851_p12)  ;;  %1227 = vst [vmem:[%s1213_s5] sm:$0xff] (%p1851_p12), %v1226_v32  ;;  %1229 = vst [vmem:[%s1213_s5 + $0x8] sm:$0xff] (%p1851_p12), %v1228_v33 }
 0x198   : > { %v1234_v36 = vld [vmem:[%s2019_s1 + $0x20] sm:$0xff] (%p1851_p12)  ;;  %1231 = vst [vmem:[%s1213_s5 + $0x20] sm:$0xff] (%p1851_p12), %v1230_v34  ;;  %1233 = vst [vmem:[%s1213_s5 + $0x28] sm:$0xff] (%p1851_p12), %v1232_v35 }
 0x199   : > { %v1236_v37 = vld [vmem:[%s2019_s1 + $0x28] sm:$0xff] (%p1851_p12)  ;;  %1235 = vst [vmem:[%s1213_s5 + $0x40] sm:$0xff] (%p1851_p12), %v1234_v36 }
 0x19a   : > { %1237 = vst [vmem:[%s1213_s5 + $0x48] sm:$0xff] %v1236_v37  ;;  %v1238_v38 = vld [vmem:[%s2019_s1 + $0x30] sm:$0xff] }
 0x19b   : > { %v1240_v39 = vld [vmem:[%s2019_s1 + $0x38] sm:$0xff]  ;;  %1239 = vst [vmem:[%s1213_s5 + $0x60] sm:$0xff] %v1238_v38 }
 0x19c   : > { %1241 = vst [vmem:[%s1213_s5 + $0x68] sm:$0xff] %v1240_v39 }
 0x19d PF: > { %s13_s22 = sadd.s32 1, %s1734_s22   ;;  %s2168_s10 = sld [smem:[#allocation6_spill]] }
 0x19e   : > { %p10_p6 = scmp.ge.s32.totalorder %s13_s22, 18   ;;  %s2169_s12 = smov %s1698_s13 }
 0x19f   : > { %s2170_s13 = smov %s1849_s9  ;;  %s2171_s14 = smov %s1706_s15 }
 0x1a0   : > { %s2172_s15 = smov %s1846_s8  ;;  %s2173_s16 = smov %s1714_s17 }
 0x1a1   : > { %s2174_s17 = smov %s1832_s30  ;;  %s2175_s18 = smov %s1726_s20 }
 0x1a2   : > { %s2176_s19 = smov %s1730_s21  ;;  %s2177_s20 = smov %s2180_s24 }
 0x1a3   : > { %s2178_s21 = smov %s2168_s10  ;;  %12 = sbr.rel (!%p10_p6) target bundleno = 9 (0x9), region = 170 }

// kernel: critic_forward.9
= control target key start
LH: loop header
LB: loop body
LE: loop exit
PB: predicated region body
PF: predicated region fallthrough
CT: control target
= control target key end

     0   :  { %s1021_s12 = smov 0   ;;  %s1023_s13 = smov 0   ;;  %s1137_s0 = inlined_call_operand.vmem [shape: bf16[16,8192], index: 0, kind: input, shape index: {}]   ;;  %s1138_s1 = inlined_call_operand.vmem [shape: bf16[8192,128], index: 1, kind: input, shape index: {}]   ;;  %s1139_s2 = inlined_call_operand.vmem [shape: f32[1,128], index: 2, kind: input, shape index: {}]   ;;  %s1140_s3 = inlined_call_operand.vmem [shape: f32[16,128], index: 3, kind: output, shape index: {}]  }
   0x1   :  { %s1025_s14 = smov 0   ;;  %s1027_s15 = smov 0  }
   0x2   :  { %s1029_s16 = smov 0  }
   0x3 LB: > { %s25_s17 = sadd.s32 1, %s994_s15  ;;  %p48_p1 = scmp.ne.s32.totalorder %s986_s13, %s982_s12  ;;  %s998_s16 = sphi %s1029_s16, %s13_s16   ;;  %s994_s15 = sphi %s1027_s15, %s1144_s15   ;;  %s990_s14 = sphi %s1025_s14, %s1143_s14   ;;  %s986_s13 = sphi %s1023_s13, %s1142_s13   ;;  %s982_s12 = sphi %s1021_s12, %s1141_s12  }
   0x4   : > { %p26_p0 = scmp.ge.s32.totalorder %s25_s17, 16  ;;  %p49_p2 = scmp.eq.s32.totalorder %s998_s16, 0 }
   0x5   : > { %s41_s19 = sadd.s32 1, %s986_s13  ;;  %p785_p5 = scmp.ge.s32.totalorder %s998_s16, 16 }
   0x6   : > { %s1146_s17 = smov (%p26_p0, %s25_s17), 0  ;;  %p50_p3 = por %p49_p2, %p48_p1 }
   0x7   : > { %s37_s18 = ssub.s32 %s994_s15, %s1146_s17  ;;  %162 = sbr.rel (%p785_p5) target bundleno = 18 (0x12), region = 20 }
   0x8   : > { %p39_p4 = scmp.eq.s32.totalorder %s37_s18, 0 }
   0xa   : > { %s1056_s20 = scalar_select %p39_p4, %s986_s13, %s41_s19  }
   0xc   : > { %165 = sbr.rel (!%p50_p3) target bundleno = 18 (0x12), region = 24  ;;  %s167_s21 = sand.u32 (%p50_p3), 1, %s986_s13  }
   0xd   : > { %s836_s22 = sshll.u32 (%p50_p3), %s994_s15, 4  ;;  %s786_s23 = sshll.u32 (%p50_p3), %s167_s21, 5 }
   0xe   : > { %s175_s26 = scalar_lea.vmem (%p50_p3), %s1137_s0, %s836_s22  ;;  %s169_s27 = scalar_lea.vmem (%p50_p3), [#allocation3], %s786_s23 }
   0xf   : > { %v188_v0 = vld [vmem:[%s175_s26] sm:$0xff] (%p50_p3)  ;;  %v190_v1 = vld [vmem:[%s175_s26 + $0x8] sm:$0xff] (%p50_p3) }
  0x10   : > { %v192_v2 = vld [vmem:[%s175_s26 + $0x100] sm:$0xff] (%p50_p3)  ;;  %189 = vst [vmem:[%s169_s27] sm:$0xff] (%p50_p3), %v188_v0  ;;  %191 = vst [vmem:[%s169_s27 + $0x8] sm:$0xff] (%p50_p3), %v190_v1  ;;  %v194_v3 = vld [vmem:[%s175_s26 + $0x108] sm:$0xff] (%p50_p3) }
  0x11   : > { %193 = vst [vmem:[%s169_s27 + $0x10] sm:$0xff] %v192_v2  ;;  %195 = vst [vmem:[%s169_s27 + $0x18] sm:$0xff] %v194_v3 }
  0x12 PF: > { %p789_p6 = scmp.ge.s32.totalorder %s998_s16, 1  ;;  %p212_p7 = scmp.lt.s32.totalorder %s998_s16, 17 }
  0x14   : > { %p213_p8 = pnand %p789_p6, %p212_p7 }
  0x15   : > { %s219_s28 = sand.u32 (!%p213_p8), 1, %s982_s12   ;;  %s791_s29 = sshll.u32 (!%p213_p8), %s990_s14, 6 }
  0x16   : > { %216 = sbr.rel (%p213_p8) target bundleno = 285 (0x11d), region = 51  ;;  %s790_s30 = sshll.u32 (!%p213_p8), %s219_s28, 5 }
  0x17   : > { %p259_p9 = scmp.lt.s32.totalorder (!%p213_p8), %s791_s29, 1023  ;;  %s1073_s8 = scalar_lea.vmem (!%p213_p8), [#allocation3], %s790_s30 }
  0x18   : > { %p793_p10 = scmp.ne.s32.totalorder (!%p213_p8), %s990_s14, 0 }
  0x1b   : > { %s1148_s29 = smov (!%p259_p9, %s791_s29), 1023  ;;  %283 = sbr.rel (%p793_p10) target bundleno = 34 (0x22), region = 59 }
  0x1c   : > { %s792_s4 = sshll.u32 %s1148_s29, 2 }
  0x1d   : > { %s1071_s7 = scalar_lea.vmem %s1138_s1, %s792_s4 }
  0x20   : > { %v1000_v4 = vmov 0.0  }
  0x21   : > { %284 = vst [vmem:[#allocation2] sm:$0xff] %v1000_v4  ;;  %285 = vst [vmem:[#allocation2 + $0x8] sm:$0xff] %v1000_v4 }
  0x22 PF: > { %v922_v5 = vld [vmem:[%s1071_s7 + $0x78] sm:$0xff]   ;;  %v926_v9 = vld [vmem:[%s1071_s7 + $0x70] sm:$0xff]   ;;  %v930_v13 = vld [vmem:[%s1071_s7 + $0x68] sm:$0xff]   ;;  %p830_p11 = scmp.ne.s32.totalorder %s990_s14, 15 }
  0x23   : > { %v923_v6 = vld [vmem:[%s1071_s7 + $0xf8] sm:$0xff]   ;;  %837 = vmatprep.subr.bf16.mxu0 %v922_v5  ;;  %v927_v10 = vld [vmem:[%s1071_s7 + $0xf0] sm:$0xff]   ;;  %v931_v14 = vld [vmem:[%s1071_s7 + $0xe8] sm:$0xff]  }
  0x24   : > { %v924_v7 = vld [vmem:[%s1071_s7 + $0x38] sm:$0xff]   ;;  %859 = vmatprep.subr.bf16.mxu1 %v923_v6  ;;  %v928_v11 = vld [vmem:[%s1071_s7 + $0x30] sm:$0xff]   ;;  %v932_v15 = vld [vmem:[%s1071_s7 + $0x28] sm:$0xff]  }
  0x25   : > { %v925_v8 = vld [vmem:[%s1071_s7 + $0xb8] sm:$0xff]   ;;  %838 = vmatpush3.bf16.msra.mxu0 %v924_v7  ;;  %v929_v12 = vld [vmem:[%s1071_s7 + $0xb0] sm:$0xff]   ;;  %v933_v16 = vld [vmem:[%s1071_s7 + $0xa8] sm:$0xff]  }
  0x26   : > { %860 = vmatpush3.bf16.msra.mxu1 %v925_v8  ;;  %839 = vmatprep.subr.bf16.mxu0 %v926_v9  ;;  %v934_v17 = vld [vmem:[%s1071_s7 + $0x60] sm:$0xff]   ;;  %v938_v21 = vld [vmem:[%s1071_s7 + $0x58] sm:$0xff]   ;;  %v942_v25 = vld [vmem:[%s1071_s7 + $0x50] sm:$0xff]  }
  0x27   : > { %861 = vmatprep.subr.bf16.mxu1 %v927_v10  ;;  %v935_v18 = vld [vmem:[%s1071_s7 + $0xe0] sm:$0xff]   ;;  %v939_v22 = vld [vmem:[%s1071_s7 + $0xd8] sm:$0xff]   ;;  %v943_v26 = vld [vmem:[%s1071_s7 + $0xd0] sm:$0xff]  }
  0x28   : > { %v936_v19 = vld [vmem:[%s1071_s7 + $0x20] sm:$0xff]   ;;  %v940_v23 = vld [vmem:[%s1071_s7 + $0x18] sm:$0xff]   ;;  %v944_v27 = vld [vmem:[%s1071_s7 + $0x10] sm:$0xff]  }
  0x29   : > { %840 = vmatpush3.bf16.msra.mxu0 %v928_v11  ;;  %v937_v20 = vld [vmem:[%s1071_s7 + $0xa0] sm:$0xff]   ;;  %v941_v24 = vld [vmem:[%s1071_s7 + $0x98] sm:$0xff]   ;;  %v945_v28 = vld [vmem:[%s1071_s7 + $0x90] sm:$0xff]  }
  0x2a   : > { %862 = vmatpush3.bf16.msra.mxu1 %v929_v12  ;;  %841 = vmatprep.subr.bf16.mxu0 %v930_v13  ;;  %v946_v29 = vld [vmem:[%s1071_s7 + $0x48] sm:$0xff]   ;;  %v950_v33 = vld [vmem:[%s1071_s7 + $0x40] sm:$0xff]  }
  0x2b   : > { %863 = vmatprep.subr.bf16.mxu1 %v931_v14  ;;  %v947_v30 = vld [vmem:[%s1071_s7 + $0xc8] sm:$0xff]   ;;  %v951_v34 = vld [vmem:[%s1071_s7 + $0xc0] sm:$0xff]  }
  0x2c   : > { %v948_v31 = vld [vmem:[%s1071_s7 + $0x8] sm:$0xff]   ;;  %v952_v35 = vld [vmem:[%s1071_s7] sm:$0xff]  }
  0x2d   : > { %842 = vmatpush3.bf16.msra.mxu0 %v932_v15  ;;  %v949_v32 = vld [vmem:[%s1071_s7 + $0x88] sm:$0xff]   ;;  %v953_v36 = vld [vmem:[%s1071_s7 + $0x80] sm:$0xff]  }
  0x2e   : > { %864 = vmatpush3.bf16.msra.mxu1 %v933_v16  ;;  %843 = vmatprep.subr.bf16.mxu0 %v934_v17  ;;  %v954_v37 = vld [vmem:[%s1073_s8] ss:$16 sps:$4 sm:$0xff]   ;;  %v956_v38 = vld [vmem:[%s1073_s8 + $0x4] ss:$16 sps:$4 sm:$0xff]   ;;  %v957_v39 = vld [vmem:[%s1073_s8 + $0x8] ss:$16 sps:$4 sm:$0xff]  }
  0x2f   : > { %865 = vmatprep.subr.bf16.mxu1 %v935_v18  ;;  %v959_v40 = vld [vmem:[%s1073_s8 + $0xc] ss:$16 sps:$4 sm:$0xff]   ;;  %600 = vmatprep.mubr.bf16.mxu0 %v956_v38  ;;  %v286_v48 = vld [vmem:[#allocation2] sm:$0xff] }
  0x30   : > { %641 = vmatprep.mubr.bf16.mxu1 %v959_v40  ;;  %v287_v56 = vld [vmem:[#allocation2 + $0x8] sm:$0xff] }
  0x31   : > { %844 = vmatpush3.bf16.msra.mxu0 %v936_v19 }
  0x32   : > { %866 = vmatpush3.bf16.msra.mxu1 %v937_v20  ;;  %845 = vmatprep.subr.bf16.mxu0 %v938_v21 }
  0x33   : > { %867 = vmatprep.subr.bf16.mxu1 %v939_v22 }
  0x35   : > { %846 = vmatpush3.bf16.msra.mxu0 %v940_v23 }
  0x36   : > { %868 = vmatpush3.bf16.msra.mxu1 %v941_v24  ;;  %847 = vmatprep.subr.bf16.mxu0 %v942_v25 }
  0x37   : > { %869 = vmatprep.subr.bf16.mxu1 %v943_v26 }
  0x39   : > { %848 = vmatpush3.bf16.msra.mxu0 %v944_v27 }
  0x3a   : > { %870 = vmatpush3.bf16.msra.mxu1 %v945_v28  ;;  %849 = vmatprep.subr.bf16.mxu0 %v946_v29 }
  0x3b   : > { %871 = vmatprep.subr.bf16.mxu1 %v947_v30 }
  0x3d   : > { %850 = vmatpush3.bf16.msra.mxu0 %v948_v31 }
  0x3e   : > { %872 = vmatpush3.bf16.msra.mxu1 %v949_v32  ;;  %851 = vmatprep.subr.bf16.mxu0 %v950_v33 }
  0x3f   : > { %873 = vmatprep.subr.bf16.mxu1 %v951_v34 }
  0x41   : > { %852 = vmatpush3.bf16.msra.mxu0 %v952_v35 }
  0x42   : > { %874 = vmatpush3.bf16.msra.mxu1 %v953_v36 }
  0x44   : > { %601 = vmatmul.mubr.bf16.vlgmr.msra.gmra.mxu0 %v954_v37 }
  0x45   : > { %642 = vmatmul.mubr.bf16.vlgmr.msra.gmra.mxu1 %v957_v39 }
 0x104   : > { %v853_v41 = vpop.f32.mrf.mxu0 }
 0x105   : > { %v875_v42 = vpop.f32.mrf.mxu1 }
 0x106   : > { %v854_v43 = vpop.f32.mrf.mxu0 }
 0x107   : > { %v855_v44 = vadd.f32 %v854_v43, %v853_v41  ;;  %v876_v45 = vpop.f32.mrf.mxu1 }
 0x108   : > { %v877_v46 = vadd.f32 %v876_v45, %v875_v42  ;;  %v856_v47 = vpop.f32.mrf.mxu0 }
 0x109   : > { %v878_v49 = vpop.f32.mrf.mxu1 }
 0x10a   : > { %v644_v50 = vadd.f32 %v877_v46, %v855_v44  ;;  %v857_v51 = vpop.f32.mrf.mxu0 }
 0x10b   : > { %v858_v52 = vadd.f32 %v857_v51, %v856_v47  ;;  %v879_v53 = vpop.f32.mrf.mxu1 }
 0x10c   : > { %v650_v54 = vadd.f32 %v644_v50, %v286_v48  ;;  %v880_v55 = vadd.f32 %v879_v53, %v878_v49 }
 0x10e   : > { %652 = vst [vmem:[#allocation2] sm:$0xff] %v650_v54  ;;  %v647_v57 = vadd.f32 %v880_v55, %v858_v52  ;;  %657 = sbr.rel (%p830_p11) target bundleno = 285 (0x11d), region = 63 }
 0x110   : > { %v651_v58 = vadd.f32 %v647_v57, %v287_v56 }
 0x112   : > { %653 = vst [vmem:[#allocation2 + $0x8] sm:$0xff] %v651_v58 }
 0x113   : > { %v831_v60 = vld [vmem:[%s1139_s2] ss:$0 sm:$0xff] }
 0x115   : > { %v658_v59 = vld [vmem:[#allocation2] sm:$0xff] }
 0x116   : > { %v667_v62 = vadd.f32 %v831_v60, %v658_v59 }
 0x118   : > { %669 = vst [vmem:[%s1140_s3] sm:$0xff] %v667_v62 }
 0x119   : > { %v659_v61 = vld [vmem:[#allocation2 + $0x8] sm:$0xff] }
 0x11a   : > { %v668_v63 = vadd.f32 %v831_v60, %v659_v61 }
 0x11c   : > { %670 = vst [vmem:[%s1140_s3 + $0x8] sm:$0xff] %v668_v63 }
 0x11d PF: > { %s13_s16 = sadd.s32 1, %s998_s16   ;;  %s1141_s12 = smov %s986_s13 }
 0x11e   : > { %p10_p12 = scmp.ge.s32.totalorder %s13_s16, 18   ;;  %s1142_s13 = smov %s1056_s20 }
 0x11f   : > { %s1143_s14 = smov %s994_s15  ;;  %s1144_s15 = smov %s1146_s17 }
 0x120   :  { %12 = sbr.rel (!%p10_p12) target bundleno = 3 (0x3), region = 104 }

</bundles_post_ra>
